<compile_context>
chip_gen: v6e
topology: v6e:2x2x1
jax: 0.10.0
libtpu: 0.0.40
codegen_flags: <defaults>
</compile_context>

<pallas_src>
import functools

import jax
import jax.numpy as jnp
from jax.experimental import pallas as pl
from jax.experimental.pallas import tpu as pltpu

LANE = 128


def _round_up(x, m):
    return ((x + m - 1) // m) * m


@functools.lru_cache(maxsize=1)
def _prefer_m_steps():
    # Multi-TensorCore chips (v7x) want >=4 M-grid steps so both cores keep
    # the BlockSpec pipeline active; single-TC v5e/v6e want the largest tile.
    try:
        kind = jax.devices()[0].device_kind.lower()
    except Exception:
        return 1
    return 4 if "v7" in kind else 1


def _pick_tm(m, prefer_steps):
    cap = m
    if prefer_steps > 1 and m // prefer_steps >= 128:
        cap = m // prefer_steps
    for tm in (512, 256, 128, 64, 32, 16, 8):
        if tm <= cap and m % tm == 0:
            return tm
    return m


# ---------------------------------------------------------------------------
# Fused matmul + bias + activation Pallas kernel (lane-dense padded-OC store)
# ---------------------------------------------------------------------------
def _fused_matmul_kernel(a_ref, b_ref, bias_ref, o_ref, *, activation):
    # a_ref: (TM, Kp) bf16, b_ref: (Kp, OCp) bf16, bias_ref: (1, OCp) f32
    acc = jnp.dot(a_ref[...], b_ref[...], preferred_element_type=jnp.float32)
    acc = acc + bias_ref[...]                      # f32 epilogue (v5e-safe)
    if activation == "relu":
        acc = jnp.maximum(acc, 0.0)
    elif activation == "sigmoid":
        acc = jax.nn.sigmoid(acc)
    o_ref[...] = acc.astype(o_ref.dtype)           # full OCp block, lane-dense


def fused_matmul_bias_act(a, b, bias_p, activation, out_dtype):
    """a: (M, Kp) bf16, b: (Kp, OCp) bf16, bias_p: (1, OCp) f32.
    Returns act(a @ b + bias): (M, OCp) in out_dtype.  The full padded OC
    width is stored (lane-dense); callers slice off padding in XLA where it
    fuses with the next layer's im2col assembly."""
    M, Kp = a.shape
    _, OCp = b.shape
    TM = _pick_tm(M, _prefer_m_steps())
    kern = functools.partial(_fused_matmul_kernel, activation=activation)

    return pl.pallas_call(
        kern,
        out_shape=jax.ShapeDtypeStruct((M, OCp), out_dtype),
        grid_spec=pltpu.PrefetchScalarGridSpec(
            num_scalar_prefetch=0,
            grid=(M // TM,),
            in_specs=[
                pl.BlockSpec((TM, Kp), lambda i: (i, 0)),
                pl.BlockSpec((Kp, OCp), lambda i: (0, 0)),
                pl.BlockSpec((1, OCp), lambda i: (0, 0)),
            ],
            out_specs=pl.BlockSpec((TM, OCp), lambda i: (i, 0)),
        ),
        compiler_params=pltpu.CompilerParams(
            dimension_semantics=("parallel",)),
    )(a, b, bias_p)


# ---------------------------------------------------------------------------
# Conv3d (channels-last) via im2col + fused Pallas matmul
# ---------------------------------------------------------------------------
def conv3d_nhwc(x, w, b, *, stride, padding, activation, out_dtype):
    """x: (N, D, H, W, C); w: (OC, C, k, k, k) (PyTorch Conv3d); b: (OC,)."""
    N, D, H, W, C = x.shape
    OC, _, k, _, _ = w.shape
    x = x.astype(jnp.bfloat16)
    xp = jnp.pad(x, ((0, 0), (padding, padding), (padding, padding),
                     (padding, padding), (0, 0)))
    OD = (D + 2 * padding - k) // stride + 1
    OH = (H + 2 * padding - k) // stride + 1
    OW = (W + 2 * padding - k) // stride + 1

    # TODO(synk): im2col assembly stays in plain-JAX glue (tiny bf16 tensors);
    # fully in-kernel im2col / a fused middle-of-network kernel is the next step.
    cols = [xp[:, kd:kd + stride * OD:stride,
               kh:kh + stride * OH:stride,
               kw:kw + stride * OW:stride, :]
            for kd in range(k) for kh in range(k) for kw in range(k)]
    K = k * k * k * C
    Kp = _round_up(K, LANE)
    if Kp > K:  # fold K padding into the concat (no extra padded copy of A)
        cols.append(jnp.zeros((N, OD, OH, OW, Kp - K), jnp.bfloat16))
    a = jnp.concatenate(cols, axis=-1).reshape(N * OD * OH * OW, Kp)

    OCp = _round_up(OC, LANE)
    wm = jnp.transpose(w, (2, 3, 4, 1, 0)).reshape(K, OC)      # (kd,kh,kw,C) x OC
    wm = jnp.pad(wm, ((0, Kp - K), (0, OCp - OC))).astype(jnp.bfloat16)
    bias_p = jnp.zeros((1, OCp), jnp.float32).at[0, :OC].set(b.astype(jnp.float32))

    out = fused_matmul_bias_act(a, wm, bias_p, activation, out_dtype)  # (M, OCp)
    if OC < OCp:
        out = out[:, :OC]          # XLA slice, fuses with next layer's concat
    return out.reshape(N, OD, OH, OW, OC)


# ---------------------------------------------------------------------------
# ConvTranspose3d (k=4, s=2, p=1) as ONE shared-A, phase-concatenated matmul
# ---------------------------------------------------------------------------
def _tap_t(j, r):
    # Phase decomposition of ConvTranspose3d k=4, s=2, p=1 (per spatial dim):
    #   out[2q + r] += x[q + j - 1] * w[t],   t = -2*(j - 1) + r + 1
    # valid taps: j=0 -> t=3 (r=0 only), j=1 -> t=r+1, j=2 -> t=0 (r=1 only).
    t = -2 * (j - 1) + r + 1
    return t if 0 <= t <= 3 else None


def conv_transpose3d_nhwc(x, w, b, *, activation, out_dtype):
    """x: (N, D, H, W, C); w: (C_in, OC, 4, 4, 4) (PyTorch ConvTranspose3d);
    b: (OC,).  Specialized to kernel=4, stride=2, padding=1 (as in the module).
    One matmul: the 27*C tap-im2col is shared by all 8 output phases and the 8
    phases' zero-extended 2x2x2 sub-kernels are concatenated along OC, so the
    matmul N dim is 8*OC (lane-dense, MXU-filling)."""
    N, D, H, W, C = x.shape
    _, OC, k, _, _ = w.shape
    assert k == 4  # decomposition only valid for kernel=4, stride=2, padding=1

    x = x.astype(jnp.bfloat16)
    xp = jnp.pad(x, ((0, 0), (1, 1), (1, 1), (1, 1), (0, 0)))
    M = N * D * H * W
    K = 27 * C
    Kp = _round_up(K, LANE)
    OC8 = 8 * OC
    OCp = _round_up(OC8, LANE)

    # Shared A: one tap-im2col over offsets {-1, 0, +1} per spatial dim.
    cols = [xp[:, jd:jd + D, jh:jh + H, jw:jw + W, :]
            for jd in range(3) for jh in range(3) for jw in range(3)]
    if Kp > K:
        cols.append(jnp.zeros((N, D, H, W, Kp - K), jnp.bfloat16))
    a = jnp.concatenate(cols, axis=-1).reshape(M, Kp)

    # B: zero-extend each phase's 2x2x2 sub-kernel into the 27-tap layout and
    # concatenate the 8 phases along the OC axis.
    wt = jnp.transpose(w, (2, 3, 4, 0, 1)).astype(jnp.float32)   # (4,4,4,C,OC)
    zero = jnp.zeros((C, OC), jnp.float32)
    phase_mats = []
    for rd in (0, 1):
        for rh in (0, 1):
            for rw in (0, 1):
                taps = []
                for jd in range(3):
                    td = _tap_t(jd, rd)
                    for jh in range(3):
                        th = _tap_t(jh, rh)
                        for jw in range(3):
                            tw = _tap_t(jw, rw)
                            if td is None or th is None or tw is None:
                                taps.append(zero)
                            else:
                                taps.append(wt[td, th, tw])
                phase_mats.append(jnp.stack(taps, axis=0).reshape(K, OC))
    wm = jnp.concatenate(phase_mats, axis=1)                      # (K, 8*OC)
    wm = jnp.pad(wm, ((0, Kp - K), (0, OCp - OC8))).astype(jnp.bfloat16)

    bias8 = jnp.tile(b.astype(jnp.float32), 8)                    # (8*OC,)
    bias_p = jnp.zeros((1, OCp), jnp.float32).at[0, :OC8].set(bias8)

    out = fused_matmul_bias_act(a, wm, bias_p, activation, out_dtype)  # (M, OCp)
    if OC8 < OCp:
        out = out[:, :OC8]      # drop padded lanes BEFORE any consumer
    out = out.reshape(N, D, H, W, 2, 2, 2, OC)
    out = out.transpose(0, 1, 4, 2, 5, 3, 6, 7)   # N, D,rd, H,rh, W,rw, OC
    return out.reshape(N, 2 * D, 2 * H, 2 * W, OC)


# ---------------------------------------------------------------------------
# Autoencoder3D forward
# ---------------------------------------------------------------------------
def autoencoder3d_forward(params, x):
    # x: NCDHW (PyTorch convention) -> NDHWC once, back once at the end.
    h = jnp.transpose(x, (0, 2, 3, 4, 1))
    # encoder: Conv(1->16)+ReLU, Conv(16->32) [no activation], Conv(32->1)+ReLU
    h = conv3d_nhwc(h, params["enc1_w"], params["enc1_b"], stride=2, padding=1,
                    activation="relu", out_dtype=jnp.bfloat16)
    h = conv3d_nhwc(h, params["enc2_w"], params["enc2_b"], stride=2, padding=1,
                    activation=None, out_dtype=jnp.bfloat16)
    h = conv3d_nhwc(h, params["enc3_w"], params["enc3_b"], stride=2, padding=1,
                    activation="relu", out_dtype=jnp.bfloat16)
    # decoder: ConvT(1->32)+ReLU, ConvT(32->16)+ReLU, ConvT(16->1)+Sigmoid
    d = conv_transpose3d_nhwc(h, params["dec1_w"], params["dec1_b"],
                              activation="relu", out_dtype=jnp.bfloat16)
    d = conv_transpose3d_nhwc(d, params["dec2_w"], params["dec2_b"],
                              activation="relu", out_dtype=jnp.bfloat16)
    d = conv_transpose3d_nhwc(d, params["dec3_w"], params["dec3_b"],
                              activation="sigmoid", out_dtype=jnp.float32)
    d = jnp.transpose(d, (0, 4, 1, 2, 3))                       # back to NCDHW
    if d.shape != x.shape:
        # TODO(synk): F.interpolate(mode='trilinear', align_corners=False)
        # fallback done in plain JAX (not hit for spatial dims divisible by 8).
        d = jax.image.resize(d, x.shape, method="trilinear")
    return d


def init_params(key):
    ks = jax.random.split(key, 12)

    def w(k, shape):
        return jax.random.normal(k, shape, jnp.float32) * 0.1

    return {
        "enc1_w": w(ks[0], (16, 1, 3, 3, 3)),  "enc1_b": w(ks[1], (16,)),
        "enc2_w": w(ks[2], (32, 16, 3, 3, 3)), "enc2_b": w(ks[3], (32,)),
        "enc3_w": w(ks[4], (1, 32, 3, 3, 3)),  "enc3_b": w(ks[5], (1,)),
        "dec1_w": w(ks[6], (1, 32, 4, 4, 4)),  "dec1_b": w(ks[7], (32,)),
        "dec2_w": w(ks[8], (32, 16, 4, 4, 4)), "dec2_b": w(ks[9], (16,)),
        "dec3_w": w(ks[10], (16, 1, 4, 4, 4)), "dec3_b": w(ks[11], (1,)),
    }


if __name__ == "__main__":
    key = jax.random.PRNGKey(0)
    k_params, k_x = jax.random.split(key)
    params = init_params(k_params)
    # NCDHW input: batch=2, 1 channel, 16^3 volume (decoder output matches input)
    x = jax.random.uniform(k_x, (2, 1, 16, 16, 16), dtype=jnp.float32)

    fwd = jax.jit(autoencoder3d_forward)
    out = fwd(params, x)
    jax.block_until_ready(out)

    assert out.shape == x.shape, out.shape
    assert bool(jnp.all(jnp.isfinite(out)))
    print("KERNEL_OK")
</pallas_src>

<mosaic_0001>
module attributes {stable_mosaic.version = 11 : i64} {
  func.func @_fused_matmul_kernel(%arg0: i32, %arg1: memref<512x128xbf16, #tpu.memory_space<vmem>>, %arg2: memref<128x128xbf16, #tpu.memory_space<vmem>>, %arg3: memref<1x128xf32, #tpu.memory_space<vmem>>, %arg4: memref<512x128xbf16, #tpu.memory_space<vmem>>) attributes {dimension_semantics = [#tpu.dimension_semantics<parallel>], iteration_bounds = array<i64: 2>, scalar_prefetch = 0 : i64, scratch_operands = 0 : i64, tpu.core_type = #tpu.core_type<tc>, window_params = [{transform_indices = @transform_0, window_bounds = array<i64: 512, 128>}, {pipeline_mode = #tpu.pipeline_mode<synchronous>, transform_indices = @transform_1, window_bounds = array<i64: 128, 128>}, {pipeline_mode = #tpu.pipeline_mode<synchronous>, transform_indices = @transform_2, window_bounds = array<i64: 1, 128>}, {transform_indices = @transform_3, window_bounds = array<i64: 512, 128>}]} {
    %c0 = arith.constant 0 : index
    %c0_0 = arith.constant 0 : index
    %0 = vector.load %arg1[%c0, %c0_0] : memref<512x128xbf16, #tpu.memory_space<vmem>>, vector<512x128xbf16>
    %c0_1 = arith.constant 0 : index
    %c0_2 = arith.constant 0 : index
    %1 = vector.load %arg2[%c0_1, %c0_2] : memref<128x128xbf16, #tpu.memory_space<vmem>>, vector<128x128xbf16>
    %cst = arith.constant dense<0.000000e+00> : vector<512x128xf32>
    %2 = tpu.matmul %0, %1, %cst {dimension_numbers = #tpu.dot_dimension_numbers<[1], [0], [0], [1], [0, 0, 1, 1], [], []>} : vector<512x128xbf16>, vector<128x128xbf16>, vector<512x128xf32> -> vector<512x128xf32>
    %c0_3 = arith.constant 0 : index
    %c0_4 = arith.constant 0 : index
    %3 = vector.load %arg3[%c0_3, %c0_4] : memref<1x128xf32, #tpu.memory_space<vmem>>, vector<1x128xf32>
    %4 = vector.broadcast %3 : vector<1x128xf32> to vector<512x128xf32>
    %5 = arith.addf %2, %4 : vector<512x128xf32>
    %cst_5 = arith.constant 0.000000e+00 : f32
    %6 = vector.broadcast %cst_5 : f32 to vector<512x128xf32>
    %7 = arith.maximumf %5, %6 : vector<512x128xf32>
    %8 = arith.truncf %7 : vector<512x128xf32> to vector<512x128xbf16>
    %c0_6 = arith.constant 0 : index
    %c0_7 = arith.constant 0 : index
    %9 = vector.load %arg4[%c0_6, %c0_7] : memref<512x128xbf16, #tpu.memory_space<vmem>>, vector<512x128xbf16>
    tpu.vector_store %arg4[%c0_6, %c0_7], %8 {strides = array<i32>} : memref<512x128xbf16, #tpu.memory_space<vmem>>, vector<512x128xbf16>,
    return
  }
  func.func @transform_0(%arg0: i32) -> (i32, i32) {
    %c0_i32 = arith.constant 0 : i32
    %c0_i32_0 = arith.constant 0 : i32
    return %arg0, %c0_i32 : i32, i32
  }
  func.func @transform_1(%arg0: i32) -> (i32, i32) {
    %c0_i32 = arith.constant 0 : i32
    %c0_i32_0 = arith.constant 0 : i32
    %c0_i32_1 = arith.constant 0 : i32
    return %c0_i32, %c0_i32_0 : i32, i32
  }
  func.func @transform_2(%arg0: i32) -> (i32, i32) {
    %c0_i32 = arith.constant 0 : i32
    %c0_i32_0 = arith.constant 0 : i32
    %c0_i32_1 = arith.constant 0 : i32
    return %c0_i32, %c0_i32_0 : i32, i32
  }
  func.func @transform_3(%arg0: i32) -> (i32, i32) {
    %c0_i32 = arith.constant 0 : i32
    %c0_i32_0 = arith.constant 0 : i32
    return %arg0, %c0_i32 : i32, i32
  }
}

module attributes {stable_mosaic.version = 11 : i64} {
  func.func @_fused_matmul_kernel(%arg0: i32, %arg1: memref<128x512xbf16, #tpu.memory_space<vmem>>, %arg2: memref<512x128xbf16, #tpu.memory_space<vmem>>, %arg3: memref<1x128xf32, #tpu.memory_space<vmem>>, %arg4: memref<128x128xbf16, #tpu.memory_space<vmem>>) attributes {dimension_semantics = [#tpu.dimension_semantics<parallel>], iteration_bounds = array<i64: 1>, scalar_prefetch = 0 : i64, scratch_operands = 0 : i64, tpu.core_type = #tpu.core_type<tc>, window_params = [{transform_indices = @transform_0, window_bounds = array<i64: 128, 512>}, {pipeline_mode = #tpu.pipeline_mode<synchronous>, transform_indices = @transform_1, window_bounds = array<i64: 512, 128>}, {pipeline_mode = #tpu.pipeline_mode<synchronous>, transform_indices = @transform_2, window_bounds = array<i64: 1, 128>}, {transform_indices = @transform_3, window_bounds = array<i64: 128, 128>}]} {
    %c0 = arith.constant 0 : index
    %c0_0 = arith.constant 0 : index
    %0 = vector.load %arg1[%c0, %c0_0] : memref<128x512xbf16, #tpu.memory_space<vmem>>, vector<128x512xbf16>
    %c0_1 = arith.constant 0 : index
    %c0_2 = arith.constant 0 : index
    %1 = vector.load %arg2[%c0_1, %c0_2] : memref<512x128xbf16, #tpu.memory_space<vmem>>, vector<512x128xbf16>
    %cst = arith.constant dense<0.000000e+00> : vector<128x128xf32>
    %2 = tpu.matmul %0, %1, %cst {dimension_numbers = #tpu.dot_dimension_numbers<[1], [0], [0], [1], [0, 0, 1, 1], [], []>} : vector<128x512xbf16>, vector<512x128xbf16>, vector<128x128xf32> -> vector<128x128xf32>
    %c0_3 = arith.constant 0 : index
    %c0_4 = arith.constant 0 : index
    %3 = vector.load %arg3[%c0_3, %c0_4] : memref<1x128xf32, #tpu.memory_space<vmem>>, vector<1x128xf32>
    %4 = vector.broadcast %3 : vector<1x128xf32> to vector<128x128xf32>
    %5 = arith.addf %2, %4 : vector<128x128xf32>
    %6 = arith.truncf %5 : vector<128x128xf32> to vector<128x128xbf16>
    %c0_5 = arith.constant 0 : index
    %c0_6 = arith.constant 0 : index
    %7 = vector.load %arg4[%c0_5, %c0_6] : memref<128x128xbf16, #tpu.memory_space<vmem>>, vector<128x128xbf16>
    tpu.vector_store %arg4[%c0_5, %c0_6], %6 {strides = array<i32>} : memref<128x128xbf16, #tpu.memory_space<vmem>>, vector<128x128xbf16>,
    return
  }
  func.func @transform_0(%arg0: i32) -> (i32, i32) {
    %c0_i32 = arith.constant 0 : i32
    %c0_i32_0 = arith.constant 0 : i32
    return %arg0, %c0_i32 : i32, i32
  }
  func.func @transform_1(%arg0: i32) -> (i32, i32) {
    %c0_i32 = arith.constant 0 : i32
    %c0_i32_0 = arith.constant 0 : i32
    %c0_i32_1 = arith.constant 0 : i32
    return %c0_i32, %c0_i32_0 : i32, i32
  }
  func.func @transform_2(%arg0: i32) -> (i32, i32) {
    %c0_i32 = arith.constant 0 : i32
    %c0_i32_0 = arith.constant 0 : i32
    %c0_i32_1 = arith.constant 0 : i32
    return %c0_i32, %c0_i32_0 : i32, i32
  }
  func.func @transform_3(%arg0: i32) -> (i32, i32) {
    %c0_i32 = arith.constant 0 : i32
    %c0_i32_0 = arith.constant 0 : i32
    return %arg0, %c0_i32 : i32, i32
  }
}

module attributes {stable_mosaic.version = 11 : i64} {
  func.func @_fused_matmul_kernel(%arg0: i32, %arg1: memref<16x896xbf16, #tpu.memory_space<vmem>>, %arg2: memref<896x128xbf16, #tpu.memory_space<vmem>>, %arg3: memref<1x128xf32, #tpu.memory_space<vmem>>, %arg4: memref<16x128xbf16, #tpu.memory_space<vmem>>) attributes {dimension_semantics = [#tpu.dimension_semantics<parallel>], iteration_bounds = array<i64: 1>, scalar_prefetch = 0 : i64, scratch_operands = 0 : i64, tpu.core_type = #tpu.core_type<tc>, window_params = [{transform_indices = @transform_0, window_bounds = array<i64: 16, 896>}, {pipeline_mode = #tpu.pipeline_mode<synchronous>, transform_indices = @transform_1, window_bounds = array<i64: 896, 128>}, {pipeline_mode = #tpu.pipeline_mode<synchronous>, transform_indices = @transform_2, window_bounds = array<i64: 1, 128>}, {transform_indices = @transform_3, window_bounds = array<i64: 16, 128>}]} {
    %c0 = arith.constant 0 : index
    %c0_0 = arith.constant 0 : index
    %0 = vector.load %arg1[%c0, %c0_0] : memref<16x896xbf16, #tpu.memory_space<vmem>>, vector<16x896xbf16>
    %c0_1 = arith.constant 0 : index
    %c0_2 = arith.constant 0 : index
    %1 = vector.load %arg2[%c0_1, %c0_2] : memref<896x128xbf16, #tpu.memory_space<vmem>>, vector<896x128xbf16>
    %cst = arith.constant dense<0.000000e+00> : vector<16x128xf32>
    %2 = tpu.matmul %0, %1, %cst {dimension_numbers = #tpu.dot_dimension_numbers<[1], [0], [0], [1], [0, 0, 1, 1], [], []>} : vector<16x896xbf16>, vector<896x128xbf16>, vector<16x128xf32> -> vector<16x128xf32>
    %c0_3 = arith.constant 0 : index
    %c0_4 = arith.constant 0 : index
    %3 = vector.load %arg3[%c0_3, %c0_4] : memref<1x128xf32, #tpu.memory_space<vmem>>, vector<1x128xf32>
    %4 = vector.broadcast %3 : vector<1x128xf32> to vector<16x128xf32>
    %5 = arith.addf %2, %4 : vector<16x128xf32>
    %cst_5 = arith.constant 0.000000e+00 : f32
    %6 = vector.broadcast %cst_5 : f32 to vector<16x128xf32>
    %7 = arith.maximumf %5, %6 : vector<16x128xf32>
    %8 = arith.truncf %7 : vector<16x128xf32> to vector<16x128xbf16>
    %c0_6 = arith.constant 0 : index
    %c0_7 = arith.constant 0 : index
    %9 = vector.load %arg4[%c0_6, %c0_7] : memref<16x128xbf16, #tpu.memory_space<vmem>>, vector<16x128xbf16>
    tpu.vector_store %arg4[%c0_6, %c0_7], %8 {strides = array<i32>} : memref<16x128xbf16, #tpu.memory_space<vmem>>, vector<16x128xbf16>,
    return
  }
  func.func @transform_0(%arg0: i32) -> (i32, i32) {
    %c0_i32 = arith.constant 0 : i32
    %c0_i32_0 = arith.constant 0 : i32
    return %arg0, %c0_i32 : i32, i32
  }
  func.func @transform_1(%arg0: i32) -> (i32, i32) {
    %c0_i32 = arith.constant 0 : i32
    %c0_i32_0 = arith.constant 0 : i32
    %c0_i32_1 = arith.constant 0 : i32
    return %c0_i32, %c0_i32_0 : i32, i32
  }
  func.func @transform_2(%arg0: i32) -> (i32, i32) {
    %c0_i32 = arith.constant 0 : i32
    %c0_i32_0 = arith.constant 0 : i32
    %c0_i32_1 = arith.constant 0 : i32
    return %c0_i32, %c0_i32_0 : i32, i32
  }
  func.func @transform_3(%arg0: i32) -> (i32, i32) {
    %c0_i32 = arith.constant 0 : i32
    %c0_i32_0 = arith.constant 0 : i32
    return %arg0, %c0_i32 : i32, i32
  }
}

module attributes {stable_mosaic.version = 11 : i64} {
  func.func @_fused_matmul_kernel(%arg0: i32, %arg1: memref<16x128xbf16, #tpu.memory_space<vmem>>, %arg2: memref<128x256xbf16, #tpu.memory_space<vmem>>, %arg3: memref<1x256xf32, #tpu.memory_space<vmem>>, %arg4: memref<16x256xbf16, #tpu.memory_space<vmem>>) attributes {dimension_semantics = [#tpu.dimension_semantics<parallel>], iteration_bounds = array<i64: 1>, scalar_prefetch = 0 : i64, scratch_operands = 0 : i64, tpu.core_type = #tpu.core_type<tc>, window_params = [{transform_indices = @transform_0, window_bounds = array<i64: 16, 128>}, {pipeline_mode = #tpu.pipeline_mode<synchronous>, transform_indices = @transform_1, window_bounds = array<i64: 128, 256>}, {pipeline_mode = #tpu.pipeline_mode<synchronous>, transform_indices = @transform_2, window_bounds = array<i64: 1, 256>}, {transform_indices = @transform_3, window_bounds = array<i64: 16, 256>}]} {
    %c0 = arith.constant 0 : index
    %c0_0 = arith.constant 0 : index
    %0 = vector.load %arg1[%c0, %c0_0] : memref<16x128xbf16, #tpu.memory_space<vmem>>, vector<16x128xbf16>
    %c0_1 = arith.constant 0 : index
    %c0_2 = arith.constant 0 : index
    %1 = vector.load %arg2[%c0_1, %c0_2] : memref<128x256xbf16, #tpu.memory_space<vmem>>, vector<128x256xbf16>
    %cst = arith.constant dense<0.000000e+00> : vector<16x256xf32>
    %2 = tpu.matmul %0, %1, %cst {dimension_numbers = #tpu.dot_dimension_numbers<[1], [0], [0], [1], [0, 0, 1, 1], [], []>} : vector<16x128xbf16>, vector<128x256xbf16>, vector<16x256xf32> -> vector<16x256xf32>
    %c0_3 = arith.constant 0 : index
    %c0_4 = arith.constant 0 : index
    %3 = vector.load %arg3[%c0_3, %c0_4] : memref<1x256xf32, #tpu.memory_space<vmem>>, vector<1x256xf32>
    %4 = vector.broadcast %3 : vector<1x256xf32> to vector<16x256xf32>
    %5 = arith.addf %2, %4 : vector<16x256xf32>
    %cst_5 = arith.constant 0.000000e+00 : f32
    %6 = vector.broadcast %cst_5 : f32 to vector<16x256xf32>
    %7 = arith.maximumf %5, %6 : vector<16x256xf32>
    %8 = arith.truncf %7 : vector<16x256xf32> to vector<16x256xbf16>
    %c0_6 = arith.constant 0 : index
    %c0_7 = arith.constant 0 : index
    %9 = vector.load %arg4[%c0_6, %c0_7] : memref<16x256xbf16, #tpu.memory_space<vmem>>, vector<16x256xbf16>
    tpu.vector_store %arg4[%c0_6, %c0_7], %8 {strides = array<i32>} : memref<16x256xbf16, #tpu.memory_space<vmem>>, vector<16x256xbf16>,
    return
  }
  func.func @transform_0(%arg0: i32) -> (i32, i32) {
    %c0_i32 = arith.constant 0 : i32
    %c0_i32_0 = arith.constant 0 : i32
    return %arg0, %c0_i32 : i32, i32
  }
  func.func @transform_1(%arg0: i32) -> (i32, i32) {
    %c0_i32 = arith.constant 0 : i32
    %c0_i32_0 = arith.constant 0 : i32
    %c0_i32_1 = arith.constant 0 : i32
    return %c0_i32, %c0_i32_0 : i32, i32
  }
  func.func @transform_2(%arg0: i32) -> (i32, i32) {
    %c0_i32 = arith.constant 0 : i32
    %c0_i32_0 = arith.constant 0 : i32
    %c0_i32_1 = arith.constant 0 : i32
    return %c0_i32, %c0_i32_0 : i32, i32
  }
  func.func @transform_3(%arg0: i32) -> (i32, i32) {
    %c0_i32 = arith.constant 0 : i32
    %c0_i32_0 = arith.constant 0 : i32
    return %arg0, %c0_i32 : i32, i32
  }
}

module attributes {stable_mosaic.version = 11 : i64} {
  func.func @_fused_matmul_kernel(%arg0: i32, %arg1: memref<128x896xbf16, #tpu.memory_space<vmem>>, %arg2: memref<896x128xbf16, #tpu.memory_space<vmem>>, %arg3: memref<1x128xf32, #tpu.memory_space<vmem>>, %arg4: memref<128x128xbf16, #tpu.memory_space<vmem>>) attributes {dimension_semantics = [#tpu.dimension_semantics<parallel>], iteration_bounds = array<i64: 1>, scalar_prefetch = 0 : i64, scratch_operands = 0 : i64, tpu.core_type = #tpu.core_type<tc>, window_params = [{transform_indices = @transform_0, window_bounds = array<i64: 128, 896>}, {pipeline_mode = #tpu.pipeline_mode<synchronous>, transform_indices = @transform_1, window_bounds = array<i64: 896, 128>}, {pipeline_mode = #tpu.pipeline_mode<synchronous>, transform_indices = @transform_2, window_bounds = array<i64: 1, 128>}, {transform_indices = @transform_3, window_bounds = array<i64: 128, 128>}]} {
    %c0 = arith.constant 0 : index
    %c0_0 = arith.constant 0 : index
    %0 = vector.load %arg1[%c0, %c0_0] : memref<128x896xbf16, #tpu.memory_space<vmem>>, vector<128x896xbf16>
    %c0_1 = arith.constant 0 : index
    %c0_2 = arith.constant 0 : index
    %1 = vector.load %arg2[%c0_1, %c0_2] : memref<896x128xbf16, #tpu.memory_space<vmem>>, vector<896x128xbf16>
    %cst = arith.constant dense<0.000000e+00> : vector<128x128xf32>
    %2 = tpu.matmul %0, %1, %cst {dimension_numbers = #tpu.dot_dimension_numbers<[1], [0], [0], [1], [0, 0, 1, 1], [], []>} : vector<128x896xbf16>, vector<896x128xbf16>, vector<128x128xf32> -> vector<128x128xf32>
    %c0_3 = arith.constant 0 : index
    %c0_4 = arith.constant 0 : index
    %3 = vector.load %arg3[%c0_3, %c0_4] : memref<1x128xf32, #tpu.memory_space<vmem>>, vector<1x128xf32>
    %4 = vector.broadcast %3 : vector<1x128xf32> to vector<128x128xf32>
    %5 = arith.addf %2, %4 : vector<128x128xf32>
    %cst_5 = arith.constant 0.000000e+00 : f32
    %6 = vector.broadcast %cst_5 : f32 to vector<128x128xf32>
    %7 = arith.maximumf %5, %6 : vector<128x128xf32>
    %8 = arith.truncf %7 : vector<128x128xf32> to vector<128x128xbf16>
    %c0_6 = arith.constant 0 : index
    %c0_7 = arith.constant 0 : index
    %9 = vector.load %arg4[%c0_6, %c0_7] : memref<128x128xbf16, #tpu.memory_space<vmem>>, vector<128x128xbf16>
    tpu.vector_store %arg4[%c0_6, %c0_7], %8 {strides = array<i32>} : memref<128x128xbf16, #tpu.memory_space<vmem>>, vector<128x128xbf16>,
    return
  }
  func.func @transform_0(%arg0: i32) -> (i32, i32) {
    %c0_i32 = arith.constant 0 : i32
    %c0_i32_0 = arith.constant 0 : i32
    return %arg0, %c0_i32 : i32, i32
  }
  func.func @transform_1(%arg0: i32) -> (i32, i32) {
    %c0_i32 = arith.constant 0 : i32
    %c0_i32_0 = arith.constant 0 : i32
    %c0_i32_1 = arith.constant 0 : i32
    return %c0_i32, %c0_i32_0 : i32, i32
  }
  func.func @transform_2(%arg0: i32) -> (i32, i32) {
    %c0_i32 = arith.constant 0 : i32
    %c0_i32_0 = arith.constant 0 : i32
    %c0_i32_1 = arith.constant 0 : i32
    return %c0_i32, %c0_i32_0 : i32, i32
  }
  func.func @transform_3(%arg0: i32) -> (i32, i32) {
    %c0_i32 = arith.constant 0 : i32
    %c0_i32_0 = arith.constant 0 : i32
    return %arg0, %c0_i32 : i32, i32
  }
}

module attributes {stable_mosaic.version = 11 : i64} {
  func.func @_fused_matmul_kernel(%arg0: i32, %arg1: memref<512x512xbf16, #tpu.memory_space<vmem>>, %arg2: memref<512x128xbf16, #tpu.memory_space<vmem>>, %arg3: memref<1x128xf32, #tpu.memory_space<vmem>>, %arg4: memref<512x128xf32, #tpu.memory_space<vmem>>) attributes {dimension_semantics = [#tpu.dimension_semantics<parallel>], iteration_bounds = array<i64: 2>, scalar_prefetch = 0 : i64, scratch_operands = 0 : i64, tpu.core_type = #tpu.core_type<tc>, window_params = [{transform_indices = @transform_0, window_bounds = array<i64: 512, 512>}, {pipeline_mode = #tpu.pipeline_mode<synchronous>, transform_indices = @transform_1, window_bounds = array<i64: 512, 128>}, {pipeline_mode = #tpu.pipeline_mode<synchronous>, transform_indices = @transform_2, window_bounds = array<i64: 1, 128>}, {transform_indices = @transform_3, window_bounds = array<i64: 512, 128>}]} {
    %c0 = arith.constant 0 : index
    %c0_0 = arith.constant 0 : index
    %0 = vector.load %arg1[%c0, %c0_0] : memref<512x512xbf16, #tpu.memory_space<vmem>>, vector<512x512xbf16>
    %c0_1 = arith.constant 0 : index
    %c0_2 = arith.constant 0 : index
    %1 = vector.load %arg2[%c0_1, %c0_2] : memref<512x128xbf16, #tpu.memory_space<vmem>>, vector<512x128xbf16>
    %cst = arith.constant dense<0.000000e+00> : vector<512x128xf32>
    %2 = tpu.matmul %0, %1, %cst {dimension_numbers = #tpu.dot_dimension_numbers<[1], [0], [0], [1], [0, 0, 1, 1], [], []>} : vector<512x512xbf16>, vector<512x128xbf16>, vector<512x128xf32> -> vector<512x128xf32>
    %c0_3 = arith.constant 0 : index
    %c0_4 = arith.constant 0 : index
    %3 = vector.load %arg3[%c0_3, %c0_4] : memref<1x128xf32, #tpu.memory_space<vmem>>, vector<1x128xf32>
    %4 = vector.broadcast %3 : vector<1x128xf32> to vector<512x128xf32>
    %5 = arith.addf %2, %4 : vector<512x128xf32>
    %6 = arith.negf %5 : vector<512x128xf32>
    %7 = math.exp %6 : vector<512x128xf32>
    %cst_5 = arith.constant 1.000000e+00 : f32
    %8 = vector.broadcast %cst_5 : f32 to vector<512x128xf32>
    %9 = arith.addf %8, %7 : vector<512x128xf32>
    %10 = arith.divf %8, %9 : vector<512x128xf32>
    %c0_6 = arith.constant 0 : index
    %c0_7 = arith.constant 0 : index
    %11 = vector.load %arg4[%c0_6, %c0_7] : memref<512x128xf32, #tpu.memory_space<vmem>>, vector<512x128xf32>
    tpu.vector_store %arg4[%c0_6, %c0_7], %10 {strides = array<i32>} : memref<512x128xf32, #tpu.memory_space<vmem>>, vector<512x128xf32>,
    return
  }
  func.func @transform_0(%arg0: i32) -> (i32, i32) {
    %c0_i32 = arith.constant 0 : i32
    %c0_i32_0 = arith.constant 0 : i32
    return %arg0, %c0_i32 : i32, i32
  }
  func.func @transform_1(%arg0: i32) -> (i32, i32) {
    %c0_i32 = arith.constant 0 : i32
    %c0_i32_0 = arith.constant 0 : i32
    %c0_i32_1 = arith.constant 0 : i32
    return %c0_i32, %c0_i32_0 : i32, i32
  }
  func.func @transform_2(%arg0: i32) -> (i32, i32) {
    %c0_i32 = arith.constant 0 : i32
    %c0_i32_0 = arith.constant 0 : i32
    %c0_i32_1 = arith.constant 0 : i32
    return %c0_i32, %c0_i32_0 : i32, i32
  }
  func.func @transform_3(%arg0: i32) -> (i32, i32) {
    %c0_i32 = arith.constant 0 : i32
    %c0_i32_0 = arith.constant 0 : i32
    return %arg0, %c0_i32 : i32, i32
  }
}

</mosaic_0001>

<bundles_post_ra>
// kernel: autoencoder3d_forward.6
= control target key start
LH: loop header
LB: loop body
LE: loop exit
PB: predicated region body
PF: predicated region fallthrough
CT: control target
= control target key end

     0   :  { %s1814_s12 = smov 0   ;;  %s1999_s0 = inlined_call_operand.vmem [shape: bf16[1024,128], index: 0, kind: input, shape index: {}]   ;;  %s2000_s1 = inlined_call_operand.vmem [shape: bf16[128,128], index: 1, kind: input, shape index: {}]   ;;  %s2001_s2 = inlined_call_operand.vmem [shape: f32[1,128], index: 2, kind: input, shape index: {}]   ;;  %s2002_s3 = inlined_call_operand.vmem [shape: bf16[1024,128], index: 3, kind: output, shape index: {}]  }
   0x1 LB: > { %s1231_s13 = sadd.s32 4294967295, %s1792_s12   ;;  %p1235_p0 = scmp.ge.s32.totalorder %s1792_s12, 1  ;;  %s1792_s12 = sphi %s1814_s12, %s13_s12  }
   0x2   : > { %p138_p1 = scmp.lt.s32.totalorder %s1792_s12, 3 }
   0x4   : > { %p139_p2 = pnand %p1235_p0, %p138_p1 }
   0x5   : > { %s1236_s16 = sshll.u32 (!%p139_p2), %s1231_s13, 6 }
   0x6   : > { %142 = sbr.rel (%p139_p2) target bundleno = 306 (0x132), region = 32  ;;  %p163_p3 = scmp.lt.s32.totalorder (!%p139_p2), %s1236_s16, 127 }
   0xb   : > { %v1746_v0 = vld [vmem:[%s2000_s1 + $0x38] sm:$0xff]   ;;  %v1747_v1 = vld [vmem:[%s2000_s1 + $0x30] sm:$0xff]   ;;  %s2004_s16 = smov (!%p163_p3, %s1236_s16), 127  ;;  %v1748_v2 = vld [vmem:[%s2000_s1 + $0x28] sm:$0xff]  }
   0xc   : > { %1642 = vmatprep.subr.bf16.mxu0 %v1746_v0  ;;  %1722 = vmatprep.subr.bf16.mxu1 %v1746_v0  ;;  %s1237_s21 = sshll.u32 %s2004_s16, 2  ;;  %v1749_v3 = vld [vmem:[%s2000_s1 + $0x20] sm:$0xff]   ;;  %v1750_v6 = vld [vmem:[%s2000_s1 + $0x18] sm:$0xff]   ;;  %v1751_v7 = vld [vmem:[%s2000_s1 + $0x10] sm:$0xff]  }
   0xd   : > { %1643 = vmatpush3.bf16.msra.mxu0 %v1746_v0  ;;  %1730 = vmatpush3.bf16.msra.mxu1 %v1746_v0  ;;  %s1839_s24 = scalar_lea.vmem %s1999_s0, %s1237_s21  ;;  %v1752_v8 = vld [vmem:[%s2000_s1 + $0x8] sm:$0xff]   ;;  %v1753_v9 = vld [vmem:[%s2000_s1] sm:$0xff]   ;;  %s1906_s13 = scalar_lea.vmem %s2002_s3, %s1237_s21 }
   0xe   : > { %1644 = vmatprep.subr.bf16.mxu0 %v1747_v1  ;;  %1723 = vmatprep.subr.bf16.mxu1 %v1747_v1  ;;  %v1754_v4 = vld [vmem:[%s1839_s24] sm:$0xff]   ;;  %v1756_v10 = vld [vmem:[%s1839_s24 + $0x8] sm:$0xff]   ;;  %v1758_v12 = vld [vmem:[%s1839_s24 + $0x10] sm:$0xff]  }
   0xf   : > { %v1755_v5 = vld [vmem:[%s1839_s24 + $0x80] sm:$0xff]   ;;  %1658 = vmatprep.mubr.bf16.mxu0 %v1754_v4  ;;  %v1757_v11 = vld [vmem:[%s1839_s24 + $0x88] sm:$0xff]   ;;  %v1759_v13 = vld [vmem:[%s1839_s24 + $0x90] sm:$0xff]  }
  0x10   : > { %1690 = vmatprep.mubr.bf16.mxu1 %v1755_v5  ;;  %v1760_v14 = vld [vmem:[%s1839_s24 + $0x18] sm:$0xff]   ;;  %v1762_v16 = vld [vmem:[%s1839_s24 + $0x20] sm:$0xff]   ;;  %v1764_v18 = vld [vmem:[%s1839_s24 + $0x28] sm:$0xff]  }
  0x11   : > { %1645 = vmatpush3.bf16.msra.mxu0 %v1747_v1  ;;  %1731 = vmatpush3.bf16.msra.mxu1 %v1747_v1  ;;  %v1761_v15 = vld [vmem:[%s1839_s24 + $0x98] sm:$0xff]   ;;  %v1763_v17 = vld [vmem:[%s1839_s24 + $0xa0] sm:$0xff]   ;;  %v1765_v19 = vld [vmem:[%s1839_s24 + $0xa8] sm:$0xff]  }
  0x12   : > { %1646 = vmatprep.subr.bf16.mxu0 %v1748_v2  ;;  %1724 = vmatprep.subr.bf16.mxu1 %v1748_v2  ;;  %v1766_v20 = vld [vmem:[%s1839_s24 + $0x30] sm:$0xff]   ;;  %v1768_v22 = vld [vmem:[%s1839_s24 + $0x38] sm:$0xff]   ;;  %v1770_v24 = vld [vmem:[%s1839_s24 + $0x40] sm:$0xff]  }
  0x13   : > { %v1767_v21 = vld [vmem:[%s1839_s24 + $0xb0] sm:$0xff]   ;;  %v1769_v23 = vld [vmem:[%s1839_s24 + $0xb8] sm:$0xff]   ;;  %v1771_v25 = vld [vmem:[%s1839_s24 + $0xc0] sm:$0xff]  }
  0x14   : > { %v1772_v26 = vld [vmem:[%s1839_s24 + $0x48] sm:$0xff]   ;;  %v1774_v28 = vld [vmem:[%s1839_s24 + $0x50] sm:$0xff]   ;;  %v1776_v30 = vld [vmem:[%s1839_s24 + $0x58] sm:$0xff]  }
  0x15   : > { %1647 = vmatpush3.bf16.msra.mxu0 %v1748_v2  ;;  %1732 = vmatpush3.bf16.msra.mxu1 %v1748_v2  ;;  %v1773_v27 = vld [vmem:[%s1839_s24 + $0xc8] sm:$0xff]   ;;  %v1775_v29 = vld [vmem:[%s1839_s24 + $0xd0] sm:$0xff]   ;;  %v1777_v31 = vld [vmem:[%s1839_s24 + $0xd8] sm:$0xff]  }
  0x16   : > { %1648 = vmatprep.subr.bf16.mxu0 %v1749_v3  ;;  %1725 = vmatprep.subr.bf16.mxu1 %v1749_v3  ;;  %v1778_v32 = vld [vmem:[%s1839_s24 + $0x60] sm:$0xff]   ;;  %v1780_v34 = vld [vmem:[%s1839_s24 + $0x68] sm:$0xff]   ;;  %v1782_v36 = vld [vmem:[%s1839_s24 + $0x70] sm:$0xff]  }
  0x17   : > { %v1779_v33 = vld [vmem:[%s1839_s24 + $0xe0] sm:$0xff]   ;;  %v1781_v35 = vld [vmem:[%s1839_s24 + $0xe8] sm:$0xff]   ;;  %v1783_v37 = vld [vmem:[%s1839_s24 + $0xf0] sm:$0xff]  }
  0x18   : > { %v1784_v38 = vld [vmem:[%s1839_s24 + $0x78] sm:$0xff]   ;;  %v1891_v40 = vld [vmem:[%s2001_s2] ss:$0 sm:$0xff] }
  0x19   : > { %1649 = vmatpush3.bf16.msra.mxu0 %v1749_v3  ;;  %1733 = vmatpush3.bf16.msra.mxu1 %v1749_v3  ;;  %v1785_v39 = vld [vmem:[%s1839_s24 + $0xf8] sm:$0xff]  }
  0x1a   : > { %1650 = vmatprep.subr.bf16.mxu0 %v1750_v6  ;;  %1726 = vmatprep.subr.bf16.mxu1 %v1750_v6 }
  0x1d   : > { %1651 = vmatpush3.bf16.msra.mxu0 %v1750_v6  ;;  %1734 = vmatpush3.bf16.msra.mxu1 %v1750_v6 }
  0x1e   : > { %1652 = vmatprep.subr.bf16.mxu0 %v1751_v7  ;;  %1727 = vmatprep.subr.bf16.mxu1 %v1751_v7 }
  0x21   : > { %1653 = vmatpush3.bf16.msra.mxu0 %v1751_v7  ;;  %1735 = vmatpush3.bf16.msra.mxu1 %v1751_v7 }
  0x22   : > { %1654 = vmatprep.subr.bf16.mxu0 %v1752_v8  ;;  %1728 = vmatprep.subr.bf16.mxu1 %v1752_v8 }
  0x25   : > { %1655 = vmatpush3.bf16.msra.mxu0 %v1752_v8  ;;  %1736 = vmatpush3.bf16.msra.mxu1 %v1752_v8 }
  0x26   : > { %1656 = vmatprep.subr.bf16.mxu0 %v1753_v9  ;;  %1729 = vmatprep.subr.bf16.mxu1 %v1753_v9 }
  0x29   : > { %1657 = vmatpush3.bf16.msra.mxu0 %v1753_v9  ;;  %1737 = vmatpush3.bf16.msra.mxu1 %v1753_v9 }
  0x2c   : > { %1659 = vmatmul.mubr.bf16.vlgmr.msra.gmra.mxu0 %v1756_v10  ;;  %1691 = vmatmul.mubr.bf16.vlgmr.msra.gmra.mxu1 %v1757_v11 }
  0x2d   : > { %1662 = vmatprep.mubr.bf16.mxu0 %v1758_v12  ;;  %1694 = vmatprep.mubr.bf16.mxu1 %v1759_v13 }
  0x34   : > { %1663 = vmatmul.mubr.bf16.gmra.mxu0 %v1760_v14  ;;  %1695 = vmatmul.mubr.bf16.gmra.mxu1 %v1761_v15 }
  0x35   : > { %1666 = vmatprep.mubr.bf16.mxu0 %v1762_v16  ;;  %1698 = vmatprep.mubr.bf16.mxu1 %v1763_v17 }
  0x3c   : > { %1667 = vmatmul.mubr.bf16.gmra.mxu0 %v1764_v18  ;;  %1699 = vmatmul.mubr.bf16.gmra.mxu1 %v1765_v19 }
  0x3d   : > { %1670 = vmatprep.mubr.bf16.mxu0 %v1766_v20  ;;  %1702 = vmatprep.mubr.bf16.mxu1 %v1767_v21 }
  0x44   : > { %1671 = vmatmul.mubr.bf16.gmra.mxu0 %v1768_v22  ;;  %1703 = vmatmul.mubr.bf16.gmra.mxu1 %v1769_v23 }
  0x45   : > { %1674 = vmatprep.mubr.bf16.mxu0 %v1770_v24  ;;  %1706 = vmatprep.mubr.bf16.mxu1 %v1771_v25 }
  0x4c   : > { %1675 = vmatmul.mubr.bf16.gmra.mxu0 %v1772_v26  ;;  %1707 = vmatmul.mubr.bf16.gmra.mxu1 %v1773_v27 }
  0x4d   : > { %1678 = vmatprep.mubr.bf16.mxu0 %v1774_v28  ;;  %1710 = vmatprep.mubr.bf16.mxu1 %v1775_v29 }
  0x54   : > { %1679 = vmatmul.mubr.bf16.gmra.mxu0 %v1776_v30  ;;  %1711 = vmatmul.mubr.bf16.gmra.mxu1 %v1777_v31 }
  0x55   : > { %1682 = vmatprep.mubr.bf16.mxu0 %v1778_v32  ;;  %1714 = vmatprep.mubr.bf16.mxu1 %v1779_v33 }
  0x5c   : > { %1683 = vmatmul.mubr.bf16.gmra.mxu0 %v1780_v34  ;;  %1715 = vmatmul.mubr.bf16.gmra.mxu1 %v1781_v35 }
  0x5d   : > { %1686 = vmatprep.mubr.bf16.mxu0 %v1782_v36  ;;  %1718 = vmatprep.mubr.bf16.mxu1 %v1783_v37 }
  0x64   : > { %1687 = vmatmul.mubr.bf16.gmra.mxu0 %v1784_v38  ;;  %1719 = vmatmul.mubr.bf16.gmra.mxu1 %v1785_v39 }
  0xec   : > { %v1660_v41 = vpop.f32.mrf.mxu0  ;;  %v1692_v42 = vpop.f32.mrf.mxu1 }
  0xed   : > { %v545_v43 = vadd.f32 %v1660_v41, %v1891_v40  ;;  %v673_v44 = vadd.f32 %v1692_v42, %v1891_v40 }
  0xee   : > { %v536_v45 = vpop.f32.mrf.mxu0  ;;  %v664_v46 = vpop.f32.mrf.mxu1 }
  0xef   : > { %v537_v47 = vadd.f32 %v1891_v40, %v536_v45  ;;  %v665_v48 = vadd.f32 %v1891_v40, %v664_v46  ;;  %v793_v53 = vmax.f32 %v545_v43, 0.0  ;;  %v825_v54 = vmax.f32 %v673_v44, 0.0 }
  0xf0   : > { %v1661_v49 = vpop.f32.mrf.mxu0  ;;  %v1693_v50 = vpop.f32.mrf.mxu1 }
  0xf1   : > { %v548_v51 = vadd.f32 %v1661_v49, %v1891_v40  ;;  %v676_v52 = vadd.f32 %v1693_v50, %v1891_v40  ;;  %v791_v61 = vmax.f32 %v537_v47, 0.0  ;;  %v823_v62 = vmax.f32 %v665_v48, 0.0 }
  0xf2   : > { %v539_v55 = vpop.f32.mrf.mxu0  ;;  %v667_v56 = vpop.f32.mrf.mxu1 }
  0xf3   : > { %v794_v57 = vmax.f32 %v548_v51, 0.0  ;;  %v826_v58 = vmax.f32 %v676_v52, 0.0  ;;  %v540_v59 = vadd.f32 %v1891_v40, %v539_v55  ;;  %v668_v60 = vadd.f32 %v1891_v40, %v667_v56 }
  0xf4   : > { %v1664_v63 = vpop.f32.mrf.mxu0  ;;  %v1696_v0 = vpop.f32.mrf.mxu1 }
  0xf5   : > { %v1419_v1 = vpack.c.bf16 %v794_v57, %v793_v53  ;;  %v1499_v2 = vpack.c.bf16 %v826_v58, %v825_v54  ;;  %v792_v3 = vmax.f32 %v540_v59, 0.0  ;;  %v824_v4 = vmax.f32 %v668_v60, 0.0 }
  0xf6   : > { %v561_v5 = vadd.f32 %v1664_v63, %v1891_v40  ;;  %v689_v6 = vadd.f32 %v1696_v0, %v1891_v40  ;;  %v552_v7 = vpop.f32.mrf.mxu0  ;;  %v680_v8 = vpop.f32.mrf.mxu1 }
  0xf7   : > { %1571 = vst [vmem:[%s1906_s13 + $0x8] sm:$0xff] %v1419_v1   ;;  %1587 = vst [vmem:[%s1906_s13 + $0x88] sm:$0xff] %v1499_v2   ;;  %v1414_v9 = vpack.c.bf16 %v792_v3, %v791_v61  ;;  %v1494_v10 = vpack.c.bf16 %v824_v4, %v823_v62  ;;  %v553_v11 = vadd.f32 %v1891_v40, %v552_v7 }
  0xf8   : > { %v681_v12 = vadd.f32 %v1891_v40, %v680_v8  ;;  %v1665_v13 = vpop.f32.mrf.mxu0  ;;  %v1697_v14 = vpop.f32.mrf.mxu1  ;;  %v797_v17 = vmax.f32 %v561_v5, 0.0  ;;  %v829_v18 = vmax.f32 %v689_v6, 0.0 }
  0xf9   : > { %1415 = vst [vmem:[%s1906_s13] sm:$0xff] %v1414_v9   ;;  %1586 = vst [vmem:[%s1906_s13 + $0x80] sm:$0xff] %v1494_v10   ;;  %v564_v15 = vadd.f32 %v1665_v13, %v1891_v40  ;;  %v692_v16 = vadd.f32 %v1697_v14, %v1891_v40  ;;  %v795_v25 = vmax.f32 %v553_v11, 0.0 }
  0xfa   : > { %v555_v19 = vpop.f32.mrf.mxu0  ;;  %v683_v20 = vpop.f32.mrf.mxu1  ;;  %v827_v26 = vmax.f32 %v681_v12, 0.0 }
  0xfb   : > { %v798_v21 = vmax.f32 %v564_v15, 0.0  ;;  %v830_v22 = vmax.f32 %v692_v16, 0.0  ;;  %v556_v23 = vadd.f32 %v1891_v40, %v555_v19  ;;  %v684_v24 = vadd.f32 %v1891_v40, %v683_v20 }
  0xfc   : > { %v1668_v27 = vpop.f32.mrf.mxu0  ;;  %v1700_v28 = vpop.f32.mrf.mxu1 }
  0xfd   : > { %v1429_v29 = vpack.c.bf16 %v798_v21, %v797_v17  ;;  %v1509_v30 = vpack.c.bf16 %v830_v22, %v829_v18  ;;  %v796_v31 = vmax.f32 %v556_v23, 0.0  ;;  %v828_v32 = vmax.f32 %v684_v24, 0.0 }
  0xfe   : > { %v577_v33 = vadd.f32 %v1668_v27, %v1891_v40  ;;  %v705_v34 = vadd.f32 %v1700_v28, %v1891_v40  ;;  %v568_v35 = vpop.f32.mrf.mxu0  ;;  %v696_v36 = vpop.f32.mrf.mxu1 }
  0xff   : > { %1573 = vst [vmem:[%s1906_s13 + $0x18] sm:$0xff] %v1429_v29   ;;  %1589 = vst [vmem:[%s1906_s13 + $0x98] sm:$0xff] %v1509_v30   ;;  %v1424_v37 = vpack.c.bf16 %v796_v31, %v795_v25  ;;  %v1504_v38 = vpack.c.bf16 %v828_v32, %v827_v26  ;;  %v569_v39 = vadd.f32 %v1891_v40, %v568_v35 }
 0x100   : > { %v697_v41 = vadd.f32 %v1891_v40, %v696_v36  ;;  %v1669_v42 = vpop.f32.mrf.mxu0  ;;  %v1701_v43 = vpop.f32.mrf.mxu1  ;;  %v801_v46 = vmax.f32 %v577_v33, 0.0  ;;  %v833_v47 = vmax.f32 %v705_v34, 0.0 }
 0x101   : > { %1572 = vst [vmem:[%s1906_s13 + $0x10] sm:$0xff] %v1424_v37   ;;  %1588 = vst [vmem:[%s1906_s13 + $0x90] sm:$0xff] %v1504_v38   ;;  %v580_v44 = vadd.f32 %v1669_v42, %v1891_v40  ;;  %v708_v45 = vadd.f32 %v1701_v43, %v1891_v40  ;;  %v799_v54 = vmax.f32 %v569_v39, 0.0 }
 0x102   : > { %v571_v48 = vpop.f32.mrf.mxu0  ;;  %v699_v49 = vpop.f32.mrf.mxu1  ;;  %v831_v55 = vmax.f32 %v697_v41, 0.0 }
 0x103   : > { %v802_v50 = vmax.f32 %v580_v44, 0.0  ;;  %v834_v51 = vmax.f32 %v708_v45, 0.0  ;;  %v572_v52 = vadd.f32 %v1891_v40, %v571_v48  ;;  %v700_v53 = vadd.f32 %v1891_v40, %v699_v49 }
 0x104   : > { %v1672_v56 = vpop.f32.mrf.mxu0  ;;  %v1704_v57 = vpop.f32.mrf.mxu1 }
 0x105   : > { %v1439_v58 = vpack.c.bf16 %v802_v50, %v801_v46  ;;  %v1519_v59 = vpack.c.bf16 %v834_v51, %v833_v47  ;;  %v800_v60 = vmax.f32 %v572_v52, 0.0  ;;  %v832_v61 = vmax.f32 %v700_v53, 0.0 }
 0x106   : > { %v593_v62 = vadd.f32 %v1672_v56, %v1891_v40  ;;  %v721_v63 = vadd.f32 %v1704_v57, %v1891_v40  ;;  %v584_v0 = vpop.f32.mrf.mxu0  ;;  %v712_v1 = vpop.f32.mrf.mxu1 }
 0x107   : > { %1575 = vst [vmem:[%s1906_s13 + $0x28] sm:$0xff] %v1439_v58   ;;  %1591 = vst [vmem:[%s1906_s13 + $0xa8] sm:$0xff] %v1519_v59   ;;  %v1434_v2 = vpack.c.bf16 %v800_v60, %v799_v54  ;;  %v1514_v3 = vpack.c.bf16 %v832_v61, %v831_v55  ;;  %v585_v4 = vadd.f32 %v1891_v40, %v584_v0 }
 0x108   : > { %v713_v5 = vadd.f32 %v1891_v40, %v712_v1  ;;  %v1673_v6 = vpop.f32.mrf.mxu0  ;;  %v1705_v7 = vpop.f32.mrf.mxu1  ;;  %v805_v10 = vmax.f32 %v593_v62, 0.0  ;;  %v837_v11 = vmax.f32 %v721_v63, 0.0 }
 0x109   : > { %1574 = vst [vmem:[%s1906_s13 + $0x20] sm:$0xff] %v1434_v2   ;;  %1590 = vst [vmem:[%s1906_s13 + $0xa0] sm:$0xff] %v1514_v3   ;;  %v596_v8 = vadd.f32 %v1673_v6, %v1891_v40  ;;  %v724_v9 = vadd.f32 %v1705_v7, %v1891_v40  ;;  %v803_v18 = vmax.f32 %v585_v4, 0.0 }
 0x10a   : > { %v587_v12 = vpop.f32.mrf.mxu0  ;;  %v715_v13 = vpop.f32.mrf.mxu1  ;;  %v835_v19 = vmax.f32 %v713_v5, 0.0 }
 0x10b   : > { %v806_v14 = vmax.f32 %v596_v8, 0.0  ;;  %v838_v15 = vmax.f32 %v724_v9, 0.0  ;;  %v588_v16 = vadd.f32 %v1891_v40, %v587_v12  ;;  %v716_v17 = vadd.f32 %v1891_v40, %v715_v13 }
 0x10c   : > { %v1676_v20 = vpop.f32.mrf.mxu0  ;;  %v1708_v21 = vpop.f32.mrf.mxu1 }
 0x10d   : > { %v1449_v22 = vpack.c.bf16 %v806_v14, %v805_v10  ;;  %v1529_v23 = vpack.c.bf16 %v838_v15, %v837_v11  ;;  %v804_v24 = vmax.f32 %v588_v16, 0.0  ;;  %v836_v25 = vmax.f32 %v716_v17, 0.0 }
 0x10e   : > { %v609_v26 = vadd.f32 %v1676_v20, %v1891_v40  ;;  %v737_v27 = vadd.f32 %v1708_v21, %v1891_v40  ;;  %v600_v28 = vpop.f32.mrf.mxu0  ;;  %v728_v29 = vpop.f32.mrf.mxu1 }
 0x10f   : > { %1577 = vst [vmem:[%s1906_s13 + $0x38] sm:$0xff] %v1449_v22   ;;  %1593 = vst [vmem:[%s1906_s13 + $0xb8] sm:$0xff] %v1529_v23   ;;  %v1444_v30 = vpack.c.bf16 %v804_v24, %v803_v18  ;;  %v1524_v31 = vpack.c.bf16 %v836_v25, %v835_v19  ;;  %v601_v32 = vadd.f32 %v1891_v40, %v600_v28 }
 0x110   : > { %v729_v33 = vadd.f32 %v1891_v40, %v728_v29  ;;  %v1677_v34 = vpop.f32.mrf.mxu0  ;;  %v1709_v35 = vpop.f32.mrf.mxu1  ;;  %v809_v38 = vmax.f32 %v609_v26, 0.0  ;;  %v841_v39 = vmax.f32 %v737_v27, 0.0 }
 0x111   : > { %1576 = vst [vmem:[%s1906_s13 + $0x30] sm:$0xff] %v1444_v30   ;;  %1592 = vst [vmem:[%s1906_s13 + $0xb0] sm:$0xff] %v1524_v31   ;;  %v612_v36 = vadd.f32 %v1677_v34, %v1891_v40  ;;  %v740_v37 = vadd.f32 %v1709_v35, %v1891_v40  ;;  %v807_v47 = vmax.f32 %v601_v32, 0.0 }
 0x112   : > { %v603_v41 = vpop.f32.mrf.mxu0  ;;  %v731_v42 = vpop.f32.mrf.mxu1  ;;  %v839_v48 = vmax.f32 %v729_v33, 0.0 }
 0x113   : > { %v810_v43 = vmax.f32 %v612_v36, 0.0  ;;  %v842_v44 = vmax.f32 %v740_v37, 0.0  ;;  %v604_v45 = vadd.f32 %v1891_v40, %v603_v41  ;;  %v732_v46 = vadd.f32 %v1891_v40, %v731_v42 }
 0x114   : > { %v1680_v49 = vpop.f32.mrf.mxu0  ;;  %v1712_v50 = vpop.f32.mrf.mxu1 }
 0x115   : > { %v1459_v51 = vpack.c.bf16 %v810_v43, %v809_v38  ;;  %v1539_v52 = vpack.c.bf16 %v842_v44, %v841_v39  ;;  %v808_v53 = vmax.f32 %v604_v45, 0.0  ;;  %v840_v54 = vmax.f32 %v732_v46, 0.0 }
 0x116   : > { %v625_v55 = vadd.f32 %v1680_v49, %v1891_v40  ;;  %v753_v56 = vadd.f32 %v1712_v50, %v1891_v40  ;;  %v616_v57 = vpop.f32.mrf.mxu0  ;;  %v744_v58 = vpop.f32.mrf.mxu1 }
 0x117   : > { %1579 = vst [vmem:[%s1906_s13 + $0x48] sm:$0xff] %v1459_v51   ;;  %1595 = vst [vmem:[%s1906_s13 + $0xc8] sm:$0xff] %v1539_v52   ;;  %v1454_v59 = vpack.c.bf16 %v808_v53, %v807_v47  ;;  %v1534_v60 = vpack.c.bf16 %v840_v54, %v839_v48  ;;  %v617_v61 = vadd.f32 %v1891_v40, %v616_v57 }
 0x118   : > { %v745_v62 = vadd.f32 %v1891_v40, %v744_v58  ;;  %v1681_v63 = vpop.f32.mrf.mxu0  ;;  %v1713_v0 = vpop.f32.mrf.mxu1  ;;  %v813_v3 = vmax.f32 %v625_v55, 0.0  ;;  %v845_v4 = vmax.f32 %v753_v56, 0.0 }
 0x119   : > { %1578 = vst [vmem:[%s1906_s13 + $0x40] sm:$0xff] %v1454_v59   ;;  %1594 = vst [vmem:[%s1906_s13 + $0xc0] sm:$0xff] %v1534_v60   ;;  %v628_v1 = vadd.f32 %v1681_v63, %v1891_v40  ;;  %v756_v2 = vadd.f32 %v1713_v0, %v1891_v40  ;;  %v811_v11 = vmax.f32 %v617_v61, 0.0 }
 0x11a   : > { %v619_v5 = vpop.f32.mrf.mxu0  ;;  %v747_v6 = vpop.f32.mrf.mxu1  ;;  %v843_v12 = vmax.f32 %v745_v62, 0.0 }
 0x11b   : > { %v814_v7 = vmax.f32 %v628_v1, 0.0  ;;  %v846_v8 = vmax.f32 %v756_v2, 0.0  ;;  %v620_v9 = vadd.f32 %v1891_v40, %v619_v5  ;;  %v748_v10 = vadd.f32 %v1891_v40, %v747_v6 }
 0x11c   : > { %v1684_v13 = vpop.f32.mrf.mxu0  ;;  %v1716_v14 = vpop.f32.mrf.mxu1 }
 0x11d   : > { %v1469_v15 = vpack.c.bf16 %v814_v7, %v813_v3  ;;  %v1549_v16 = vpack.c.bf16 %v846_v8, %v845_v4  ;;  %v812_v17 = vmax.f32 %v620_v9, 0.0  ;;  %v844_v18 = vmax.f32 %v748_v10, 0.0 }
 0x11e   : > { %v641_v19 = vadd.f32 %v1684_v13, %v1891_v40  ;;  %v769_v20 = vadd.f32 %v1716_v14, %v1891_v40  ;;  %v632_v21 = vpop.f32.mrf.mxu0  ;;  %v760_v22 = vpop.f32.mrf.mxu1 }
 0x11f   : > { %1581 = vst [vmem:[%s1906_s13 + $0x58] sm:$0xff] %v1469_v15   ;;  %1597 = vst [vmem:[%s1906_s13 + $0xd8] sm:$0xff] %v1549_v16   ;;  %v1464_v23 = vpack.c.bf16 %v812_v17, %v811_v11  ;;  %v1544_v24 = vpack.c.bf16 %v844_v18, %v843_v12  ;;  %v633_v25 = vadd.f32 %v1891_v40, %v632_v21 }
 0x120   : > { %v761_v26 = vadd.f32 %v1891_v40, %v760_v22  ;;  %v1685_v27 = vpop.f32.mrf.mxu0  ;;  %v1717_v28 = vpop.f32.mrf.mxu1  ;;  %v817_v31 = vmax.f32 %v641_v19, 0.0  ;;  %v849_v32 = vmax.f32 %v769_v20, 0.0 }
 0x121   : > { %1580 = vst [vmem:[%s1906_s13 + $0x50] sm:$0xff] %v1464_v23   ;;  %1596 = vst [vmem:[%s1906_s13 + $0xd0] sm:$0xff] %v1544_v24   ;;  %v644_v29 = vadd.f32 %v1685_v27, %v1891_v40  ;;  %v772_v30 = vadd.f32 %v1717_v28, %v1891_v40  ;;  %v815_v39 = vmax.f32 %v633_v25, 0.0 }
 0x122   : > { %v635_v33 = vpop.f32.mrf.mxu0  ;;  %v763_v34 = vpop.f32.mrf.mxu1  ;;  %v847_v41 = vmax.f32 %v761_v26, 0.0 }
 0x123   : > { %v818_v35 = vmax.f32 %v644_v29, 0.0  ;;  %v850_v36 = vmax.f32 %v772_v30, 0.0  ;;  %v636_v37 = vadd.f32 %v1891_v40, %v635_v33  ;;  %v764_v38 = vadd.f32 %v1891_v40, %v763_v34 }
 0x124   : > { %v1688_v42 = vpop.f32.mrf.mxu0  ;;  %v1720_v43 = vpop.f32.mrf.mxu1 }
 0x125   : > { %v1479_v44 = vpack.c.bf16 %v818_v35, %v817_v31  ;;  %v1559_v45 = vpack.c.bf16 %v850_v36, %v849_v32  ;;  %v816_v46 = vmax.f32 %v636_v37, 0.0  ;;  %v848_v47 = vmax.f32 %v764_v38, 0.0 }
 0x126   : > { %v657_v48 = vadd.f32 %v1688_v42, %v1891_v40  ;;  %v785_v49 = vadd.f32 %v1720_v43, %v1891_v40  ;;  %v648_v50 = vpop.f32.mrf.mxu0  ;;  %v776_v51 = vpop.f32.mrf.mxu1 }
 0x127   : > { %1583 = vst [vmem:[%s1906_s13 + $0x68] sm:$0xff] %v1479_v44   ;;  %1599 = vst [vmem:[%s1906_s13 + $0xe8] sm:$0xff] %v1559_v45   ;;  %v1474_v52 = vpack.c.bf16 %v816_v46, %v815_v39  ;;  %v1554_v53 = vpack.c.bf16 %v848_v47, %v847_v41  ;;  %v649_v54 = vadd.f32 %v1891_v40, %v648_v50 }
 0x128   : > { %v777_v55 = vadd.f32 %v1891_v40, %v776_v51  ;;  %v1689_v56 = vpop.f32.mrf.mxu0  ;;  %v1721_v57 = vpop.f32.mrf.mxu1  ;;  %v821_v60 = vmax.f32 %v657_v48, 0.0  ;;  %v853_v61 = vmax.f32 %v785_v49, 0.0 }
 0x129   : > { %1582 = vst [vmem:[%s1906_s13 + $0x60] sm:$0xff] %v1474_v52   ;;  %1598 = vst [vmem:[%s1906_s13 + $0xe0] sm:$0xff] %v1554_v53   ;;  %v660_v58 = vadd.f32 %v1689_v56, %v1891_v40  ;;  %v788_v59 = vadd.f32 %v1721_v57, %v1891_v40  ;;  %v819_v4 = vmax.f32 %v649_v54, 0.0 }
 0x12a   : > { %v651_v62 = vpop.f32.mrf.mxu0  ;;  %v779_v63 = vpop.f32.mrf.mxu1  ;;  %v851_v5 = vmax.f32 %v777_v55, 0.0 }
 0x12b   : > { %v822_v0 = vmax.f32 %v660_v58, 0.0  ;;  %v854_v1 = vmax.f32 %v788_v59, 0.0  ;;  %v652_v2 = vadd.f32 %v1891_v40, %v651_v62  ;;  %v780_v3 = vadd.f32 %v1891_v40, %v779_v63 }
 0x12d   : > { %v1489_v6 = vpack.c.bf16 %v822_v0, %v821_v60  ;;  %v1569_v7 = vpack.c.bf16 %v854_v1, %v853_v61  ;;  %v820_v8 = vmax.f32 %v652_v2, 0.0  ;;  %v852_v9 = vmax.f32 %v780_v3, 0.0 }
 0x12f   : > { %1585 = vst [vmem:[%s1906_s13 + $0x78] sm:$0xff] %v1489_v6   ;;  %1601 = vst [vmem:[%s1906_s13 + $0xf8] sm:$0xff] %v1569_v7   ;;  %v1484_v10 = vpack.c.bf16 %v820_v8, %v819_v4  ;;  %v1564_v11 = vpack.c.bf16 %v852_v9, %v851_v5 }
 0x131   : > { %1584 = vst [vmem:[%s1906_s13 + $0x70] sm:$0xff] %v1484_v10   ;;  %1600 = vst [vmem:[%s1906_s13 + $0xf0] sm:$0xff] %v1564_v11  }
 0x132 PF: > { %s13_s12 = sadd.s32 1, %s1792_s12  }
 0x133   : > { %p10_p4 = scmp.ge.s32.totalorder %s13_s12, 4  }
 0x135   :  { %12 = sbr.rel (!%p10_p4) target bundleno = 1 (0x1), region = 62 }

// kernel: autoencoder3d_forward.7
= control target key start
LH: loop header
LB: loop body
LE: loop exit
PB: predicated region body
PF: predicated region fallthrough
CT: control target
= control target key end

     0   :  { %s1357_s1 = inlined_call_operand.vmem [shape: bf16[512,128], index: 1, kind: input, shape index: {}]   ;;  %s1358_s0 = inlined_call_operand.vmem [shape: bf16[128,512], index: 0, kind: input, shape index: {}]   ;;  %s1359_s2 = inlined_call_operand.vmem [shape: f32[1,128], index: 2, kind: input, shape index: {}]   ;;  %s1360_s3 = inlined_call_operand.vmem [shape: bf16[128,128], index: 3, kind: output, shape index: {}]  }
   0x1   :  { %v1020_v0 = vld [vmem:[%s1357_s1 + $0x78] sm:$0xff]   ;;  %v1024_v4 = vld [vmem:[%s1357_s1 + $0x70] sm:$0xff]   ;;  %v1028_v8 = vld [vmem:[%s1357_s1 + $0x68] sm:$0xff]  }
   0x2   :  { %v1021_v1 = vld [vmem:[%s1357_s1 + $0xf8] sm:$0xff]   ;;  %892 = vmatprep.subr.bf16.mxu0 %v1020_v0  ;;  %v1025_v5 = vld [vmem:[%s1357_s1 + $0xf0] sm:$0xff]   ;;  %v1029_v9 = vld [vmem:[%s1357_s1 + $0xe8] sm:$0xff]  }
   0x3   :  { %v1022_v2 = vld [vmem:[%s1357_s1 + $0x38] sm:$0xff]   ;;  %956 = vmatprep.subr.bf16.mxu1 %v1021_v1  ;;  %v1026_v6 = vld [vmem:[%s1357_s1 + $0x30] sm:$0xff]   ;;  %v1030_v10 = vld [vmem:[%s1357_s1 + $0x28] sm:$0xff]  }
   0x4   :  { %v1023_v3 = vld [vmem:[%s1357_s1 + $0xb8] sm:$0xff]   ;;  %893 = vmatpush3.bf16.msra.mxu0 %v1022_v2  ;;  %v1027_v7 = vld [vmem:[%s1357_s1 + $0xb0] sm:$0xff]   ;;  %v1031_v11 = vld [vmem:[%s1357_s1 + $0xa8] sm:$0xff]  }
   0x5   :  { %957 = vmatpush3.bf16.msra.mxu1 %v1023_v3  ;;  %894 = vmatprep.subr.bf16.mxu0 %v1024_v4  ;;  %v1032_v12 = vld [vmem:[%s1357_s1 + $0x60] sm:$0xff]   ;;  %v1036_v16 = vld [vmem:[%s1357_s1 + $0x58] sm:$0xff]   ;;  %v1040_v20 = vld [vmem:[%s1357_s1 + $0x50] sm:$0xff]  }
   0x6   :  { %958 = vmatprep.subr.bf16.mxu1 %v1025_v5  ;;  %v1033_v13 = vld [vmem:[%s1357_s1 + $0xe0] sm:$0xff]   ;;  %v1037_v17 = vld [vmem:[%s1357_s1 + $0xd8] sm:$0xff]   ;;  %v1041_v21 = vld [vmem:[%s1357_s1 + $0xd0] sm:$0xff]  }
   0x7   :  { %v1034_v14 = vld [vmem:[%s1357_s1 + $0x20] sm:$0xff]   ;;  %v1038_v18 = vld [vmem:[%s1357_s1 + $0x18] sm:$0xff]   ;;  %v1042_v22 = vld [vmem:[%s1357_s1 + $0x10] sm:$0xff]  }
   0x8   :  { %895 = vmatpush3.bf16.msra.mxu0 %v1026_v6  ;;  %v1035_v15 = vld [vmem:[%s1357_s1 + $0xa0] sm:$0xff]   ;;  %v1039_v19 = vld [vmem:[%s1357_s1 + $0x98] sm:$0xff]   ;;  %v1043_v23 = vld [vmem:[%s1357_s1 + $0x90] sm:$0xff]  }
   0x9   :  { %959 = vmatpush3.bf16.msra.mxu1 %v1027_v7  ;;  %896 = vmatprep.subr.bf16.mxu0 %v1028_v8  ;;  %v1044_v24 = vld [vmem:[%s1357_s1 + $0x48] sm:$0xff]   ;;  %v1048_v28 = vld [vmem:[%s1357_s1 + $0x40] sm:$0xff]  }
   0xa   :  { %960 = vmatprep.subr.bf16.mxu1 %v1029_v9  ;;  %v1045_v25 = vld [vmem:[%s1357_s1 + $0xc8] sm:$0xff]   ;;  %v1049_v29 = vld [vmem:[%s1357_s1 + $0xc0] sm:$0xff]  }
   0xb   :  { %v1046_v26 = vld [vmem:[%s1357_s1 + $0x8] sm:$0xff]   ;;  %v1050_v30 = vld [vmem:[%s1357_s1] sm:$0xff]  }
   0xc   :  { %897 = vmatpush3.bf16.msra.mxu0 %v1030_v10  ;;  %v1047_v27 = vld [vmem:[%s1357_s1 + $0x88] sm:$0xff]   ;;  %v1051_v31 = vld [vmem:[%s1357_s1 + $0x80] sm:$0xff]  }
   0xd   :  { %961 = vmatpush3.bf16.msra.mxu1 %v1031_v11  ;;  %898 = vmatprep.subr.bf16.mxu0 %v1032_v12  ;;  %v1052_v32 = vld [vmem:[%s1358_s0] ss:$16 sps:$4 sm:$0xff]   ;;  %v1054_v33 = vld [vmem:[%s1358_s0 + $0x4] ss:$16 sps:$4 sm:$0xff]   ;;  %v1055_v34 = vld [vmem:[%s1358_s0 + $0x8] ss:$16 sps:$4 sm:$0xff]  }
   0xe   :  { %962 = vmatprep.subr.bf16.mxu1 %v1033_v13  ;;  %v1057_v35 = vld [vmem:[%s1358_s0 + $0xc] ss:$16 sps:$4 sm:$0xff]   ;;  %502 = vmatprep.mubr.bf16.mxu0 %v1054_v33  ;;  %v1058_v36 = vld [vmem:[%s1358_s0 + $0x24] ss:$16 sps:$4 sm:$0xff]   ;;  %v1062_v38 = vld [vmem:[%s1358_s0 + $0x20] ss:$16 sps:$4 sm:$0xff]  }
   0xf   :  { %599 = vmatprep.mubr.bf16.mxu1 %v1057_v35  ;;  %v1060_v37 = vld [vmem:[%s1358_s0 + $0x2c] ss:$16 sps:$4 sm:$0xff]   ;;  %v1063_v39 = vld [vmem:[%s1358_s0 + $0x28] ss:$16 sps:$4 sm:$0xff]   ;;  %v1064_v40 = vld [vmem:[%s1358_s0 + $0x44] ss:$16 sps:$4 sm:$0xff]  }
  0x10   :  { %899 = vmatpush3.bf16.msra.mxu0 %v1034_v14  ;;  %v1066_v41 = vld [vmem:[%s1358_s0 + $0x4c] ss:$16 sps:$4 sm:$0xff]   ;;  %v1068_v42 = vld [vmem:[%s1358_s0 + $0x40] ss:$16 sps:$4 sm:$0xff]   ;;  %v1069_v43 = vld [vmem:[%s1358_s0 + $0x48] ss:$16 sps:$4 sm:$0xff]  }
  0x11   :  { %963 = vmatpush3.bf16.msra.mxu1 %v1035_v15  ;;  %900 = vmatprep.subr.bf16.mxu0 %v1036_v16  ;;  %v1070_v44 = vld [vmem:[%s1358_s0 + $0x64] ss:$16 sps:$4 sm:$0xff]   ;;  %v1072_v45 = vld [vmem:[%s1358_s0 + $0x6c] ss:$16 sps:$4 sm:$0xff]   ;;  %v1074_v46 = vld [vmem:[%s1358_s0 + $0x60] ss:$16 sps:$4 sm:$0xff]  }
  0x12   :  { %964 = vmatprep.subr.bf16.mxu1 %v1037_v17  ;;  %v1075_v47 = vld [vmem:[%s1358_s0 + $0x68] ss:$16 sps:$4 sm:$0xff]   ;;  %v1076_v48 = vld [vmem:[%s1358_s0 + $0x84] ss:$16 sps:$4 sm:$0xff]   ;;  %v1078_v49 = vld [vmem:[%s1358_s0 + $0x8c] ss:$16 sps:$4 sm:$0xff]  }
  0x13   :  { %v1080_v50 = vld [vmem:[%s1358_s0 + $0x80] ss:$16 sps:$4 sm:$0xff]   ;;  %v1081_v51 = vld [vmem:[%s1358_s0 + $0x88] ss:$16 sps:$4 sm:$0xff]   ;;  %v1082_v52 = vld [vmem:[%s1358_s0 + $0xa4] ss:$16 sps:$4 sm:$0xff]  }
  0x14   :  { %901 = vmatpush3.bf16.msra.mxu0 %v1038_v18  ;;  %v1084_v53 = vld [vmem:[%s1358_s0 + $0xac] ss:$16 sps:$4 sm:$0xff]   ;;  %v1086_v54 = vld [vmem:[%s1358_s0 + $0xa0] ss:$16 sps:$4 sm:$0xff]   ;;  %v1087_v55 = vld [vmem:[%s1358_s0 + $0xa8] ss:$16 sps:$4 sm:$0xff]  }
  0x15   :  { %965 = vmatpush3.bf16.msra.mxu1 %v1039_v19  ;;  %902 = vmatprep.subr.bf16.mxu0 %v1040_v20  ;;  %v1088_v56 = vld [vmem:[%s1358_s0 + $0xc4] ss:$16 sps:$4 sm:$0xff]   ;;  %v1090_v57 = vld [vmem:[%s1358_s0 + $0xcc] ss:$16 sps:$4 sm:$0xff]   ;;  %v1092_v58 = vld [vmem:[%s1358_s0 + $0xc0] ss:$16 sps:$4 sm:$0xff]  }
  0x16   :  { %966 = vmatprep.subr.bf16.mxu1 %v1041_v21  ;;  %v1093_v59 = vld [vmem:[%s1358_s0 + $0xc8] ss:$16 sps:$4 sm:$0xff]   ;;  %v1094_v60 = vld [vmem:[%s1358_s0 + $0xe4] ss:$16 sps:$4 sm:$0xff]   ;;  %v1096_v61 = vld [vmem:[%s1358_s0 + $0xec] ss:$16 sps:$4 sm:$0xff]  }
  0x17   :  { %v1098_v62 = vld [vmem:[%s1358_s0 + $0xe0] ss:$16 sps:$4 sm:$0xff]   ;;  %v1099_v63 = vld [vmem:[%s1358_s0 + $0xe8] ss:$16 sps:$4 sm:$0xff]  }
  0x18   :  { %903 = vmatpush3.bf16.msra.mxu0 %v1042_v22  ;;  %v1315_v5 = vld [vmem:[%s1359_s2] ss:$0 sm:$0xff] }
  0x19   :  { %967 = vmatpush3.bf16.msra.mxu1 %v1043_v23  ;;  %904 = vmatprep.subr.bf16.mxu0 %v1044_v24 }
  0x1a   :  { %968 = vmatprep.subr.bf16.mxu1 %v1045_v25 }
  0x1c   :  { %905 = vmatpush3.bf16.msra.mxu0 %v1046_v26 }
  0x1d   :  { %969 = vmatpush3.bf16.msra.mxu1 %v1047_v27  ;;  %906 = vmatprep.subr.bf16.mxu0 %v1048_v28 }
  0x1e   :  { %970 = vmatprep.subr.bf16.mxu1 %v1049_v29 }
  0x20   :  { %907 = vmatpush3.bf16.msra.mxu0 %v1050_v30 }
  0x21   :  { %971 = vmatpush3.bf16.msra.mxu1 %v1051_v31 }
  0x23   :  { %503 = vmatmul.mubr.bf16.vlgmr.msra.gmra.mxu0 %v1052_v32 }
  0x24   :  { %600 = vmatmul.mubr.bf16.vlgmr.msra.gmra.mxu1 %v1055_v34  ;;  %510 = vmatprep.mubr.bf16.mxu0 %v1058_v36 }
  0x25   :  { %607 = vmatprep.mubr.bf16.mxu1 %v1060_v37 }
  0x2b   :  { %511 = vmatmul.mubr.bf16.gmra.mxu0 %v1062_v38 }
  0x2c   :  { %608 = vmatmul.mubr.bf16.gmra.mxu1 %v1063_v39  ;;  %518 = vmatprep.mubr.bf16.mxu0 %v1064_v40 }
  0x2d   :  { %615 = vmatprep.mubr.bf16.mxu1 %v1066_v41 }
  0x33   :  { %519 = vmatmul.mubr.bf16.gmra.mxu0 %v1068_v42 }
  0x34   :  { %616 = vmatmul.mubr.bf16.gmra.mxu1 %v1069_v43  ;;  %526 = vmatprep.mubr.bf16.mxu0 %v1070_v44 }
  0x35   :  { %623 = vmatprep.mubr.bf16.mxu1 %v1072_v45 }
  0x3b   :  { %527 = vmatmul.mubr.bf16.gmra.mxu0 %v1074_v46 }
  0x3c   :  { %624 = vmatmul.mubr.bf16.gmra.mxu1 %v1075_v47  ;;  %534 = vmatprep.mubr.bf16.mxu0 %v1076_v48 }
  0x3d   :  { %631 = vmatprep.mubr.bf16.mxu1 %v1078_v49 }
  0x43   :  { %535 = vmatmul.mubr.bf16.gmra.mxu0 %v1080_v50 }
  0x44   :  { %632 = vmatmul.mubr.bf16.gmra.mxu1 %v1081_v51  ;;  %542 = vmatprep.mubr.bf16.mxu0 %v1082_v52 }
  0x45   :  { %639 = vmatprep.mubr.bf16.mxu1 %v1084_v53 }
  0x4b   :  { %543 = vmatmul.mubr.bf16.gmra.mxu0 %v1086_v54 }
  0x4c   :  { %640 = vmatmul.mubr.bf16.gmra.mxu1 %v1087_v55  ;;  %550 = vmatprep.mubr.bf16.mxu0 %v1088_v56 }
  0x4d   :  { %647 = vmatprep.mubr.bf16.mxu1 %v1090_v57 }
  0x53   :  { %551 = vmatmul.mubr.bf16.gmra.mxu0 %v1092_v58 }
  0x54   :  { %648 = vmatmul.mubr.bf16.gmra.mxu1 %v1093_v59  ;;  %558 = vmatprep.mubr.bf16.mxu0 %v1094_v60 }
  0x55   :  { %655 = vmatprep.mubr.bf16.mxu1 %v1096_v61 }
  0x5b   :  { %559 = vmatmul.mubr.bf16.gmra.mxu0 %v1098_v62 }
  0x5c   :  { %656 = vmatmul.mubr.bf16.gmra.mxu1 %v1099_v63 }
  0xe3   :  { %v908_v0 = vpop.f32.mrf.mxu0 }
  0xe4   :  { %v972_v1 = vpop.f32.mrf.mxu1 }
  0xe5   :  { %v909_v2 = vpop.f32.mrf.mxu0 }
  0xe6   :  { %v910_v3 = vadd.f32 %v909_v2, %v908_v0  ;;  %v973_v4 = vpop.f32.mrf.mxu1 }
  0xe7   :  { %v911_v6 = vpop.f32.mrf.mxu0  ;;  %v974_v13 = vadd.f32 %v973_v4, %v972_v1 }
  0xe8   :  { %v975_v7 = vpop.f32.mrf.mxu1  ;;  %v505_v9 = vadd.f32 %v910_v3, %v1315_v5 }
  0xe9   :  { %v912_v8 = vpop.f32.mrf.mxu0 }
  0xea   :  { %v913_v10 = vadd.f32 %v912_v8, %v911_v6  ;;  %v976_v11 = vpop.f32.mrf.mxu1  ;;  %v602_v18 = vadd.f32 %v974_v13, %v505_v9 }
  0xeb   :  { %v914_v12 = vpop.f32.mrf.mxu0  ;;  %v977_v15 = vadd.f32 %v976_v11, %v975_v7 }
  0xec   :  { %v508_v14 = vadd.f32 %v913_v10, %v1315_v5  ;;  %v978_v16 = vpop.f32.mrf.mxu1 }
  0xed   :  { %v915_v17 = vpop.f32.mrf.mxu0 }
  0xee   :  { %v605_v19 = vadd.f32 %v977_v15, %v508_v14  ;;  %v916_v20 = vadd.f32 %v915_v17, %v914_v12  ;;  %v979_v21 = vpop.f32.mrf.mxu1 }
  0xef   :  { %v917_v22 = vpop.f32.mrf.mxu0  ;;  %v980_v30 = vadd.f32 %v979_v21, %v978_v16 }
  0xf0   :  { %v848_v23 = vpack.c.bf16 %v605_v19, %v602_v18  ;;  %v981_v24 = vpop.f32.mrf.mxu1  ;;  %v513_v26 = vadd.f32 %v916_v20, %v1315_v5 }
  0xf1   :  { %v918_v25 = vpop.f32.mrf.mxu0 }
  0xf2   :  { %849 = vst [vmem:[%s1360_s3] sm:$0xff] %v848_v23   ;;  %v919_v27 = vadd.f32 %v918_v25, %v917_v22  ;;  %v982_v28 = vpop.f32.mrf.mxu1  ;;  %v610_v35 = vadd.f32 %v980_v30, %v513_v26 }
  0xf3   :  { %v920_v29 = vpop.f32.mrf.mxu0  ;;  %v983_v32 = vadd.f32 %v982_v28, %v981_v24 }
  0xf4   :  { %v516_v31 = vadd.f32 %v919_v27, %v1315_v5  ;;  %v984_v33 = vpop.f32.mrf.mxu1 }
  0xf5   :  { %v921_v34 = vpop.f32.mrf.mxu0 }
  0xf6   :  { %v613_v36 = vadd.f32 %v983_v32, %v516_v31  ;;  %v922_v37 = vadd.f32 %v921_v34, %v920_v29  ;;  %v985_v38 = vpop.f32.mrf.mxu1 }
  0xf7   :  { %v923_v39 = vpop.f32.mrf.mxu0  ;;  %v986_v47 = vadd.f32 %v985_v38, %v984_v33 }
  0xf8   :  { %v853_v40 = vpack.c.bf16 %v613_v36, %v610_v35  ;;  %v987_v41 = vpop.f32.mrf.mxu1  ;;  %v521_v43 = vadd.f32 %v922_v37, %v1315_v5 }
  0xf9   :  { %v924_v42 = vpop.f32.mrf.mxu0 }
  0xfa   :  { %885 = vst [vmem:[%s1360_s3 + $0x8] sm:$0xff] %v853_v40   ;;  %v925_v44 = vadd.f32 %v924_v42, %v923_v39  ;;  %v988_v45 = vpop.f32.mrf.mxu1  ;;  %v618_v52 = vadd.f32 %v986_v47, %v521_v43 }
  0xfb   :  { %v926_v46 = vpop.f32.mrf.mxu0  ;;  %v989_v49 = vadd.f32 %v988_v45, %v987_v41 }
  0xfc   :  { %v524_v48 = vadd.f32 %v925_v44, %v1315_v5  ;;  %v990_v50 = vpop.f32.mrf.mxu1 }
  0xfd   :  { %v927_v51 = vpop.f32.mrf.mxu0 }
  0xfe   :  { %v621_v53 = vadd.f32 %v989_v49, %v524_v48  ;;  %v928_v54 = vadd.f32 %v927_v51, %v926_v46  ;;  %v991_v55 = vpop.f32.mrf.mxu1 }
  0xff   :  { %v929_v56 = vpop.f32.mrf.mxu0  ;;  %v992_v0 = vadd.f32 %v991_v55, %v990_v50 }
 0x100   :  { %v858_v57 = vpack.c.bf16 %v621_v53, %v618_v52  ;;  %v993_v58 = vpop.f32.mrf.mxu1  ;;  %v529_v60 = vadd.f32 %v928_v54, %v1315_v5 }
 0x101   :  { %v930_v59 = vpop.f32.mrf.mxu0 }
 0x102   :  { %886 = vst [vmem:[%s1360_s3 + $0x10] sm:$0xff] %v858_v57   ;;  %v931_v61 = vadd.f32 %v930_v59, %v929_v56  ;;  %v994_v62 = vpop.f32.mrf.mxu1  ;;  %v626_v6 = vadd.f32 %v992_v0, %v529_v60 }
 0x103   :  { %v932_v63 = vpop.f32.mrf.mxu0  ;;  %v995_v2 = vadd.f32 %v994_v62, %v993_v58 }
 0x104   :  { %v532_v1 = vadd.f32 %v931_v61, %v1315_v5  ;;  %v996_v3 = vpop.f32.mrf.mxu1 }
 0x105   :  { %v933_v4 = vpop.f32.mrf.mxu0 }
 0x106   :  { %v629_v7 = vadd.f32 %v995_v2, %v532_v1  ;;  %v934_v8 = vadd.f32 %v933_v4, %v932_v63  ;;  %v997_v9 = vpop.f32.mrf.mxu1 }
 0x107   :  { %v935_v10 = vpop.f32.mrf.mxu0  ;;  %v998_v18 = vadd.f32 %v997_v9, %v996_v3 }
 0x108   :  { %v863_v11 = vpack.c.bf16 %v629_v7, %v626_v6  ;;  %v999_v12 = vpop.f32.mrf.mxu1  ;;  %v537_v14 = vadd.f32 %v934_v8, %v1315_v5 }
 0x109   :  { %v936_v13 = vpop.f32.mrf.mxu0 }
 0x10a   :  { %887 = vst [vmem:[%s1360_s3 + $0x18] sm:$0xff] %v863_v11   ;;  %v937_v15 = vadd.f32 %v936_v13, %v935_v10  ;;  %v1000_v16 = vpop.f32.mrf.mxu1  ;;  %v634_v23 = vadd.f32 %v998_v18, %v537_v14 }
 0x10b   :  { %v938_v17 = vpop.f32.mrf.mxu0  ;;  %v1001_v20 = vadd.f32 %v1000_v16, %v999_v12 }
 0x10c   :  { %v540_v19 = vadd.f32 %v937_v15, %v1315_v5  ;;  %v1002_v21 = vpop.f32.mrf.mxu1 }
 0x10d   :  { %v939_v22 = vpop.f32.mrf.mxu0 }
 0x10e   :  { %v637_v24 = vadd.f32 %v1001_v20, %v540_v19  ;;  %v940_v25 = vadd.f32 %v939_v22, %v938_v17  ;;  %v1003_v26 = vpop.f32.mrf.mxu1 }
 0x10f   :  { %v941_v27 = vpop.f32.mrf.mxu0  ;;  %v1004_v35 = vadd.f32 %v1003_v26, %v1002_v21 }
 0x110   :  { %v868_v28 = vpack.c.bf16 %v637_v24, %v634_v23  ;;  %v1005_v29 = vpop.f32.mrf.mxu1  ;;  %v545_v31 = vadd.f32 %v940_v25, %v1315_v5 }
 0x111   :  { %v942_v30 = vpop.f32.mrf.mxu0 }
 0x112   :  { %888 = vst [vmem:[%s1360_s3 + $0x20] sm:$0xff] %v868_v28   ;;  %v943_v32 = vadd.f32 %v942_v30, %v941_v27  ;;  %v1006_v33 = vpop.f32.mrf.mxu1  ;;  %v642_v40 = vadd.f32 %v1004_v35, %v545_v31 }
 0x113   :  { %v944_v34 = vpop.f32.mrf.mxu0  ;;  %v1007_v37 = vadd.f32 %v1006_v33, %v1005_v29 }
 0x114   :  { %v548_v36 = vadd.f32 %v943_v32, %v1315_v5  ;;  %v1008_v38 = vpop.f32.mrf.mxu1 }
 0x115   :  { %v945_v39 = vpop.f32.mrf.mxu0 }
 0x116   :  { %v645_v41 = vadd.f32 %v1007_v37, %v548_v36  ;;  %v946_v42 = vadd.f32 %v945_v39, %v944_v34  ;;  %v1009_v43 = vpop.f32.mrf.mxu1 }
 0x117   :  { %v947_v44 = vpop.f32.mrf.mxu0  ;;  %v1010_v52 = vadd.f32 %v1009_v43, %v1008_v38 }
 0x118   :  { %v873_v45 = vpack.c.bf16 %v645_v41, %v642_v40  ;;  %v1011_v46 = vpop.f32.mrf.mxu1  ;;  %v553_v48 = vadd.f32 %v946_v42, %v1315_v5 }
 0x119   :  { %v948_v47 = vpop.f32.mrf.mxu0 }
 0x11a   :  { %889 = vst [vmem:[%s1360_s3 + $0x28] sm:$0xff] %v873_v45   ;;  %v949_v49 = vadd.f32 %v948_v47, %v947_v44  ;;  %v1012_v50 = vpop.f32.mrf.mxu1  ;;  %v650_v57 = vadd.f32 %v1010_v52, %v553_v48 }
 0x11b   :  { %v950_v51 = vpop.f32.mrf.mxu0  ;;  %v1013_v54 = vadd.f32 %v1012_v50, %v1011_v46 }
 0x11c   :  { %v556_v53 = vadd.f32 %v949_v49, %v1315_v5  ;;  %v1014_v55 = vpop.f32.mrf.mxu1 }
 0x11d   :  { %v951_v56 = vpop.f32.mrf.mxu0 }
 0x11e   :  { %v653_v58 = vadd.f32 %v1013_v54, %v556_v53  ;;  %v952_v59 = vadd.f32 %v951_v56, %v950_v51  ;;  %v1015_v60 = vpop.f32.mrf.mxu1 }
 0x11f   :  { %v953_v61 = vpop.f32.mrf.mxu0  ;;  %v1016_v4 = vadd.f32 %v1015_v60, %v1014_v55 }
 0x120   :  { %v878_v62 = vpack.c.bf16 %v653_v58, %v650_v57  ;;  %v1017_v63 = vpop.f32.mrf.mxu1  ;;  %v561_v1 = vadd.f32 %v952_v59, %v1315_v5 }
 0x121   :  { %v954_v0 = vpop.f32.mrf.mxu0 }
 0x122   :  { %890 = vst [vmem:[%s1360_s3 + $0x30] sm:$0xff] %v878_v62   ;;  %v955_v2 = vadd.f32 %v954_v0, %v953_v61  ;;  %v1018_v3 = vpop.f32.mrf.mxu1  ;;  %v658_v8 = vadd.f32 %v1016_v4, %v561_v1 }
 0x123   :  { %v1019_v7 = vadd.f32 %v1018_v3, %v1017_v63 }
 0x124   :  { %v564_v6 = vadd.f32 %v955_v2, %v1315_v5 }
 0x126   :  { %v661_v9 = vadd.f32 %v1019_v7, %v564_v6 }
 0x128   :  { %v883_v10 = vpack.c.bf16 %v661_v9, %v658_v8 }
 0x12a   :  { %891 = vst [vmem:[%s1360_s3 + $0x38] sm:$0xff] %v883_v10  }

// kernel: autoencoder3d_forward.8
= control target key start
LH: loop header
LB: loop body
LE: loop exit
PB: predicated region body
PF: predicated region fallthrough
CT: control target
= control target key end

     0   :  { %v930_v36 = vmov 0.0   ;;  %vm931_vm0 = vmmov 0   ;;  %s1147_s1 = inlined_call_operand.vmem [shape: bf16[896,128], index: 1, kind: input, shape index: {}]   ;;  %s1148_s0 = inlined_call_operand.vmem [shape: bf16[16,896], index: 0, kind: input, shape index: {}]   ;;  %s1149_s2 = inlined_call_operand.vmem [shape: f32[1,128], index: 2, kind: input, shape index: {}]   ;;  %s1150_s3 = inlined_call_operand.vmem [shape: bf16[16,128], index: 3, kind: output, shape index: {}]  }
   0x1   :  { %v864_v0 = vld [vmem:[%s1147_s1 + $0x78] sm:$0xff]   ;;  %v868_v4 = vld [vmem:[%s1147_s1 + $0x70] sm:$0xff]   ;;  %v872_v8 = vld [vmem:[%s1147_s1 + $0x68] sm:$0xff]  }
   0x2   :  { %v865_v1 = vld [vmem:[%s1147_s1 + $0xf8] sm:$0xff]   ;;  %767 = vmatprep.subr.bf16.mxu0 %v864_v0  ;;  %v869_v5 = vld [vmem:[%s1147_s1 + $0xf0] sm:$0xff]   ;;  %v873_v9 = vld [vmem:[%s1147_s1 + $0xe8] sm:$0xff]  }
   0x3   :  { %v866_v2 = vld [vmem:[%s1147_s1 + $0x38] sm:$0xff]   ;;  %789 = vmatprep.subr.bf16.mxu1 %v865_v1  ;;  %v870_v6 = vld [vmem:[%s1147_s1 + $0x30] sm:$0xff]   ;;  %v874_v10 = vld [vmem:[%s1147_s1 + $0x28] sm:$0xff]  }
   0x4   :  { %v867_v3 = vld [vmem:[%s1147_s1 + $0xb8] sm:$0xff]   ;;  %768 = vmatpush3.bf16.msra.mxu0 %v866_v2  ;;  %v871_v7 = vld [vmem:[%s1147_s1 + $0xb0] sm:$0xff]   ;;  %v875_v11 = vld [vmem:[%s1147_s1 + $0xa8] sm:$0xff]  }
   0x5   :  { %790 = vmatpush3.bf16.msra.mxu1 %v867_v3  ;;  %769 = vmatprep.subr.bf16.mxu0 %v868_v4  ;;  %v876_v12 = vld [vmem:[%s1147_s1 + $0x60] sm:$0xff]   ;;  %v880_v16 = vld [vmem:[%s1147_s1 + $0x58] sm:$0xff]   ;;  %v884_v20 = vld [vmem:[%s1147_s1 + $0x50] sm:$0xff]  }
   0x6   :  { %791 = vmatprep.subr.bf16.mxu1 %v869_v5  ;;  %v877_v13 = vld [vmem:[%s1147_s1 + $0xe0] sm:$0xff]   ;;  %v881_v17 = vld [vmem:[%s1147_s1 + $0xd8] sm:$0xff]   ;;  %v885_v21 = vld [vmem:[%s1147_s1 + $0xd0] sm:$0xff]  }
   0x7   :  { %v878_v14 = vld [vmem:[%s1147_s1 + $0x20] sm:$0xff]   ;;  %v882_v18 = vld [vmem:[%s1147_s1 + $0x18] sm:$0xff]   ;;  %v886_v22 = vld [vmem:[%s1147_s1 + $0x10] sm:$0xff]  }
   0x8   :  { %770 = vmatpush3.bf16.msra.mxu0 %v870_v6  ;;  %v879_v15 = vld [vmem:[%s1147_s1 + $0xa0] sm:$0xff]   ;;  %v883_v19 = vld [vmem:[%s1147_s1 + $0x98] sm:$0xff]   ;;  %v887_v23 = vld [vmem:[%s1147_s1 + $0x90] sm:$0xff]  }
   0x9   :  { %792 = vmatpush3.bf16.msra.mxu1 %v871_v7  ;;  %771 = vmatprep.subr.bf16.mxu0 %v872_v8  ;;  %v888_v24 = vld [vmem:[%s1147_s1 + $0x48] sm:$0xff]   ;;  %v892_v28 = vld [vmem:[%s1147_s1 + $0x40] sm:$0xff]   ;;  %v902_v37 = vld [vmem:[%s1147_s1 + $0x178] sm:$0xff]  }
   0xa   :  { %793 = vmatprep.subr.bf16.mxu1 %v873_v9  ;;  %v889_v25 = vld [vmem:[%s1147_s1 + $0xc8] sm:$0xff]   ;;  %v893_v29 = vld [vmem:[%s1147_s1 + $0xc0] sm:$0xff]   ;;  %v903_v38 = vld [vmem:[%s1147_s1 + $0x138] sm:$0xff]  }
   0xb   :  { %v890_v26 = vld [vmem:[%s1147_s1 + $0x8] sm:$0xff]   ;;  %v894_v30 = vld [vmem:[%s1147_s1] sm:$0xff]   ;;  %v904_v39 = vld [vmem:[%s1147_s1 + $0x1b8] sm:$0xff]  }
   0xc   :  { %772 = vmatpush3.bf16.msra.mxu0 %v874_v10  ;;  %v891_v27 = vld [vmem:[%s1147_s1 + $0x88] sm:$0xff]   ;;  %v895_v31 = vld [vmem:[%s1147_s1 + $0x80] sm:$0xff]   ;;  %v905_v40 = vld [vmem:[%s1147_s1 + $0x170] sm:$0xff]  }
   0xd   :  { %794 = vmatpush3.bf16.msra.mxu1 %v875_v11  ;;  %773 = vmatprep.subr.bf16.mxu0 %v876_v12  ;;  %v896_v32 = vld [vmem:[%s1148_s0] ss:$28 sps:$4 sm:$0xff]   ;;  %v899_v34 = vld [vmem:[%s1148_s0 + $0x8] ss:$28 sps:$4 sm:$0xff]   ;;  %v906_v41 = vld [vmem:[%s1147_s1 + $0x130] sm:$0xff]  }
   0xe   :  { %795 = vmatprep.subr.bf16.mxu1 %v877_v13  ;;  %v898_v33 = vld [vmem:[%s1148_s0 + $0x4] ss:$28 sps:$4 sm:$0xff]   ;;  %v901_v35 = vld [vmem:[%s1148_s0 + $0xc] ss:$28 sps:$4 sm:$0xff]   ;;  %v907_v42 = vld [vmem:[%s1147_s1 + $0x1b0] sm:$0xff]  }
   0xf   :  { %546 = vmatprep.mubr.bf16.mxu0 %v898_v33  ;;  %587 = vmatprep.mubr.bf16.mxu1 %v901_v35  ;;  %v908_v43 = vld [vmem:[%s1147_s1 + $0x168] sm:$0xff]   ;;  %v911_v46 = vld [vmem:[%s1147_s1 + $0x160] sm:$0xff]   ;;  %v914_v49 = vld [vmem:[%s1147_s1 + $0x158] sm:$0xff]  }
  0x10   :  { %774 = vmatpush3.bf16.msra.mxu0 %v878_v14  ;;  %v909_v44 = vld [vmem:[%s1147_s1 + $0x128] sm:$0xff]   ;;  %v912_v47 = vld [vmem:[%s1147_s1 + $0x120] sm:$0xff]   ;;  %v915_v50 = vld [vmem:[%s1147_s1 + $0x118] sm:$0xff]  }
  0x11   :  { %796 = vmatpush3.bf16.msra.mxu1 %v879_v15  ;;  %775 = vmatprep.subr.bf16.mxu0 %v880_v16  ;;  %v910_v45 = vld [vmem:[%s1147_s1 + $0x1a8] sm:$0xff]   ;;  %v913_v48 = vld [vmem:[%s1147_s1 + $0x1a0] sm:$0xff]   ;;  %v916_v51 = vld [vmem:[%s1147_s1 + $0x198] sm:$0xff]  }
  0x12   :  { %797 = vmatprep.subr.bf16.mxu1 %v881_v17  ;;  %v917_v52 = vld [vmem:[%s1147_s1 + $0x150] sm:$0xff]   ;;  %v920_v55 = vld [vmem:[%s1147_s1 + $0x148] sm:$0xff]   ;;  %v923_v58 = vld [vmem:[%s1147_s1 + $0x140] sm:$0xff]  }
  0x13   :  { %v918_v53 = vld [vmem:[%s1147_s1 + $0x110] sm:$0xff]   ;;  %v921_v56 = vld [vmem:[%s1147_s1 + $0x108] sm:$0xff]   ;;  %v924_v60 = vld [vmem:[%s1147_s1 + $0x100] sm:$0xff]  }
  0x14   :  { %776 = vmatpush3.bf16.msra.mxu0 %v882_v18  ;;  %v919_v54 = vld [vmem:[%s1147_s1 + $0x190] sm:$0xff]   ;;  %v922_v57 = vld [vmem:[%s1147_s1 + $0x188] sm:$0xff]   ;;  %v925_v61 = vld [vmem:[%s1147_s1 + $0x180] sm:$0xff]  }
  0x15   :  { %798 = vmatpush3.bf16.msra.mxu1 %v883_v19  ;;  %777 = vmatprep.subr.bf16.mxu0 %v884_v20  ;;  %v928_v59 = vld [vmem:[%s1148_s0 + $0x14] ss:$28 sps:$4 sm:$0xff]   ;;  %v694_v7 = vld [vmem:[%s1149_s2] ss:$0 sm:$0xff] }
  0x16   :  { %799 = vmatprep.subr.bf16.mxu1 %v885_v21  ;;  %v926_v62 = vld [vmem:[%s1148_s0 + $0x10] ss:$28 sps:$4 sm:$0xff]   ;;  %v929_v63 = vld [vmem:[%s1148_s0 + $0x18] ss:$28 sps:$4 sm:$0xff]  }
  0x18   :  { %778 = vmatpush3.bf16.msra.mxu0 %v886_v22 }
  0x19   :  { %800 = vmatpush3.bf16.msra.mxu1 %v887_v23  ;;  %779 = vmatprep.subr.bf16.mxu0 %v888_v24 }
  0x1a   :  { %801 = vmatprep.subr.bf16.mxu1 %v889_v25 }
  0x1c   :  { %780 = vmatpush3.bf16.msra.mxu0 %v890_v26 }
  0x1d   :  { %802 = vmatpush3.bf16.msra.mxu1 %v891_v27  ;;  %781 = vmatprep.subr.bf16.mxu0 %v892_v28 }
  0x1e   :  { %803 = vmatprep.subr.bf16.mxu1 %v893_v29 }
  0x20   :  { %782 = vmatpush3.bf16.msra.mxu0 %v894_v30 }
  0x21   :  { %804 = vmatpush3.bf16.msra.mxu1 %v895_v31  ;;  %811 = vmatprep.subr.bf16.mxu0 %v902_v37 }
  0x22   :  { %842 = vmatprep.subr.bf16.mxu1 %v930_v36 }
  0x23   :  { %547 = vmatmul.mubr.bf16.vlgmr.msra.gmra.mxu0 %v896_v32 }
  0x24   :  { %588 = vmatmul.mubr.bf16.vlgmr.msra.gmra.mxu1 %v899_v34  ;;  %812 = vmatpush3.bf16.msra.mxu0 %v903_v38 }
  0x25   :  { %858 = vmatprep.mubr.msk.bf16.mxu1 %vm931_vm0, %v930_v36  ;;  %843 = vmatpush3.bf16.msra.mxu1 %v904_v39 }
  0x26   :  { %813 = vmatprep.subr.bf16.mxu0 %v905_v40  ;;  %844 = vmatprep.subr.bf16.mxu1 %v930_v36 }
  0x27   :  { %628 = vmatprep.mubr.bf16.mxu0 %v928_v59 }
  0x28   :  { %814 = vmatpush3.bf16.msra.mxu0 %v906_v41 }
  0x29   :  { %845 = vmatpush3.bf16.msra.mxu1 %v907_v42  ;;  %815 = vmatprep.subr.bf16.mxu0 %v908_v43 }
  0x2a   :  { %846 = vmatprep.subr.bf16.mxu1 %v930_v36 }
  0x2c   :  { %816 = vmatpush3.bf16.msra.mxu0 %v909_v44 }
  0x2d   :  { %847 = vmatpush3.bf16.msra.mxu1 %v910_v45  ;;  %817 = vmatprep.subr.bf16.mxu0 %v911_v46 }
  0x2e   :  { %848 = vmatprep.subr.bf16.mxu1 %v930_v36 }
  0x30   :  { %818 = vmatpush3.bf16.msra.mxu0 %v912_v47 }
  0x31   :  { %849 = vmatpush3.bf16.msra.mxu1 %v913_v48  ;;  %819 = vmatprep.subr.bf16.mxu0 %v914_v49 }
  0x32   :  { %850 = vmatprep.subr.bf16.mxu1 %v930_v36 }
  0x34   :  { %820 = vmatpush3.bf16.msra.mxu0 %v915_v50 }
  0x35   :  { %851 = vmatpush3.bf16.msra.mxu1 %v916_v51  ;;  %821 = vmatprep.subr.bf16.mxu0 %v917_v52 }
  0x36   :  { %852 = vmatprep.subr.bf16.mxu1 %v930_v36 }
  0x38   :  { %822 = vmatpush3.bf16.msra.mxu0 %v918_v53 }
  0x39   :  { %853 = vmatpush3.bf16.msra.mxu1 %v919_v54  ;;  %823 = vmatprep.subr.bf16.mxu0 %v920_v55 }
  0x3a   :  { %854 = vmatprep.subr.bf16.mxu1 %v930_v36 }
  0x3c   :  { %824 = vmatpush3.bf16.msra.mxu0 %v921_v56 }
  0x3d   :  { %855 = vmatpush3.bf16.msra.mxu1 %v922_v57  ;;  %825 = vmatprep.subr.bf16.mxu0 %v923_v58 }
  0x3e   :  { %856 = vmatprep.subr.bf16.mxu1 %v930_v36 }
  0x40   :  { %826 = vmatpush3.bf16.msra.mxu0 %v924_v60 }
  0x41   :  { %857 = vmatpush3.bf16.msra.mxu1 %v925_v61 }
  0x43   :  { %629 = vmatmul.mubr.bf16.vlgmr.msra.gmra.mxu0 %v926_v62 }
  0x44   :  { %859 = vmatmul.mubr.bf16.vlgmr.msra.gmra.mxu1 %v929_v63 }
  0xe3   :  { %v783_v0 = vpop.f32.mrf.mxu0 }
  0xe4   :  { %v805_v1 = vpop.f32.mrf.mxu1 }
  0xe5   :  { %v784_v2 = vpop.f32.mrf.mxu0 }
  0xe6   :  { %v806_v3 = vpop.f32.mrf.mxu1  ;;  %v785_v5 = vadd.f32 %v784_v2, %v783_v0 }
  0xe7   :  { %v786_v4 = vpop.f32.mrf.mxu0  ;;  %v807_v10 = vadd.f32 %v806_v3, %v805_v1 }
  0xe8   :  { %v808_v6 = vpop.f32.mrf.mxu1  ;;  %v549_v9 = vadd.f32 %v785_v5, %v694_v7 }
  0xe9   :  { %v787_v8 = vpop.f32.mrf.mxu0 }
  0xea   :  { %v788_v11 = vadd.f32 %v787_v8, %v786_v4  ;;  %v809_v12 = vpop.f32.mrf.mxu1  ;;  %v590_v16 = vadd.f32 %v807_v10, %v549_v9 }
  0xeb   :  { %v810_v18 = vadd.f32 %v809_v12, %v808_v6 }
  0xec   :  { %v552_v17 = vadd.f32 %v788_v11, %v694_v7 }
  0xee   :  { %v593_v25 = vadd.f32 %v810_v18, %v552_v17 }
 0x103   :  { %v827_v13 = vpop.f32.mrf.mxu0 }
 0x104   :  { %v671_v14 = vpop.f32.mrf.mxu1 }
 0x105   :  { %v828_v15 = vpop.f32.mrf.mxu0 }
 0x106   :  { %v829_v19 = vadd.f32 %v828_v15, %v827_v13  ;;  %v860_v20 = vpop.f32.mrf.mxu1 }
 0x107   :  { %v830_v21 = vpop.f32.mrf.mxu0 }
 0x108   :  { %v631_v22 = vadd.f32 %v829_v19, %v590_v16  ;;  %v674_v23 = vpop.f32.mrf.mxu1 }
 0x109   :  { %v831_v24 = vpop.f32.mrf.mxu0 }
 0x10a   :  { %v832_v26 = vadd.f32 %v831_v24, %v830_v21  ;;  %v861_v27 = vpop.f32.mrf.mxu1  ;;  %v672_v28 = vadd.f32 %v671_v14, %v631_v22 }
 0x10c   :  { %v634_v29 = vadd.f32 %v832_v26, %v593_v25  ;;  %v678_v31 = vmax.f32 %v672_v28, 0.0 }
 0x10e   :  { %v675_v30 = vadd.f32 %v674_v23, %v634_v29 }
 0x110   :  { %v679_v32 = vmax.f32 %v675_v30, 0.0 }
 0x112   :  { %v765_v33 = vpack.c.bf16 %v679_v32, %v678_v31 }
 0x114   :  { %766 = vst [vmem:[%s1150_s3] sm:$0xff] %v765_v33  }

// kernel: tile.18
= control target key start
LH: loop header
LB: loop body
LE: loop exit
PB: predicated region body
PF: predicated region fallthrough
CT: control target
= control target key end

     0   :  { %s22_s0 = inlined_call_operand.vmem [shape: f32[32], index: 0, kind: input, shape index: {}]   ;;  %s23_s1 = inlined_call_operand.vmem [shape: f32[8,32], index: 1, kind: output, shape index: {}]  }
   0x1   :  { %v4_v0 = vld [vmem:[%s22_s0] ss:$0 sm:$0xff] }
   0x2   :  { %5 = vst [vmem:[%s23_s1] sm:$0xff] %v4_v0 }

// kernel: autoencoder3d_forward.9
= control target key start
LH: loop header
LB: loop body
LE: loop exit
PB: predicated region body
PF: predicated region fallthrough
CT: control target
= control target key end

     0   :  { %v243_v1 = vmov 0   ;;  %v35_v18 = vlaneseq  ;;  %s324_s1 = inlined_call_operand.vmem [shape: bf16[128,256], index: 1, kind: input, shape index: {}]   ;;  %s325_s0 = inlined_call_operand.vmem [shape: bf16[16,128], index: 0, kind: input, shape index: {}]   ;;  %s326_s2 = inlined_call_operand.vmem [shape: f32[1,256], index: 2, kind: input, shape index: {}]   ;;  %s327_s3 = inlined_call_operand.vmem [shape: bf16[16,256], index: 3, kind: output, shape index: {}]  }
   0x1   :  { %v218_v0 = vld [vmem:[%s324_s1 + $0x74] ss:$8 sps:$4 sm:$0xff]   ;;  %163 = vmatprep.mubr.bf16.mxu0 %v243_v1  ;;  %v220_v2 = vld [vmem:[%s324_s1 + $0x70] ss:$8 sps:$4 sm:$0xff]   ;;  %v221_v3 = vld [vmem:[%s324_s1 + $0x64] ss:$8 sps:$4 sm:$0xff]  }
   0x2   :  { %131 = vmatprep.subr.bf16.mxu0 %v218_v0  ;;  %v223_v4 = vld [vmem:[%s324_s1 + $0x60] ss:$8 sps:$4 sm:$0xff]   ;;  %v224_v5 = vld [vmem:[%s324_s1 + $0x54] ss:$8 sps:$4 sm:$0xff]   ;;  %v226_v6 = vld [vmem:[%s324_s1 + $0x50] ss:$8 sps:$4 sm:$0xff]  }
   0x3   :  { %132 = vmatpush1.bf16.msra.mxu0 %v220_v2  ;;  %v227_v7 = vld [vmem:[%s324_s1 + $0x44] ss:$8 sps:$4 sm:$0xff]   ;;  %v229_v8 = vld [vmem:[%s324_s1 + $0x40] ss:$8 sps:$4 sm:$0xff]   ;;  %v230_v9 = vld [vmem:[%s324_s1 + $0x34] ss:$8 sps:$4 sm:$0xff]  }
   0x4   :  { %133 = vmatprep.subr.bf16.mxu0 %v221_v3  ;;  %v232_v10 = vld [vmem:[%s324_s1 + $0x30] ss:$8 sps:$4 sm:$0xff]   ;;  %v233_v11 = vld [vmem:[%s324_s1 + $0x24] ss:$8 sps:$4 sm:$0xff]   ;;  %v235_v12 = vld [vmem:[%s324_s1 + $0x20] ss:$8 sps:$4 sm:$0xff]  }
   0x5   :  { %v236_v13 = vld [vmem:[%s324_s1 + $0x14] ss:$8 sps:$4 sm:$0xff]   ;;  %v238_v14 = vld [vmem:[%s324_s1 + $0x10] ss:$8 sps:$4 sm:$0xff]   ;;  %v239_v15 = vld [vmem:[%s324_s1 + $0x4] ss:$8 sps:$4 sm:$0xff]  }
   0x6   :  { %v241_v16 = vld [vmem:[%s324_s1] ss:$8 sps:$4 sm:$0xff]   ;;  %v36_v19 = vshrl.u32 %v35_v18, 7 }
   0x7   :  { %134 = vmatpush1.bf16.msra.mxu0 %v223_v4  ;;  %v242_v17 = vld [vmem:[%s325_s0] sm:$0xff]  }
   0x8   :  { %135 = vmatprep.subr.bf16.mxu0 %v224_v5  ;;  %v37_v20 = vsub.s32 0, %v36_v19  ;;  %v33_v21 = vld [vmem:[%s326_s2] sm:$0x3]  ;;  %v41_v22 = vsub.s32 1, %v36_v19 }
   0xa   :  { %v38_v23 = vrot.slane %v33_v21, %v37_v20  ;;  %v42_v24 = vrot.slane %v33_v21, %v41_v22 }
   0xb   :  { %136 = vmatpush1.bf16.msra.mxu0 %v226_v6 }
   0xc   :  { %137 = vmatprep.subr.bf16.mxu0 %v227_v7 }
   0xf   :  { %138 = vmatpush1.bf16.msra.mxu0 %v229_v8 }
  0x10   :  { %139 = vmatprep.subr.bf16.mxu0 %v230_v9 }
  0x13   :  { %140 = vmatpush1.bf16.msra.mxu0 %v232_v10 }
  0x14   :  { %141 = vmatprep.subr.bf16.mxu0 %v233_v11 }
  0x17   :  { %142 = vmatpush1.bf16.msra.mxu0 %v235_v12 }
  0x18   :  { %143 = vmatprep.subr.bf16.mxu0 %v236_v13 }
  0x1b   :  { %144 = vmatpush1.bf16.msra.mxu0 %v238_v14 }
  0x1c   :  { %145 = vmatprep.subr.bf16.mxu0 %v239_v15 }
  0x1f   :  { %146 = vmatpush1.bf16.msra.mxu0 %v241_v16 }
  0x22   :  { %164 = vmatmul.mubr.bf16.vlgmr.msra.gmra.mxu0 %v242_v17 }
  0xe2   :  { %v165_v25 = vpop.f32.mrf.mxu0 }
  0xe3   :  { %v166_v26 = vadd.f32 %v165_v25, %v38_v23 }
  0xe4   :  { %v167_v27 = vpop.f32.mrf.mxu0 }
  0xe5   :  { %v168_v28 = vadd.f32 %v167_v27, %v42_v24  ;;  %v174_v30 = vmax.f32 %v166_v26, 0.0 }
  0xe6   :  { %v169_v29 = vpop.f32.mrf.mxu0 }
  0xe7   :  { %v175_v31 = vmax.f32 %v168_v28, 0.0  ;;  %v170_v32 = vadd.f32 %v169_v29, %v38_v23 }
  0xe8   :  { %v171_v33 = vpop.f32.mrf.mxu0 }
  0xe9   :  { %v215_v34 = vpack.c.bf16 %v175_v31, %v174_v30  ;;  %v172_v35 = vadd.f32 %v171_v33, %v42_v24  ;;  %v176_v36 = vmax.f32 %v170_v32, 0.0 }
  0xeb   :  { %190 = vst [vmem:[%s327_s3] sm:$0xff] %v215_v34  ;;  %v177_v37 = vmax.f32 %v172_v35, 0.0 }
  0xed   :  { %v216_v38 = vpack.c.bf16 %v177_v37, %v176_v36 }
  0xef   :  { %191 = vst [vmem:[%s327_s3 + $0x8] sm:$0xff] %v216_v38 }

// kernel: tile.23
= control target key start
LH: loop header
LB: loop body
LE: loop exit
PB: predicated region body
PF: predicated region fallthrough
CT: control target
= control target key end

     0   :  { %s22_s0 = inlined_call_operand.vmem [shape: f32[16], index: 0, kind: input, shape index: {}]   ;;  %s23_s1 = inlined_call_operand.vmem [shape: f32[8,16], index: 1, kind: output, shape index: {}]  }
   0x1   :  { %v4_v0 = vld [vmem:[%s22_s0] ss:$0 sm:$0xff] }
   0x2   :  { %5 = vst [vmem:[%s23_s1] sm:$0xff] %v4_v0 }

// kernel: autoencoder3d_forward.10
= control target key start
LH: loop header
LB: loop body
LE: loop exit
PB: predicated region body
PF: predicated region fallthrough
CT: control target
= control target key end

     0   :  { %s2399_s1 = inlined_call_operand.vmem [shape: bf16[896,128], index: 1, kind: input, shape index: {}]   ;;  %s2400_s0 = inlined_call_operand.vmem [shape: bf16[128,896], index: 0, kind: input, shape index: {}]   ;;  %s2401_s2 = inlined_call_operand.vmem [shape: f32[1,128], index: 2, kind: input, shape index: {}]   ;;  %s2402_s3 = inlined_call_operand.vmem [shape: bf16[128,128], index: 3, kind: output, shape index: {}]  }
   0x1   :  { %v1742_v0 = vld [vmem:[%s2399_s1 + $0x78] sm:$0xff]   ;;  %v1746_v4 = vld [vmem:[%s2399_s1 + $0x70] sm:$0xff]   ;;  %v1750_v8 = vld [vmem:[%s2399_s1 + $0x68] sm:$0xff]  }
   0x2   :  { %v1743_v1 = vld [vmem:[%s2399_s1 + $0x38] sm:$0xff]   ;;  %1502 = vmatprep.subr.bf16.mxu0 %v1742_v0  ;;  %v1747_v5 = vld [vmem:[%s2399_s1 + $0x30] sm:$0xff]   ;;  %v1751_v9 = vld [vmem:[%s2399_s1 + $0x28] sm:$0xff]  }
   0x3   :  { %v1744_v2 = vld [vmem:[%s2399_s1 + $0xf8] sm:$0xff]   ;;  %1503 = vmatpush3.bf16.msra.mxu0 %v1743_v1  ;;  %v1748_v6 = vld [vmem:[%s2399_s1 + $0xf0] sm:$0xff]   ;;  %v1752_v10 = vld [vmem:[%s2399_s1 + $0xe8] sm:$0xff]  }
   0x4   :  { %v1745_v3 = vld [vmem:[%s2399_s1 + $0xb8] sm:$0xff]   ;;  %1566 = vmatprep.subr.bf16.mxu1 %v1744_v2  ;;  %1504 = vmatprep.subr.bf16.mxu0 %v1746_v4  ;;  %v1749_v7 = vld [vmem:[%s2399_s1 + $0xb0] sm:$0xff]   ;;  %v1753_v11 = vld [vmem:[%s2399_s1 + $0xa8] sm:$0xff]  }
   0x5   :  { %1567 = vmatpush3.bf16.msra.mxu1 %v1745_v3  ;;  %v1754_v12 = vld [vmem:[%s2399_s1 + $0x60] sm:$0xff]   ;;  %v1758_v16 = vld [vmem:[%s2399_s1 + $0x58] sm:$0xff]   ;;  %v1762_v20 = vld [vmem:[%s2399_s1 + $0x50] sm:$0xff]  }
   0x6   :  { %1568 = vmatprep.subr.bf16.mxu1 %v1748_v6  ;;  %v1755_v13 = vld [vmem:[%s2399_s1 + $0x20] sm:$0xff]   ;;  %v1759_v17 = vld [vmem:[%s2399_s1 + $0x18] sm:$0xff]   ;;  %v1763_v21 = vld [vmem:[%s2399_s1 + $0x10] sm:$0xff]  }
   0x7   :  { %1505 = vmatpush3.bf16.msra.mxu0 %v1747_v5  ;;  %v1756_v14 = vld [vmem:[%s2399_s1 + $0xe0] sm:$0xff]   ;;  %v1760_v18 = vld [vmem:[%s2399_s1 + $0xd8] sm:$0xff]   ;;  %v1764_v22 = vld [vmem:[%s2399_s1 + $0xd0] sm:$0xff]  }
   0x8   :  { %1506 = vmatprep.subr.bf16.mxu0 %v1750_v8  ;;  %v1757_v15 = vld [vmem:[%s2399_s1 + $0xa0] sm:$0xff]   ;;  %v1761_v19 = vld [vmem:[%s2399_s1 + $0x98] sm:$0xff]   ;;  %v1765_v23 = vld [vmem:[%s2399_s1 + $0x90] sm:$0xff]  }
   0x9   :  { %1569 = vmatpush3.bf16.msra.mxu1 %v1749_v7  ;;  %v1766_v24 = vld [vmem:[%s2399_s1 + $0x48] sm:$0xff]   ;;  %v1770_v28 = vld [vmem:[%s2399_s1 + $0x40] sm:$0xff]   ;;  %v1777_v34 = vld [vmem:[%s2399_s1 + $0x178] sm:$0xff]  }
   0xa   :  { %1570 = vmatprep.subr.bf16.mxu1 %v1752_v10  ;;  %v1767_v25 = vld [vmem:[%s2399_s1 + $0x8] sm:$0xff]   ;;  %v1771_v29 = vld [vmem:[%s2399_s1] sm:$0xff]   ;;  %v1781_v37 = vld [vmem:[%s2399_s1 + $0x138] sm:$0xff]  }
   0xb   :  { %1507 = vmatpush3.bf16.msra.mxu0 %v1751_v9  ;;  %v1768_v26 = vld [vmem:[%s2399_s1 + $0xc8] sm:$0xff]   ;;  %v1772_v30 = vld [vmem:[%s2399_s1 + $0xc0] sm:$0xff]   ;;  %v1782_v38 = vld [vmem:[%s2400_s0 + $0x3c] ss:$28 sps:$4 sm:$0xff]  }
   0xc   :  { %1508 = vmatprep.subr.bf16.mxu0 %v1754_v12  ;;  %v1769_v27 = vld [vmem:[%s2399_s1 + $0x88] sm:$0xff]   ;;  %v1773_v31 = vld [vmem:[%s2400_s0] ss:$28 sps:$4 sm:$0xff]   ;;  %v1784_v39 = vld [vmem:[%s2400_s0 + $0x38] ss:$28 sps:$4 sm:$0xff]  }
   0xd   :  { %1571 = vmatpush3.bf16.msra.mxu1 %v1753_v11  ;;  %v1775_v32 = vld [vmem:[%s2400_s0 + $0x4] ss:$28 sps:$4 sm:$0xff]   ;;  %v1780_v36 = vld [vmem:[%s2400_s0 + $0xc] ss:$28 sps:$4 sm:$0xff]   ;;  %v1785_v40 = vld [vmem:[%s2399_s1 + $0x170] sm:$0xff]  }
   0xe   :  { %1572 = vmatprep.subr.bf16.mxu1 %v1756_v14  ;;  %v1776_v33 = vld [vmem:[%s2399_s1 + $0x80] sm:$0xff]   ;;  %854 = vmatprep.mubr.bf16.mxu0 %v1775_v32  ;;  %v1788_v42 = vld [vmem:[%s2399_s1 + $0x130] sm:$0xff]   ;;  %v1793_v45 = vld [vmem:[%s2399_s1 + $0x168] sm:$0xff]  }
   0xf   :  { %1509 = vmatpush3.bf16.msra.mxu0 %v1755_v13  ;;  %v1778_v35 = vld [vmem:[%s2400_s0 + $0x8] ss:$28 sps:$4 sm:$0xff]   ;;  %951 = vmatprep.mubr.bf16.mxu1 %v1780_v36  ;;  %v1789_v43 = vld [vmem:[%s2400_s0 + $0x40] ss:$28 sps:$4 sm:$0xff]   ;;  %v1790_v44 = vld [vmem:[%s2400_s0 + $0x74] ss:$28 sps:$4 sm:$0xff]  }
  0x10   :  { %1510 = vmatprep.subr.bf16.mxu0 %v1758_v16  ;;  %v1786_v41 = vld [vmem:[%s2400_s0 + $0x44] ss:$28 sps:$4 sm:$0xff]   ;;  %v1794_v46 = vld [vmem:[%s2400_s0 + $0x7c] ss:$28 sps:$4 sm:$0xff]   ;;  %v1796_v47 = vld [vmem:[%s2399_s1 + $0x128] sm:$0xff]  }
  0x11   :  { %1573 = vmatpush3.bf16.msra.mxu1 %v1757_v15  ;;  %v1792_v48 = vld [vmem:[%s2400_s0 + $0x70] ss:$28 sps:$4 sm:$0xff]   ;;  %v1801_v50 = vld [vmem:[%s2399_s1 + $0x160] sm:$0xff]   ;;  %v1797_v51 = vld [vmem:[%s2400_s0 + $0x78] ss:$28 sps:$4 sm:$0xff]  }
  0x12   :  { %1574 = vmatprep.subr.bf16.mxu1 %v1760_v18  ;;  %v1798_v49 = vld [vmem:[%s2400_s0 + $0xac] ss:$28 sps:$4 sm:$0xff]   ;;  %v1804_v52 = vld [vmem:[%s2399_s1 + $0x120] sm:$0xff]   ;;  %v1802_v53 = vld [vmem:[%s2400_s0 + $0xb4] ss:$28 sps:$4 sm:$0xff]  }
  0x13   :  { %1511 = vmatpush3.bf16.msra.mxu0 %v1759_v17  ;;  %v1809_v54 = vld [vmem:[%s2399_s1 + $0x158] sm:$0xff]   ;;  %v1800_v55 = vld [vmem:[%s2400_s0 + $0xa8] ss:$28 sps:$4 sm:$0xff]   ;;  %v1805_v59 = vld [vmem:[%s2400_s0 + $0xb0] ss:$28 sps:$4 sm:$0xff]  }
  0x14   :  { %1512 = vmatprep.subr.bf16.mxu0 %v1762_v20  ;;  %v1812_v56 = vld [vmem:[%s2399_s1 + $0x118] sm:$0xff]   ;;  %v1806_v57 = vld [vmem:[%s2400_s0 + $0xe4] ss:$28 sps:$4 sm:$0xff]   ;;  %v1810_v60 = vld [vmem:[%s2400_s0 + $0xec] ss:$28 sps:$4 sm:$0xff]  }
  0x15   :  { %1575 = vmatpush3.bf16.msra.mxu1 %v1761_v19  ;;  %v1814_v58 = vld [vmem:[%s2399_s1 + $0x1b8] sm:$0xff]   ;;  %v1818_v61 = vld [vmem:[%s2399_s1 + $0x150] sm:$0xff]   ;;  %v1824_v0 = vld [vmem:[%s2399_s1 + $0x1a8] sm:$0xff]  }
  0x16   :  { %1576 = vmatprep.subr.bf16.mxu1 %v1764_v22  ;;  %v1819_v62 = vld [vmem:[%s2399_s1 + $0x1b0] sm:$0xff]   ;;  %v1808_v1 = vld [vmem:[%s2400_s0 + $0xe0] ss:$28 sps:$4 sm:$0xff]   ;;  %v1813_v2 = vld [vmem:[%s2400_s0 + $0xe8] ss:$28 sps:$4 sm:$0xff]  }
  0x17   :  { %1513 = vmatpush3.bf16.msra.mxu0 %v1763_v21  ;;  %v1822_v63 = vld [vmem:[%s2399_s1 + $0x110] sm:$0xff]   ;;  %v1815_v3 = vld [vmem:[%s2400_s0 + $0x11c] ss:$28 sps:$4 sm:$0xff]   ;;  %v1828_v4 = vld [vmem:[%s2399_s1 + $0x148] sm:$0xff]  }
  0x18   :  { %1514 = vmatprep.subr.bf16.mxu0 %v1766_v24  ;;  %v1829_v5 = vld [vmem:[%s2399_s1 + $0x1a0] sm:$0xff]   ;;  %v1832_v7 = vld [vmem:[%s2399_s1 + $0x108] sm:$0xff]   ;;  %v1834_v8 = vld [vmem:[%s2399_s1 + $0x198] sm:$0xff]  }
  0x19   :  { %1577 = vmatpush3.bf16.msra.mxu1 %v1765_v23  ;;  %v1820_v6 = vld [vmem:[%s2400_s0 + $0x124] ss:$28 sps:$4 sm:$0xff]   ;;  %v1817_v9 = vld [vmem:[%s2400_s0 + $0x118] ss:$28 sps:$4 sm:$0xff]   ;;  %v1844_v16 = vld [vmem:[%s2399_s1 + $0x188] sm:$0xff]  }
  0x1a   :  { %1578 = vmatprep.subr.bf16.mxu1 %v1768_v26  ;;  %v1838_v10 = vld [vmem:[%s2399_s1 + $0x140] sm:$0xff]   ;;  %v1825_v12 = vld [vmem:[%s2400_s0 + $0x154] ss:$28 sps:$4 sm:$0xff]   ;;  %v1830_v15 = vld [vmem:[%s2400_s0 + $0x15c] ss:$28 sps:$4 sm:$0xff]  }
  0x1b   :  { %1515 = vmatpush3.bf16.msra.mxu0 %v1767_v25  ;;  %v1823_v11 = vld [vmem:[%s2400_s0 + $0x120] ss:$28 sps:$4 sm:$0xff]   ;;  %v1839_v13 = vld [vmem:[%s2399_s1 + $0x190] sm:$0xff]   ;;  %v1835_v18 = vld [vmem:[%s2400_s0 + $0x18c] ss:$28 sps:$4 sm:$0xff]  }
  0x1c   :  { %1516 = vmatprep.subr.bf16.mxu0 %v1770_v28  ;;  %v1842_v14 = vld [vmem:[%s2399_s1 + $0x100] sm:$0xff]   ;;  %v1827_v17 = vld [vmem:[%s2400_s0 + $0x150] ss:$28 sps:$4 sm:$0xff]   ;;  %v1833_v20 = vld [vmem:[%s2400_s0 + $0x158] ss:$28 sps:$4 sm:$0xff]  }
  0x1d   :  { %1579 = vmatpush3.bf16.msra.mxu1 %v1769_v27  ;;  %v1848_v19 = vld [vmem:[%s2399_s1 + $0x180] sm:$0xff]   ;;  %v1840_v21 = vld [vmem:[%s2400_s0 + $0x194] ss:$28 sps:$4 sm:$0xff]   ;;  %v1851_v27 = vld [vmem:[%s2400_s0 + $0x4c] ss:$28 sps:$4 sm:$0xff]  }
  0x1e   :  { %1580 = vmatprep.subr.bf16.mxu1 %v1772_v30  ;;  %v1837_v22 = vld [vmem:[%s2400_s0 + $0x188] ss:$28 sps:$4 sm:$0xff]   ;;  %v1847_v23 = vld [vmem:[%s2400_s0 + $0x14] ss:$28 sps:$4 sm:$0xff]   ;;  %v1858_v32 = vld [vmem:[%s2400_s0 + $0xc0] ss:$28 sps:$4 sm:$0xff]  }
  0x1f   :  { %1517 = vmatpush3.bf16.msra.mxu0 %v1771_v29  ;;  %v1843_v24 = vld [vmem:[%s2400_s0 + $0x190] ss:$28 sps:$4 sm:$0xff]   ;;  %v1849_v25 = vld [vmem:[%s2400_s0 + $0x18] ss:$28 sps:$4 sm:$0xff]   ;;  %v1857_v29 = vld [vmem:[%s2400_s0 + $0x88] ss:$28 sps:$4 sm:$0xff]  }
  0x20   :  { %1630 = vmatprep.subr.bf16.mxu0 %v1777_v34  ;;  %v1845_v26 = vld [vmem:[%s2400_s0 + $0x10] ss:$28 sps:$4 sm:$0xff]   ;;  %v1853_v30 = vld [vmem:[%s2400_s0 + $0x48] ss:$28 sps:$4 sm:$0xff]   ;;  %v1856_v34 = vld [vmem:[%s2400_s0 + $0x80] ss:$28 sps:$4 sm:$0xff]  }
  0x21   :  { %1581 = vmatpush3.bf16.msra.mxu1 %v1776_v33  ;;  %v1850_v28 = vld [vmem:[%s2400_s0 + $0x50] ss:$28 sps:$4 sm:$0xff]   ;;  %v1865_v33 = vld [vmem:[%s2400_s0 + $0xf8] ss:$28 sps:$4 sm:$0xff]  }
  0x22   :  { %855 = vmatmul.mubr.bf16.vlgmr.msra.gmra.mxu0 %v1773_v31  ;;  %1710 = vmatprep.subr.bf16.mxu1 %v1814_v58  ;;  %v1854_v31 = vld [vmem:[%s2400_s0 + $0x84] ss:$28 sps:$4 sm:$0xff]   ;;  %v1866_v36 = vld [vmem:[%s2400_s0 + $0x130] ss:$28 sps:$4 sm:$0xff]  }
  0x23   :  { %1631 = vmatpush3.bf16.msra.mxu0 %v1781_v37  ;;  %862 = vmatprep.mubr.bf16.mxu0 %v1782_v38  ;;  %v1873_v37 = vld [vmem:[%s2400_s0 + $0x168] ss:$28 sps:$4 sm:$0xff]   ;;  %v1861_v38 = vld [vmem:[%s2400_s0 + $0xb8] ss:$28 sps:$4 sm:$0xff]  }
  0x24   :  { %952 = vmatmul.mubr.bf16.vlgmr.msra.gmra.mxu1 %v1778_v35  ;;  %1632 = vmatprep.subr.bf16.mxu0 %v1785_v40  ;;  %v1859_v35 = vld [vmem:[%s2400_s0 + $0xbc] ss:$28 sps:$4 sm:$0xff]  }
  0x25   :  { %959 = vmatprep.mubr.bf16.mxu1 %v1786_v41  ;;  %1711 = vmatpush3.bf16.msra.mxu1 %v1814_v58  ;;  %v1874_v40 = vld [vmem:[%s2400_s0 + $0x1a0] ss:$28 sps:$4 sm:$0xff]   ;;  %v1864_v41 = vld [vmem:[%s2400_s0 + $0xf0] ss:$28 sps:$4 sm:$0xff]  }
  0x26   :  { %1712 = vmatprep.subr.bf16.mxu1 %v1819_v62 }
  0x27   :  { %1633 = vmatpush3.bf16.msra.mxu0 %v1788_v42  ;;  %v1867_v42 = vld [vmem:[%s2400_s0 + $0x12c] ss:$28 sps:$4 sm:$0xff]  }
  0x28   :  { %1634 = vmatprep.subr.bf16.mxu0 %v1793_v45  ;;  %v1872_v45 = vld [vmem:[%s2400_s0 + $0x160] ss:$28 sps:$4 sm:$0xff]  }
  0x29   :  { %1713 = vmatpush3.bf16.msra.mxu1 %v1819_v62 }
  0x2a   :  { %863 = vmatmul.mubr.bf16.gmra.mxu0 %v1784_v39  ;;  %1714 = vmatprep.subr.bf16.mxu1 %v1824_v0  ;;  %v1862_v39 = vld [vmem:[%s2400_s0 + $0xf4] ss:$28 sps:$4 sm:$0xff]  }
  0x2b   :  { %870 = vmatprep.mubr.bf16.mxu0 %v1790_v44  ;;  %1635 = vmatpush3.bf16.msra.mxu0 %v1796_v47  ;;  %v1870_v44 = vld [vmem:[%s2400_s0 + $0x164] ss:$28 sps:$4 sm:$0xff]   ;;  %v1877_v47 = vld [vmem:[%s2400_s0 + $0x198] ss:$28 sps:$4 sm:$0xff]  }
  0x2c   :  { %960 = vmatmul.mubr.bf16.gmra.mxu1 %v1789_v43  ;;  %1636 = vmatprep.subr.bf16.mxu0 %v1801_v50  ;;  %v1869_v43 = vld [vmem:[%s2400_s0 + $0x128] ss:$28 sps:$4 sm:$0xff]  }
  0x2d   :  { %967 = vmatprep.mubr.bf16.mxu1 %v1794_v46  ;;  %1715 = vmatpush3.bf16.msra.mxu1 %v1824_v0  ;;  %v1875_v46 = vld [vmem:[%s2400_s0 + $0x19c] ss:$28 sps:$4 sm:$0xff]  }
  0x2e   :  { %1716 = vmatprep.subr.bf16.mxu1 %v1829_v5 }
  0x2f   :  { %1637 = vmatpush3.bf16.msra.mxu0 %v1804_v52 }
  0x30   :  { %1638 = vmatprep.subr.bf16.mxu0 %v1809_v54 }
  0x31   :  { %1717 = vmatpush3.bf16.msra.mxu1 %v1829_v5 }
  0x32   :  { %871 = vmatmul.mubr.bf16.gmra.mxu0 %v1792_v48  ;;  %1718 = vmatprep.subr.bf16.mxu1 %v1834_v8 }
  0x33   :  { %878 = vmatprep.mubr.bf16.mxu0 %v1798_v49  ;;  %1639 = vmatpush3.bf16.msra.mxu0 %v1812_v56  ;;  %v2237_v49 = vld [vmem:[%s2401_s2] ss:$0 sm:$0xff] }
  0x34   :  { %968 = vmatmul.mubr.bf16.gmra.mxu1 %v1797_v51  ;;  %1640 = vmatprep.subr.bf16.mxu0 %v1818_v61 }
  0x35   :  { %975 = vmatprep.mubr.bf16.mxu1 %v1802_v53  ;;  %1719 = vmatpush3.bf16.msra.mxu1 %v1834_v8 }
  0x36   :  { %1720 = vmatprep.subr.bf16.mxu1 %v1839_v13 }
  0x37   :  { %1641 = vmatpush3.bf16.msra.mxu0 %v1822_v63 }
  0x38   :  { %1642 = vmatprep.subr.bf16.mxu0 %v1828_v4 }
  0x39   :  { %1721 = vmatpush3.bf16.msra.mxu1 %v1839_v13 }
  0x3a   :  { %879 = vmatmul.mubr.bf16.gmra.mxu0 %v1800_v55  ;;  %1722 = vmatprep.subr.bf16.mxu1 %v1844_v16 }
  0x3b   :  { %886 = vmatprep.mubr.bf16.mxu0 %v1806_v57  ;;  %1643 = vmatpush3.bf16.msra.mxu0 %v1832_v7 }
  0x3c   :  { %976 = vmatmul.mubr.bf16.gmra.mxu1 %v1805_v59  ;;  %1644 = vmatprep.subr.bf16.mxu0 %v1838_v10 }
  0x3d   :  { %983 = vmatprep.mubr.bf16.mxu1 %v1810_v60  ;;  %1723 = vmatpush3.bf16.msra.mxu1 %v1844_v16 }
  0x3e   :  { %1724 = vmatprep.subr.bf16.mxu1 %v1848_v19 }
  0x3f   :  { %1645 = vmatpush3.bf16.msra.mxu0 %v1842_v14 }
  0x41   :  { %1725 = vmatpush3.bf16.msra.mxu1 %v1848_v19 }
  0x42   :  { %887 = vmatmul.mubr.bf16.gmra.mxu0 %v1808_v1 }
  0x43   :  { %894 = vmatprep.mubr.bf16.mxu0 %v1815_v3 }
  0x44   :  { %984 = vmatmul.mubr.bf16.gmra.mxu1 %v1813_v2 }
  0x45   :  { %991 = vmatprep.mubr.bf16.mxu1 %v1820_v6 }
  0x4a   :  { %895 = vmatmul.mubr.bf16.gmra.mxu0 %v1817_v9 }
  0x4b   :  { %902 = vmatprep.mubr.bf16.mxu0 %v1825_v12 }
  0x4c   :  { %992 = vmatmul.mubr.bf16.gmra.mxu1 %v1823_v11 }
  0x4d   :  { %999 = vmatprep.mubr.bf16.mxu1 %v1830_v15 }
  0x52   :  { %903 = vmatmul.mubr.bf16.gmra.mxu0 %v1827_v17 }
  0x53   :  { %910 = vmatprep.mubr.bf16.mxu0 %v1835_v18 }
  0x54   :  { %1000 = vmatmul.mubr.bf16.gmra.mxu1 %v1833_v20 }
  0x55   :  { %1007 = vmatprep.mubr.bf16.mxu1 %v1840_v21 }
  0x5a   :  { %911 = vmatmul.mubr.bf16.gmra.mxu0 %v1837_v22 }
  0x5b   :  { %1048 = vmatprep.mubr.bf16.mxu0 %v1847_v23 }
  0x5c   :  { %1008 = vmatmul.mubr.bf16.gmra.mxu1 %v1843_v24 }
  0x5d   :  { %1726 = vmatprep.mubr.bf16.mxu1 %v1849_v25 }
  0x62   :  { %1049 = vmatmul.mubr.bf16.vlgmr.msra.gmra.mxu0 %v1845_v26 }
  0x63   :  { %1056 = vmatprep.mubr.bf16.mxu0 %v1851_v27 }
  0x64   :  { %1727 = vmatmul.mubr.bf16.vlgmr.msra.gmra.mxu1 %v1850_v28 }
  0x65   :  { %1730 = vmatprep.mubr.bf16.mxu1 %v1857_v29 }
  0x6a   :  { %1057 = vmatmul.mubr.bf16.gmra.mxu0 %v1853_v30 }
  0x6b   :  { %1064 = vmatprep.mubr.bf16.mxu0 %v1854_v31 }
  0x6c   :  { %1731 = vmatmul.mubr.bf16.gmra.mxu1 %v1858_v32 }
  0x6d   :  { %1734 = vmatprep.mubr.bf16.mxu1 %v1865_v33 }
  0x72   :  { %1065 = vmatmul.mubr.bf16.gmra.mxu0 %v1856_v34 }
  0x73   :  { %1072 = vmatprep.mubr.bf16.mxu0 %v1859_v35 }
  0x74   :  { %1735 = vmatmul.mubr.bf16.gmra.mxu1 %v1866_v36 }
  0x75   :  { %1738 = vmatprep.mubr.bf16.mxu1 %v1873_v37 }
  0x7a   :  { %1073 = vmatmul.mubr.bf16.gmra.mxu0 %v1861_v38 }
  0x7b   :  { %1080 = vmatprep.mubr.bf16.mxu0 %v1862_v39 }
  0x7c   :  { %1739 = vmatmul.mubr.bf16.gmra.mxu1 %v1874_v40 }
  0x82   :  { %1081 = vmatmul.mubr.bf16.gmra.mxu0 %v1864_v41 }
  0x83   :  { %1088 = vmatprep.mubr.bf16.mxu0 %v1867_v42 }
  0x8a   :  { %1089 = vmatmul.mubr.bf16.gmra.mxu0 %v1869_v43 }
  0x8b   :  { %1096 = vmatprep.mubr.bf16.mxu0 %v1870_v44 }
  0x92   :  { %1097 = vmatmul.mubr.bf16.gmra.mxu0 %v1872_v45 }
  0x93   :  { %1104 = vmatprep.mubr.bf16.mxu0 %v1875_v46 }
  0x9a   :  { %1105 = vmatmul.mubr.bf16.gmra.mxu0 %v1877_v47 }
  0xe2   :  { %v1518_v48 = vpop.f32.mrf.mxu0 }
  0xe4   :  { %v1519_v50 = vpop.f32.mrf.mxu0  ;;  %v1582_v52 = vpop.f32.mrf.mxu1 }
  0xe5   :  { %v1520_v51 = vadd.f32 %v1519_v50, %v1518_v48 }
  0xe6   :  { %v2239_v53 = vpop.f32.mrf.mxu0  ;;  %v1583_v55 = vpop.f32.mrf.mxu1 }
  0xe7   :  { %v857_v54 = vadd.f32 %v1520_v51, %v2237_v49  ;;  %v1584_v56 = vadd.f32 %v1583_v55, %v1582_v52 }
  0xe8   :  { %v2242_v57 = vpop.f32.mrf.mxu0  ;;  %v2244_v58 = vpop.f32.mrf.mxu1 }
  0xe9   :  { %v2246_v59 = vadd.f32 %v1584_v56, %v857_v54 }
  0xea   :  { %v1524_v60 = vpop.f32.mrf.mxu0  ;;  %v2248_v61 = vpop.f32.mrf.mxu1 }
  0xec   :  { %v1525_v62 = vpop.f32.mrf.mxu0  ;;  %v1588_v0 = vpop.f32.mrf.mxu1 }
  0xed   :  { %v1526_v63 = vadd.f32 %v1525_v62, %v1524_v60 }
  0xee   :  { %v2250_v1 = vpop.f32.mrf.mxu0  ;;  %v1589_v3 = vpop.f32.mrf.mxu1 }
  0xef   :  { %v865_v2 = vadd.f32 %v1526_v63, %v2237_v49  ;;  %v1590_v4 = vadd.f32 %v1589_v3, %v1588_v0 }
  0xf0   :  { %v2253_v5 = vpop.f32.mrf.mxu0  ;;  %v2255_v6 = vpop.f32.mrf.mxu1 }
  0xf1   :  { %v2257_v7 = vadd.f32 %v1590_v4, %v865_v2 }
  0xf2   :  { %v1530_v8 = vpop.f32.mrf.mxu0  ;;  %v2259_v9 = vpop.f32.mrf.mxu1 }
  0xf4   :  { %v1531_v10 = vpop.f32.mrf.mxu0  ;;  %v1594_v12 = vpop.f32.mrf.mxu1 }
  0xf5   :  { %v1532_v11 = vadd.f32 %v1531_v10, %v1530_v8 }
  0xf6   :  { %v2261_v13 = vpop.f32.mrf.mxu0  ;;  %v1595_v15 = vpop.f32.mrf.mxu1 }
  0xf7   :  { %v873_v14 = vadd.f32 %v1532_v11, %v2237_v49  ;;  %v1596_v16 = vadd.f32 %v1595_v15, %v1594_v12 }
  0xf8   :  { %v2264_v17 = vpop.f32.mrf.mxu0  ;;  %v2266_v18 = vpop.f32.mrf.mxu1 }
  0xf9   :  { %v2268_v19 = vadd.f32 %v1596_v16, %v873_v14 }
  0xfa   :  { %v1536_v20 = vpop.f32.mrf.mxu0  ;;  %v2270_v21 = vpop.f32.mrf.mxu1 }
  0xfc   :  { %v1537_v22 = vpop.f32.mrf.mxu0  ;;  %v1600_v24 = vpop.f32.mrf.mxu1 }
  0xfd   :  { %v1538_v23 = vadd.f32 %v1537_v22, %v1536_v20 }
  0xfe   :  { %v2272_v25 = vpop.f32.mrf.mxu0  ;;  %v1601_v27 = vpop.f32.mrf.mxu1 }
  0xff   :  { %v881_v26 = vadd.f32 %v1538_v23, %v2237_v49  ;;  %v1602_v28 = vadd.f32 %v1601_v27, %v1600_v24 }
 0x100   :  { %v2275_v29 = vpop.f32.mrf.mxu0  ;;  %v2277_v30 = vpop.f32.mrf.mxu1 }
 0x101   :  { %v2279_v31 = vadd.f32 %v1602_v28, %v881_v26 }
 0x102   :  { %v1542_v32 = vpop.f32.mrf.mxu0  ;;  %v2281_v33 = vpop.f32.mrf.mxu1 }
 0x104   :  { %v1543_v34 = vpop.f32.mrf.mxu0  ;;  %v1606_v36 = vpop.f32.mrf.mxu1 }
 0x105   :  { %v1544_v35 = vadd.f32 %v1543_v34, %v1542_v32 }
 0x106   :  { %v2283_v37 = vpop.f32.mrf.mxu0  ;;  %v1607_v39 = vpop.f32.mrf.mxu1 }
 0x107   :  { %v889_v38 = vadd.f32 %v1544_v35, %v2237_v49  ;;  %v1608_v40 = vadd.f32 %v1607_v39, %v1606_v36  ;;  %v1523_v35 = vadd.f32 %v2242_v57, %v2239_v53 }
 0x108   :  { %v2286_v41 = vpop.f32.mrf.mxu0  ;;  %v2288_v42 = vpop.f32.mrf.mxu1 }
 0x109   :  { %v2290_v43 = vadd.f32 %v1608_v40, %v889_v38 }
 0x10a   :  { %v1548_v44 = vpop.f32.mrf.mxu0  ;;  %v2292_v45 = vpop.f32.mrf.mxu1 }
 0x10c   :  { %v1549_v46 = vpop.f32.mrf.mxu0  ;;  %v1612_v48 = vpop.f32.mrf.mxu1 }
 0x10d   :  { %v1550_v47 = vadd.f32 %v1549_v46, %v1548_v44  ;;  %v860_v46 = vadd.f32 %v1523_v35, %v2237_v49 }
 0x10e   :  { %v2294_v50 = vpop.f32.mrf.mxu0  ;;  %v1613_v52 = vpop.f32.mrf.mxu1 }
 0x10f   :  { %v897_v51 = vadd.f32 %v1550_v47, %v2237_v49  ;;  %v1614_v54 = vadd.f32 %v1613_v52, %v1612_v48  ;;  %v1587_v47 = vadd.f32 %v2248_v61, %v2244_v58  ;;  %v1593_v61 = vadd.f32 %v2259_v9, %v2255_v6 }
 0x110   :  { %v2297_v55 = vpop.f32.mrf.mxu0  ;;  %v2299_v56 = vpop.f32.mrf.mxu1 }
 0x111   :  { %v2301_v60 = vadd.f32 %v1614_v54, %v897_v51  ;;  %v957_v57 = vadd.f32 %v1587_v47, %v860_v46 }
 0x112   :  { %v1554_v62 = vpop.f32.mrf.mxu0  ;;  %v2303_v63 = vpop.f32.mrf.mxu1 }
 0x114   :  { %v1555_v0 = vpop.f32.mrf.mxu0  ;;  %v1618_v3 = vpop.f32.mrf.mxu1 }
 0x115   :  { %v1556_v2 = vadd.f32 %v1555_v0, %v1554_v62  ;;  %v1529_v0 = vadd.f32 %v2253_v5, %v2250_v1 }
 0x116   :  { %v2305_v4 = vpop.f32.mrf.mxu0  ;;  %v1619_v10 = vpop.f32.mrf.mxu1 }
 0x117   :  { %v905_v8 = vadd.f32 %v1556_v2, %v2237_v49  ;;  %v1620_v11 = vadd.f32 %v1619_v10, %v1618_v3  ;;  %v868_v58 = vadd.f32 %v1529_v0, %v2237_v49 }
 0x118   :  { %v2308_v12 = vpop.f32.mrf.mxu0  ;;  %v2310_v14 = vpop.f32.mrf.mxu1 }
 0x119   :  { %v2312_v15 = vadd.f32 %v1620_v11, %v905_v8  ;;  %v965_v35 = vadd.f32 %v1593_v61, %v868_v58 }
 0x11a   :  { %v1560_v16 = vpop.f32.mrf.mxu0  ;;  %v2314_v20 = vpop.f32.mrf.mxu1 }
 0x11c   :  { %v1561_v22 = vpop.f32.mrf.mxu0  ;;  %v1624_v24 = vpop.f32.mrf.mxu1 }
 0x11d   :  { %v1562_v23 = vadd.f32 %v1561_v22, %v1560_v16 }
 0x11e   :  { %v2316_v26 = vpop.f32.mrf.mxu0  ;;  %v1625_v28 = vpop.f32.mrf.mxu1 }
 0x11f   :  { %v913_v27 = vadd.f32 %v1562_v23, %v2237_v49  ;;  %v1626_v32 = vadd.f32 %v1625_v28, %v1624_v24 }
 0x120   :  { %v2319_v34 = vpop.f32.mrf.mxu0  ;;  %v2323_v36 = vpop.f32.mrf.mxu1 }
 0x121   :  { %v2325_v38 = vadd.f32 %v1626_v32, %v913_v27 }
 0x122   :  { %v1646_v39 = vpop.f32.mrf.mxu0  ;;  %v2327_v40 = vpop.f32.mrf.mxu1 }
 0x124   :  { %v1647_v44 = vpop.f32.mrf.mxu0  ;;  %v1728_v51 = vpop.f32.mrf.mxu1 }
 0x125   :  { %v1648_v48 = vadd.f32 %v1647_v44, %v1646_v39  ;;  %v1535_v39 = vadd.f32 %v2264_v17, %v2261_v13 }
 0x126   :  { %v1649_v52 = vpop.f32.mrf.mxu0  ;;  %v1147_v62 = vpop.f32.mrf.mxu1 }
 0x127   :  { %v1051_v54 = vadd.f32 %v1648_v48, %v2246_v59 }
 0x128   :  { %v1650_v53 = vpop.f32.mrf.mxu0  ;;  %v1729_v3 = vpop.f32.mrf.mxu1 }
 0x129   :  { %v1651_v2 = vadd.f32 %v1650_v53, %v1649_v52  ;;  %v1148_v10 = vadd.f32 %v1147_v62, %v1051_v54  ;;  %v876_v54 = vadd.f32 %v1535_v39, %v2237_v49 }
 0x12a   :  { %v1652_v8 = vpop.f32.mrf.mxu0  ;;  %v1150_v16 = vpop.f32.mrf.mxu1 }
 0x12b   :  { %v1054_v11 = vadd.f32 %v1651_v2, %v957_v57  ;;  %v1210_v28 = vmax.f32 %v1148_v10, 0.0  ;;  %v1541_v10 = vadd.f32 %v2275_v29, %v2272_v25 }
 0x12c   :  { %v1653_v22 = vpop.f32.mrf.mxu0  ;;  %v1732_v27 = vpop.f32.mrf.mxu1 }
 0x12d   :  { %v1654_v23 = vadd.f32 %v1653_v22, %v1652_v8  ;;  %v1151_v59 = vadd.f32 %v1150_v16, %v1054_v11  ;;  %v884_v61 = vadd.f32 %v1541_v10, %v2237_v49 }
 0x12e   :  { %v1655_v24 = vpop.f32.mrf.mxu0  ;;  %v1163_v48 = vpop.f32.mrf.mxu1 }
 0x12f   :  { %v1059_v32 = vadd.f32 %v1654_v23, %v2257_v7  ;;  %v1211_v1 = vmax.f32 %v1151_v59, 0.0  ;;  %v1599_v7 = vadd.f32 %v2270_v21, %v2266_v18 }
 0x130   :  { %v1656_v5 = vpop.f32.mrf.mxu0  ;;  %v1733_v13 = vpop.f32.mrf.mxu1 }
 0x131   :  { %v1458_v44 = vpack.c.bf16 %v1211_v1, %v1210_v28  ;;  %v1657_v46 = vadd.f32 %v1656_v5, %v1655_v24  ;;  %v1156_v52 = vadd.f32 %v1728_v51, %v1059_v32  ;;  %v973_v8 = vadd.f32 %v1599_v7, %v876_v54 }
 0x132   :  { %v1658_v47 = vpop.f32.mrf.mxu0  ;;  %v1166_v58 = vpop.f32.mrf.mxu1 }
 0x133   :  { %1459 = vst [vmem:[%s2402_s3] sm:$0xff] %v1458_v44   ;;  %v1062_v6 = vadd.f32 %v1657_v46, %v965_v35  ;;  %v1212_v17 = vmax.f32 %v1156_v52, 0.0  ;;  %v1547_v35 = vadd.f32 %v2286_v41, %v2283_v37 }
 0x134   :  { %v1659_v9 = vpop.f32.mrf.mxu0  ;;  %v1736_v25 = vpop.f32.mrf.mxu1 }
 0x135   :  { %v1159_v62 = vadd.f32 %v1729_v3, %v1062_v6  ;;  %v1660_v53 = vadd.f32 %v1659_v9, %v1658_v47  ;;  %v892_v52 = vadd.f32 %v1547_v35, %v2237_v49 }
 0x136   :  { %v1661_v57 = vpop.f32.mrf.mxu0  ;;  %v1179_v47 = vpop.f32.mrf.mxu1 }
 0x137   :  { %v1213_v0 = vmax.f32 %v1159_v62, 0.0  ;;  %v1067_v2 = vadd.f32 %v1660_v53, %v2268_v19  ;;  %v1605_v19 = vadd.f32 %v2281_v33, %v2277_v30 }
 0x138   :  { %v1662_v51 = vpop.f32.mrf.mxu0  ;;  %v1737_v37 = vpop.f32.mrf.mxu1 }
 0x139   :  { %v1463_v11 = vpack.c.bf16 %v1213_v0, %v1212_v17  ;;  %v1663_v16 = vadd.f32 %v1662_v51, %v1661_v57  ;;  %v1164_v18 = vadd.f32 %v1163_v48, %v1067_v2  ;;  %v981_v5 = vadd.f32 %v1605_v19, %v884_v61 }
 0x13a   :  { %v1664_v22 = vpop.f32.mrf.mxu0  ;;  %v1553_v57 = vadd.f32 %v2297_v55, %v2294_v50  ;;  %v1182_v51 = vpop.f32.mrf.mxu1 }
 0x13b   :  { %1495 = vst [vmem:[%s2402_s3 + $0x8] sm:$0xff] %v1463_v11   ;;  %v1070_v21 = vadd.f32 %v1663_v16, %v973_v8  ;;  %v1214_v29 = vmax.f32 %v1164_v18, 0.0 }
 0x13c   :  { %v1665_v3 = vpop.f32.mrf.mxu0  ;;  %v900_v8 = vadd.f32 %v1553_v57, %v2237_v49  ;;  %v1740_v50 = vpop.f32.mrf.mxu1 }
 0x13d   :  { %v1666_v23 = vadd.f32 %v1665_v3, %v1664_v22  ;;  %v1167_v59 = vadd.f32 %v1166_v58, %v1070_v21  ;;  %v1559_v3 = vadd.f32 %v2308_v12, %v2305_v4 }
 0x13e   :  { %v1667_v24 = vpop.f32.mrf.mxu0 }
 0x13f   :  { %v1075_v28 = vadd.f32 %v1666_v23, %v2279_v31  ;;  %v1215_v32 = vmax.f32 %v1167_v59, 0.0  ;;  %v1611_v31 = vadd.f32 %v2292_v45, %v2288_v42  ;;  %v1195_v59 = vpop.f32.mrf.mxu1 }
 0x140   :  { %v1668_v1 = vpop.f32.mrf.mxu0 }
 0x141   :  { %v1468_v39 = vpack.c.bf16 %v1215_v32, %v1214_v29  ;;  %v1669_v44 = vadd.f32 %v1668_v1, %v1667_v24  ;;  %v1172_v48 = vadd.f32 %v1732_v27, %v1075_v28  ;;  %v989_v53 = vadd.f32 %v1611_v31, %v892_v52  ;;  %v1741_v4 = vpop.f32.mrf.mxu1 }
 0x142   :  { %v1670_v46 = vpop.f32.mrf.mxu0  ;;  %v908_v29 = vadd.f32 %v1559_v3, %v2237_v49 }
 0x143   :  { %1496 = vst [vmem:[%s2402_s3 + $0x10] sm:$0xff] %v1468_v39   ;;  %v1078_v30 = vadd.f32 %v1669_v44, %v981_v5  ;;  %v1216_v41 = vmax.f32 %v1172_v48, 0.0  ;;  %v1565_v44 = vadd.f32 %v2319_v34, %v2316_v26 }
 0x144   :  { %v1671_v33 = vpop.f32.mrf.mxu0 }
 0x145   :  { %v1175_v6 = vadd.f32 %v1733_v13, %v1078_v30  ;;  %v1672_v9 = vadd.f32 %v1671_v33, %v1670_v46  ;;  %v1198_v30 = vpop.f32.mrf.mxu1  ;;  %v916_v52 = vadd.f32 %v1565_v44, %v2237_v49 }
 0x146   :  { %v1673_v54 = vpop.f32.mrf.mxu0 }
 0x147   :  { %v1217_v7 = vmax.f32 %v1175_v6, 0.0  ;;  %v1083_v62 = vadd.f32 %v1672_v9, %v2290_v43  ;;  %v1617_v43 = vadd.f32 %v2303_v63, %v2299_v56 }
 0x148   :  { %v1674_v27 = vpop.f32.mrf.mxu0 }
 0x149   :  { %v1473_v17 = vpack.c.bf16 %v1217_v7, %v1216_v41  ;;  %v1675_v0 = vadd.f32 %v1674_v27, %v1673_v54  ;;  %v1180_v42 = vadd.f32 %v1179_v47, %v1083_v62  ;;  %v997_v21 = vadd.f32 %v1617_v43, %v900_v8 }
 0x14a   :  { %v1676_v2 = vpop.f32.mrf.mxu0 }
 0x14b   :  { %1497 = vst [vmem:[%s2402_s3 + $0x18] sm:$0xff] %v1473_v17   ;;  %v1086_v45 = vadd.f32 %v1675_v0, %v989_v53  ;;  %v1218_v55 = vmax.f32 %v1180_v42, 0.0 }
 0x14c   :  { %v1677_v13 = vpop.f32.mrf.mxu0 }
 0x14d   :  { %v1678_v10 = vadd.f32 %v1677_v13, %v1676_v2  ;;  %v1183_v11 = vadd.f32 %v1182_v51, %v1086_v45 }
 0x14e   :  { %v1679_v16 = vpop.f32.mrf.mxu0 }
 0x14f   :  { %v1091_v22 = vadd.f32 %v1678_v10, %v2301_v60  ;;  %v1219_v58 = vmax.f32 %v1183_v11, 0.0  ;;  %v1623_v60 = vadd.f32 %v2314_v20, %v2310_v14 }
 0x150   :  { %v1680_v18 = vpop.f32.mrf.mxu0 }
 0x151   :  { %v1478_v61 = vpack.c.bf16 %v1219_v58, %v1218_v55  ;;  %v1681_v19 = vadd.f32 %v1680_v18, %v1679_v16  ;;  %v1188_v24 = vadd.f32 %v1736_v25, %v1091_v22  ;;  %v1005_v39 = vadd.f32 %v1623_v60, %v908_v29 }
 0x152   :  { %v1682_v23 = vpop.f32.mrf.mxu0 }
 0x153   :  { %1498 = vst [vmem:[%s2402_s3 + $0x20] sm:$0xff] %v1478_v61   ;;  %v1094_v56 = vadd.f32 %v1681_v19, %v997_v21  ;;  %v1220_v12 = vmax.f32 %v1188_v24, 0.0 }
 0x154   :  { %v1683_v63 = vpop.f32.mrf.mxu0 }
 0x155   :  { %v1191_v28 = vadd.f32 %v1737_v37, %v1094_v56  ;;  %v1684_v32 = vadd.f32 %v1683_v63, %v1682_v23 }
 0x156   :  { %v1685_v1 = vpop.f32.mrf.mxu0 }
 0x157   :  { %v1221_v5 = vmax.f32 %v1191_v28, 0.0  ;;  %v1099_v35 = vadd.f32 %v1684_v32, %v2312_v15  ;;  %v1629_v15 = vadd.f32 %v2327_v40, %v2323_v36 }
 0x158   :  { %v1686_v25 = vpop.f32.mrf.mxu0 }
 0x159   :  { %v1483_v46 = vpack.c.bf16 %v1221_v5, %v1220_v12  ;;  %v1687_v47 = vadd.f32 %v1686_v25, %v1685_v1  ;;  %v1196_v14 = vadd.f32 %v1195_v59, %v1099_v35  ;;  %v1013_v41 = vadd.f32 %v1629_v15, %v916_v52 }
 0x15a   :  { %v1688_v48 = vpop.f32.mrf.mxu0 }
 0x15b   :  { %1499 = vst [vmem:[%s2402_s3 + $0x28] sm:$0xff] %v1483_v46   ;;  %v1102_v20 = vadd.f32 %v1687_v47, %v1005_v39  ;;  %v1222_v26 = vmax.f32 %v1196_v14, 0.0 }
 0x15c   :  { %v1689_v33 = vpop.f32.mrf.mxu0 }
 0x15d   :  { %v1690_v31 = vadd.f32 %v1689_v33, %v1688_v48  ;;  %v1199_v6 = vadd.f32 %v1198_v30, %v1102_v20 }
 0x15e   :  { %v1691_v9 = vpop.f32.mrf.mxu0 }
 0x15f   :  { %v1107_v34 = vadd.f32 %v1690_v31, %v2325_v38  ;;  %v1223_v54 = vmax.f32 %v1199_v6, 0.0 }
 0x160   :  { %v1692_v37 = vpop.f32.mrf.mxu0 }
 0x161   :  { %v1488_v7 = vpack.c.bf16 %v1223_v54, %v1222_v26  ;;  %v1693_v62 = vadd.f32 %v1692_v37, %v1691_v9  ;;  %v1204_v27 = vadd.f32 %v1740_v50, %v1107_v34 }
 0x163   :  { %1500 = vst [vmem:[%s2402_s3 + $0x30] sm:$0xff] %v1488_v7   ;;  %v1110_v49 = vadd.f32 %v1693_v62, %v1013_v41  ;;  %v1224_v57 = vmax.f32 %v1204_v27, 0.0 }
 0x165   :  { %v1207_v53 = vadd.f32 %v1741_v4, %v1110_v49 }
 0x167   :  { %v1225_v36 = vmax.f32 %v1207_v53, 0.0 }
 0x169   :  { %v1493_v40 = vpack.c.bf16 %v1225_v36, %v1224_v57 }
 0x16b   :  { %1501 = vst [vmem:[%s2402_s3 + $0x38] sm:$0xff] %v1493_v40  }

// kernel: autoencoder3d_forward.11
= control target key start
LH: loop header
LB: loop body
LE: loop exit
PB: predicated region body
PF: predicated region fallthrough
CT: control target
= control target key end

     0   :  { %s3048_s12 = smov 0   ;;  %s3469_s0 = inlined_call_operand.vmem [shape: bf16[1024,512], index: 0, kind: input, shape index: {}]   ;;  %s3470_s1 = inlined_call_operand.vmem [shape: bf16[512,128], index: 1, kind: input, shape index: {}]   ;;  %s3471_s2 = inlined_call_operand.vmem [shape: f32[1,128], index: 2, kind: input, shape index: {}]   ;;  %s3472_s3 = inlined_call_operand.vmem [shape: f32[1024,128], index: 3, kind: output, shape index: {}]  }
   0x1 LB: > { %s2291_s13 = sadd.s32 4294967295, %s3025_s12   ;;  %p2295_p0 = scmp.ge.s32.totalorder %s3025_s12, 1  ;;  %s3025_s12 = sphi %s3048_s12, %s13_s12  }
   0x2   : > { %p139_p1 = scmp.lt.s32.totalorder %s3025_s12, 3 }
   0x4   : > { %p140_p2 = pnand %p2295_p0, %p139_p1 }
   0x5   : > { %s2296_s7 = sshll.u32 (!%p140_p2), %s2291_s13, 6 }
   0x6   : > { %143 = sbr.rel (%p140_p2) target bundleno = 559 (0x22f), region = 32  ;;  %p165_p3 = scmp.lt.s32.totalorder (!%p140_p2), %s2296_s7, 127 }
   0xb   : > { %v2538_v0 = vld [vmem:[%s3470_s1 + $0x38] sm:$0xff]   ;;  %v3027_v1 = vmov 0   ;;  %v2540_v3 = vld [vmem:[%s3470_s1 + $0x30] sm:$0xff]   ;;  %v2542_v5 = vld [vmem:[%s3470_s1 + $0x28] sm:$0xff]   ;;  %s3474_s7 = smov (!%p165_p3, %s2296_s7), 127 }
   0xc   : > { %1209 = vmatprep.subr.bf16.mxu0 %v3027_v1  ;;  %1498 = vmatprep.subr.bf16.mxu1 %v3027_v1  ;;  %v2539_v2 = vld [vmem:[%s3470_s1 + $0xb8] sm:$0xff]   ;;  %v2541_v4 = vld [vmem:[%s3470_s1 + $0xb0] sm:$0xff]   ;;  %v2543_v6 = vld [vmem:[%s3470_s1 + $0xa8] sm:$0xff]   ;;  %s2528_s21 = sshll.u32 %s3474_s7, 4  ;;  %s2300_s9 = sshll.u32 %s3474_s7, 3 }
   0xd   : > { %1210 = vmatpush1.bf16.msra.mxu0 %v2538_v0  ;;  %1499 = vmatpush1.bf16.msra.mxu1 %v2539_v2  ;;  %v2544_v7 = vld [vmem:[%s3470_s1 + $0x20] sm:$0xff]   ;;  %v2546_v9 = vld [vmem:[%s3470_s1 + $0x18] sm:$0xff]   ;;  %v2548_v11 = vld [vmem:[%s3470_s1 + $0x10] sm:$0xff]   ;;  %s3131_s26 = scalar_lea.vmem %s3469_s0, %s2528_s21  ;;  %s3330_s7 = scalar_lea.vmem %s3472_s3, %s2300_s9 }
   0xe   : > { %1211 = vmatprep.subr.bf16.mxu0 %v3027_v1  ;;  %1500 = vmatprep.subr.bf16.mxu1 %v3027_v1  ;;  %v2545_v8 = vld [vmem:[%s3470_s1 + $0xa0] sm:$0xff]   ;;  %v2547_v10 = vld [vmem:[%s3470_s1 + $0x98] sm:$0xff]   ;;  %v2549_v12 = vld [vmem:[%s3470_s1 + $0x90] sm:$0xff]  }
   0xf   : > { %v2550_v13 = vld [vmem:[%s3470_s1 + $0x8] sm:$0xff]   ;;  %v2552_v15 = vld [vmem:[%s3470_s1] sm:$0xff]   ;;  %v2554_v17 = vld [vmem:[%s3470_s1 + $0x78] sm:$0xff]  }
  0x10   : > { %v2551_v14 = vld [vmem:[%s3470_s1 + $0x88] sm:$0xff]   ;;  %v2553_v16 = vld [vmem:[%s3470_s1 + $0x80] sm:$0xff]   ;;  %v2555_v18 = vld [vmem:[%s3470_s1 + $0xf8] sm:$0xff]  }
  0x11   : > { %1212 = vmatpush1.bf16.msra.mxu0 %v2540_v3  ;;  %1501 = vmatpush1.bf16.msra.mxu1 %v2541_v4  ;;  %v2572_v19 = vld [vmem:[%s3131_s26 + $0x4] ss:$16 sps:$4 sm:$0xff]   ;;  %v2575_v21 = vld [vmem:[%s3131_s26 + $0xc] ss:$16 sps:$4 sm:$0xff]   ;;  %v2570_v35 = vld [vmem:[%s3131_s26] ss:$16 sps:$4 sm:$0xff]  }
  0x12   : > { %1213 = vmatprep.subr.bf16.mxu0 %v3027_v1  ;;  %1502 = vmatprep.subr.bf16.mxu1 %v3027_v1  ;;  %v2556_v20 = vld [vmem:[%s3470_s1 + $0x70] sm:$0xff]   ;;  %v2558_v23 = vld [vmem:[%s3470_s1 + $0x68] sm:$0xff]   ;;  %v2560_v25 = vld [vmem:[%s3470_s1 + $0x60] sm:$0xff]  }
  0x13   : > { %v2557_v22 = vld [vmem:[%s3470_s1 + $0xf0] sm:$0xff]   ;;  %1241 = vmatprep.mubr.bf16.mxu0 %v2572_v19  ;;  %1530 = vmatprep.mubr.bf16.mxu1 %v2575_v21  ;;  %v2559_v24 = vld [vmem:[%s3470_s1 + $0xe8] sm:$0xff]   ;;  %v2561_v26 = vld [vmem:[%s3470_s1 + $0xe0] sm:$0xff]  }
  0x14   : > { %v2562_v27 = vld [vmem:[%s3470_s1 + $0x58] sm:$0xff]   ;;  %v2564_v29 = vld [vmem:[%s3470_s1 + $0x50] sm:$0xff]   ;;  %v2566_v31 = vld [vmem:[%s3470_s1 + $0x48] sm:$0xff]  }
  0x15   : > { %1214 = vmatpush1.bf16.msra.mxu0 %v2542_v5  ;;  %1503 = vmatpush1.bf16.msra.mxu1 %v2543_v6  ;;  %v2563_v28 = vld [vmem:[%s3470_s1 + $0xd8] sm:$0xff]   ;;  %v2565_v30 = vld [vmem:[%s3470_s1 + $0xd0] sm:$0xff]   ;;  %v2567_v32 = vld [vmem:[%s3470_s1 + $0xc8] sm:$0xff]  }
  0x16   : > { %1215 = vmatprep.subr.bf16.mxu0 %v3027_v1  ;;  %1504 = vmatprep.subr.bf16.mxu1 %v3027_v1  ;;  %v2568_v33 = vld [vmem:[%s3470_s1 + $0x40] sm:$0xff]   ;;  %v2573_v36 = vld [vmem:[%s3131_s26 + $0x8] ss:$16 sps:$4 sm:$0xff]   ;;  %v2578_v38 = vld [vmem:[%s3131_s26 + $0x2c] ss:$16 sps:$4 sm:$0xff]  }
  0x17   : > { %v2569_v34 = vld [vmem:[%s3470_s1 + $0xc0] sm:$0xff]   ;;  %v2581_v40 = vld [vmem:[%s3131_s26 + $0x28] ss:$16 sps:$4 sm:$0xff]   ;;  %v2584_v42 = vld [vmem:[%s3131_s26 + $0x4c] ss:$16 sps:$4 sm:$0xff]  }
  0x18   : > { %v2576_v37 = vld [vmem:[%s3131_s26 + $0x24] ss:$16 sps:$4 sm:$0xff]   ;;  %v2580_v39 = vld [vmem:[%s3131_s26 + $0x20] ss:$16 sps:$4 sm:$0xff]   ;;  %v2587_v44 = vld [vmem:[%s3131_s26 + $0x48] ss:$16 sps:$4 sm:$0xff]  }
  0x19   : > { %1216 = vmatpush1.bf16.msra.mxu0 %v2544_v7  ;;  %1505 = vmatpush1.bf16.msra.mxu1 %v2545_v8  ;;  %v2582_v41 = vld [vmem:[%s3131_s26 + $0x44] ss:$16 sps:$4 sm:$0xff]   ;;  %v2586_v43 = vld [vmem:[%s3131_s26 + $0x40] ss:$16 sps:$4 sm:$0xff]   ;;  %v2590_v46 = vld [vmem:[%s3131_s26 + $0x6c] ss:$16 sps:$4 sm:$0xff]  }
  0x1a   : > { %1217 = vmatprep.subr.bf16.mxu0 %v3027_v1  ;;  %1506 = vmatprep.subr.bf16.mxu1 %v3027_v1  ;;  %v2588_v45 = vld [vmem:[%s3131_s26 + $0x64] ss:$16 sps:$4 sm:$0xff]   ;;  %v2592_v47 = vld [vmem:[%s3131_s26 + $0x60] ss:$16 sps:$4 sm:$0xff]   ;;  %v2593_v48 = vld [vmem:[%s3131_s26 + $0x68] ss:$16 sps:$4 sm:$0xff]  }
  0x1b   : > { %v2594_v49 = vld [vmem:[%s3131_s26 + $0x84] ss:$16 sps:$4 sm:$0xff]   ;;  %v2596_v50 = vld [vmem:[%s3131_s26 + $0x8c] ss:$16 sps:$4 sm:$0xff]   ;;  %v2598_v51 = vld [vmem:[%s3131_s26 + $0x80] ss:$16 sps:$4 sm:$0xff]  }
  0x1c   : > { %v2599_v52 = vld [vmem:[%s3131_s26 + $0x88] ss:$16 sps:$4 sm:$0xff]   ;;  %v2600_v53 = vld [vmem:[%s3131_s26 + $0xa4] ss:$16 sps:$4 sm:$0xff]   ;;  %v2602_v54 = vld [vmem:[%s3131_s26 + $0xac] ss:$16 sps:$4 sm:$0xff]  }
  0x1d   : > { %1218 = vmatpush1.bf16.msra.mxu0 %v2546_v9  ;;  %1507 = vmatpush1.bf16.msra.mxu1 %v2547_v10  ;;  %v2604_v55 = vld [vmem:[%s3131_s26 + $0xa0] ss:$16 sps:$4 sm:$0xff]   ;;  %v2605_v56 = vld [vmem:[%s3131_s26 + $0xa8] ss:$16 sps:$4 sm:$0xff]   ;;  %v2606_v57 = vld [vmem:[%s3131_s26 + $0xc4] ss:$16 sps:$4 sm:$0xff]  }
  0x1e   : > { %1219 = vmatprep.subr.bf16.mxu0 %v3027_v1  ;;  %1508 = vmatprep.subr.bf16.mxu1 %v3027_v1  ;;  %v2608_v58 = vld [vmem:[%s3131_s26 + $0xcc] ss:$16 sps:$4 sm:$0xff]   ;;  %v2610_v59 = vld [vmem:[%s3131_s26 + $0xc0] ss:$16 sps:$4 sm:$0xff]   ;;  %v2611_v60 = vld [vmem:[%s3131_s26 + $0xc8] ss:$16 sps:$4 sm:$0xff]  }
  0x1f   : > { %v2612_v61 = vld [vmem:[%s3131_s26 + $0xe4] ss:$16 sps:$4 sm:$0xff]   ;;  %v2614_v62 = vld [vmem:[%s3131_s26 + $0xec] ss:$16 sps:$4 sm:$0xff]   ;;  %v2616_v63 = vld [vmem:[%s3131_s26 + $0xe0] ss:$16 sps:$4 sm:$0xff]  }
  0x20   : > { %v2617_v0 = vld [vmem:[%s3131_s26 + $0xe8] ss:$16 sps:$4 sm:$0xff]   ;;  %v2620_v2 = vld [vmem:[%s3131_s26 + $0x10c] ss:$16 sps:$4 sm:$0xff]   ;;  %v2622_v3 = vld [vmem:[%s3131_s26 + $0x100] ss:$16 sps:$4 sm:$0xff]  }
  0x21   : > { %1220 = vmatpush1.bf16.msra.mxu0 %v2548_v11  ;;  %1509 = vmatpush1.bf16.msra.mxu1 %v2549_v12  ;;  %v2623_v4 = vld [vmem:[%s3131_s26 + $0x108] ss:$16 sps:$4 sm:$0xff]   ;;  %v2624_v5 = vld [vmem:[%s3131_s26 + $0x124] ss:$16 sps:$4 sm:$0xff]   ;;  %v2626_v6 = vld [vmem:[%s3131_s26 + $0x12c] ss:$16 sps:$4 sm:$0xff]  }
  0x22   : > { %1221 = vmatprep.subr.bf16.mxu0 %v3027_v1  ;;  %1510 = vmatprep.subr.bf16.mxu1 %v3027_v1  ;;  %v2628_v7 = vld [vmem:[%s3131_s26 + $0x120] ss:$16 sps:$4 sm:$0xff]   ;;  %v2629_v8 = vld [vmem:[%s3131_s26 + $0x128] ss:$16 sps:$4 sm:$0xff]   ;;  %v2630_v9 = vld [vmem:[%s3131_s26 + $0x144] ss:$16 sps:$4 sm:$0xff]  }
  0x23   : > { %v2632_v10 = vld [vmem:[%s3131_s26 + $0x14c] ss:$16 sps:$4 sm:$0xff]   ;;  %v2634_v11 = vld [vmem:[%s3131_s26 + $0x140] ss:$16 sps:$4 sm:$0xff]   ;;  %v2635_v12 = vld [vmem:[%s3131_s26 + $0x148] ss:$16 sps:$4 sm:$0xff]  }
  0x24   : > { %v2646_v19 = vld [vmem:[%s3131_s26 + $0x180] ss:$16 sps:$4 sm:$0xff]   ;;  %v2648_v21 = vld [vmem:[%s3131_s26 + $0x1a4] ss:$16 sps:$4 sm:$0xff]  }
  0x25   : > { %1222 = vmatpush1.bf16.msra.mxu0 %v2550_v13  ;;  %1511 = vmatpush1.bf16.msra.mxu1 %v2551_v14  ;;  %v2636_v13 = vld [vmem:[%s3131_s26 + $0x164] ss:$16 sps:$4 sm:$0xff]   ;;  %v2638_v14 = vld [vmem:[%s3131_s26 + $0x16c] ss:$16 sps:$4 sm:$0xff]  }
  0x26   : > { %1223 = vmatprep.subr.bf16.mxu0 %v3027_v1  ;;  %1512 = vmatprep.subr.bf16.mxu1 %v3027_v1 }
  0x29   : > { %1224 = vmatpush1.bf16.msra.mxu0 %v2552_v15  ;;  %1513 = vmatpush1.bf16.msra.mxu1 %v2553_v16  ;;  %v2640_v15 = vld [vmem:[%s3131_s26 + $0x160] ss:$16 sps:$4 sm:$0xff]   ;;  %v2641_v16 = vld [vmem:[%s3131_s26 + $0x168] ss:$16 sps:$4 sm:$0xff]  }
  0x2a   : > { %1225 = vmatprep.subr.bf16.mxu0 %v3027_v1  ;;  %1514 = vmatprep.subr.bf16.mxu1 %v3027_v1 }
  0x2d   : > { %1226 = vmatpush2.bf16.msra.mxu0 %v2554_v17  ;;  %1515 = vmatpush2.bf16.msra.mxu1 %v2555_v18  ;;  %v2642_v17 = vld [vmem:[%s3131_s26 + $0x184] ss:$16 sps:$4 sm:$0xff]   ;;  %v2644_v18 = vld [vmem:[%s3131_s26 + $0x18c] ss:$16 sps:$4 sm:$0xff]  }
  0x2e   : > { %1227 = vmatprep.subr.bf16.mxu0 %v3027_v1  ;;  %1516 = vmatprep.subr.bf16.mxu1 %v3027_v1 }
  0x31   : > { %1228 = vmatpush2.bf16.msra.mxu0 %v2556_v20  ;;  %1517 = vmatpush2.bf16.msra.mxu1 %v2557_v22  ;;  %v2647_v20 = vld [vmem:[%s3131_s26 + $0x188] ss:$16 sps:$4 sm:$0xff]   ;;  %v2650_v22 = vld [vmem:[%s3131_s26 + $0x1ac] ss:$16 sps:$4 sm:$0xff]  }
  0x32   : > { %1229 = vmatprep.subr.bf16.mxu0 %v3027_v1  ;;  %1518 = vmatprep.subr.bf16.mxu1 %v3027_v1 }
  0x35   : > { %1230 = vmatpush2.bf16.msra.mxu0 %v2558_v23  ;;  %1519 = vmatpush2.bf16.msra.mxu1 %v2559_v24  ;;  %v2652_v23 = vld [vmem:[%s3131_s26 + $0x1a0] ss:$16 sps:$4 sm:$0xff]   ;;  %v2653_v24 = vld [vmem:[%s3131_s26 + $0x1a8] ss:$16 sps:$4 sm:$0xff]  }
  0x36   : > { %1231 = vmatprep.subr.bf16.mxu0 %v3027_v1  ;;  %1520 = vmatprep.subr.bf16.mxu1 %v3027_v1 }
  0x39   : > { %1232 = vmatpush2.bf16.msra.mxu0 %v2560_v25  ;;  %1521 = vmatpush2.bf16.msra.mxu1 %v2561_v26  ;;  %v2654_v25 = vld [vmem:[%s3131_s26 + $0x1c4] ss:$16 sps:$4 sm:$0xff]   ;;  %v2656_v26 = vld [vmem:[%s3131_s26 + $0x1cc] ss:$16 sps:$4 sm:$0xff]  }
  0x3a   : > { %1233 = vmatprep.subr.bf16.mxu0 %v3027_v1  ;;  %1522 = vmatprep.subr.bf16.mxu1 %v3027_v1 }
  0x3d   : > { %1234 = vmatpush2.bf16.msra.mxu0 %v2562_v27  ;;  %1523 = vmatpush2.bf16.msra.mxu1 %v2563_v28  ;;  %v2658_v27 = vld [vmem:[%s3131_s26 + $0x1c0] ss:$16 sps:$4 sm:$0xff]   ;;  %v2659_v28 = vld [vmem:[%s3131_s26 + $0x1c8] ss:$16 sps:$4 sm:$0xff]  }
  0x3e   : > { %1235 = vmatprep.subr.bf16.mxu0 %v3027_v1  ;;  %1524 = vmatprep.subr.bf16.mxu1 %v3027_v1 }
  0x41   : > { %1236 = vmatpush2.bf16.msra.mxu0 %v2564_v29  ;;  %1525 = vmatpush2.bf16.msra.mxu1 %v2565_v30  ;;  %v2660_v29 = vld [vmem:[%s3131_s26 + $0x1e4] ss:$16 sps:$4 sm:$0xff]   ;;  %v2662_v30 = vld [vmem:[%s3131_s26 + $0x1ec] ss:$16 sps:$4 sm:$0xff]  }
  0x42   : > { %1237 = vmatprep.subr.bf16.mxu0 %v3027_v1  ;;  %1526 = vmatprep.subr.bf16.mxu1 %v3027_v1 }
  0x45   : > { %1238 = vmatpush2.bf16.msra.mxu0 %v2566_v31  ;;  %1527 = vmatpush2.bf16.msra.mxu1 %v2567_v32  ;;  %v2664_v31 = vld [vmem:[%s3131_s26 + $0x1e0] ss:$16 sps:$4 sm:$0xff]   ;;  %v2665_v32 = vld [vmem:[%s3131_s26 + $0x1e8] ss:$16 sps:$4 sm:$0xff]  }
  0x46   : > { %1239 = vmatprep.subr.bf16.mxu0 %v3027_v1  ;;  %1528 = vmatprep.subr.bf16.mxu1 %v3027_v1  ;;  %v2618_v1 = vld [vmem:[%s3131_s26 + $0x104] ss:$16 sps:$4 sm:$0xff]  }
  0x49   : > { %1240 = vmatpush2.bf16.msra.mxu0 %v2568_v33  ;;  %1529 = vmatpush2.bf16.msra.mxu1 %v2569_v34  ;;  %v2666_v33 = vld [vmem:[%s3131_s26 + $0x204] ss:$16 sps:$4 sm:$0xff]   ;;  %v2668_v34 = vld [vmem:[%s3131_s26 + $0x20c] ss:$16 sps:$4 sm:$0xff]  }
  0x4c   : > { %1242 = vmatmul.mubr.bf16.vlgmr.msra.gmra.mxu0 %v2570_v35  ;;  %1531 = vmatmul.mubr.bf16.vlgmr.msra.gmra.mxu1 %v2573_v36  ;;  %v2670_v35 = vld [vmem:[%s3131_s26 + $0x200] ss:$16 sps:$4 sm:$0xff]   ;;  %v2671_v36 = vld [vmem:[%s3131_s26 + $0x208] ss:$16 sps:$4 sm:$0xff]  }
  0x4d   : > { %1249 = vmatprep.mubr.bf16.mxu0 %v2576_v37  ;;  %1538 = vmatprep.mubr.bf16.mxu1 %v2578_v38  ;;  %v2672_v37 = vld [vmem:[%s3131_s26 + $0x224] ss:$16 sps:$4 sm:$0xff]   ;;  %v2674_v38 = vld [vmem:[%s3131_s26 + $0x22c] ss:$16 sps:$4 sm:$0xff]  }
  0x54   : > { %1250 = vmatmul.mubr.bf16.gmra.mxu0 %v2580_v39  ;;  %1539 = vmatmul.mubr.bf16.gmra.mxu1 %v2581_v40  ;;  %v2676_v39 = vld [vmem:[%s3131_s26 + $0x220] ss:$16 sps:$4 sm:$0xff]   ;;  %v2677_v40 = vld [vmem:[%s3131_s26 + $0x228] ss:$16 sps:$4 sm:$0xff]  }
  0x55   : > { %1257 = vmatprep.mubr.bf16.mxu0 %v2582_v41  ;;  %1546 = vmatprep.mubr.bf16.mxu1 %v2584_v42  ;;  %v2678_v41 = vld [vmem:[%s3131_s26 + $0x244] ss:$16 sps:$4 sm:$0xff]   ;;  %v2680_v42 = vld [vmem:[%s3131_s26 + $0x24c] ss:$16 sps:$4 sm:$0xff]  }
  0x5c   : > { %1258 = vmatmul.mubr.bf16.gmra.mxu0 %v2586_v43  ;;  %1547 = vmatmul.mubr.bf16.gmra.mxu1 %v2587_v44  ;;  %v2682_v43 = vld [vmem:[%s3131_s26 + $0x240] ss:$16 sps:$4 sm:$0xff]   ;;  %v2683_v44 = vld [vmem:[%s3131_s26 + $0x248] ss:$16 sps:$4 sm:$0xff]  }
  0x5d   : > { %1265 = vmatprep.mubr.bf16.mxu0 %v2588_v45  ;;  %1554 = vmatprep.mubr.bf16.mxu1 %v2590_v46  ;;  %v2684_v45 = vld [vmem:[%s3131_s26 + $0x264] ss:$16 sps:$4 sm:$0xff]   ;;  %v2686_v46 = vld [vmem:[%s3131_s26 + $0x26c] ss:$16 sps:$4 sm:$0xff]  }
  0x64   : > { %1266 = vmatmul.mubr.bf16.gmra.mxu0 %v2592_v47  ;;  %1555 = vmatmul.mubr.bf16.gmra.mxu1 %v2593_v48  ;;  %v2688_v47 = vld [vmem:[%s3131_s26 + $0x260] ss:$16 sps:$4 sm:$0xff]   ;;  %v2689_v48 = vld [vmem:[%s3131_s26 + $0x268] ss:$16 sps:$4 sm:$0xff]  }
  0x65   : > { %1273 = vmatprep.mubr.bf16.mxu0 %v2594_v49  ;;  %1562 = vmatprep.mubr.bf16.mxu1 %v2596_v50  ;;  %v2690_v49 = vld [vmem:[%s3131_s26 + $0x284] ss:$16 sps:$4 sm:$0xff]   ;;  %v2692_v50 = vld [vmem:[%s3131_s26 + $0x28c] ss:$16 sps:$4 sm:$0xff]  }
  0x6c   : > { %1274 = vmatmul.mubr.bf16.gmra.mxu0 %v2598_v51  ;;  %1563 = vmatmul.mubr.bf16.gmra.mxu1 %v2599_v52  ;;  %v2694_v51 = vld [vmem:[%s3131_s26 + $0x280] ss:$16 sps:$4 sm:$0xff]   ;;  %v2695_v52 = vld [vmem:[%s3131_s26 + $0x288] ss:$16 sps:$4 sm:$0xff]  }
  0x6d   : > { %1281 = vmatprep.mubr.bf16.mxu0 %v2600_v53  ;;  %1570 = vmatprep.mubr.bf16.mxu1 %v2602_v54  ;;  %v2696_v53 = vld [vmem:[%s3131_s26 + $0x2a4] ss:$16 sps:$4 sm:$0xff]   ;;  %v2698_v54 = vld [vmem:[%s3131_s26 + $0x2ac] ss:$16 sps:$4 sm:$0xff]  }
  0x74   : > { %1282 = vmatmul.mubr.bf16.gmra.mxu0 %v2604_v55  ;;  %1571 = vmatmul.mubr.bf16.gmra.mxu1 %v2605_v56  ;;  %v2700_v55 = vld [vmem:[%s3131_s26 + $0x2a0] ss:$16 sps:$4 sm:$0xff]   ;;  %v2701_v56 = vld [vmem:[%s3131_s26 + $0x2a8] ss:$16 sps:$4 sm:$0xff]  }
  0x75   : > { %1289 = vmatprep.mubr.bf16.mxu0 %v2606_v57  ;;  %1578 = vmatprep.mubr.bf16.mxu1 %v2608_v58  ;;  %v2702_v57 = vld [vmem:[%s3131_s26 + $0x2c4] ss:$16 sps:$4 sm:$0xff]   ;;  %v2704_v58 = vld [vmem:[%s3131_s26 + $0x2cc] ss:$16 sps:$4 sm:$0xff]  }
  0x7c   : > { %1290 = vmatmul.mubr.bf16.gmra.mxu0 %v2610_v59  ;;  %1579 = vmatmul.mubr.bf16.gmra.mxu1 %v2611_v60  ;;  %v2706_v59 = vld [vmem:[%s3131_s26 + $0x2c0] ss:$16 sps:$4 sm:$0xff]   ;;  %v2707_v60 = vld [vmem:[%s3131_s26 + $0x2c8] ss:$16 sps:$4 sm:$0xff]  }
  0x7d   : > { %1297 = vmatprep.mubr.bf16.mxu0 %v2612_v61  ;;  %1586 = vmatprep.mubr.bf16.mxu1 %v2614_v62  ;;  %v2708_v61 = vld [vmem:[%s3131_s26 + $0x2e4] ss:$16 sps:$4 sm:$0xff]   ;;  %v2710_v62 = vld [vmem:[%s3131_s26 + $0x2ec] ss:$16 sps:$4 sm:$0xff]  }
  0x84   : > { %1298 = vmatmul.mubr.bf16.gmra.mxu0 %v2616_v63  ;;  %1587 = vmatmul.mubr.bf16.gmra.mxu1 %v2617_v0  ;;  %v2712_v63 = vld [vmem:[%s3131_s26 + $0x2e0] ss:$16 sps:$4 sm:$0xff]   ;;  %v2713_v0 = vld [vmem:[%s3131_s26 + $0x2e8] ss:$16 sps:$4 sm:$0xff]  }
  0x85   : > { %1305 = vmatprep.mubr.bf16.mxu0 %v2618_v1  ;;  %1594 = vmatprep.mubr.bf16.mxu1 %v2620_v2  ;;  %v2714_v1 = vld [vmem:[%s3131_s26 + $0x304] ss:$16 sps:$4 sm:$0xff]   ;;  %v2716_v2 = vld [vmem:[%s3131_s26 + $0x30c] ss:$16 sps:$4 sm:$0xff]  }
  0x8c   : > { %1306 = vmatmul.mubr.bf16.gmra.mxu0 %v2622_v3  ;;  %1595 = vmatmul.mubr.bf16.gmra.mxu1 %v2623_v4  ;;  %v2718_v3 = vld [vmem:[%s3131_s26 + $0x300] ss:$16 sps:$4 sm:$0xff]   ;;  %v2719_v4 = vld [vmem:[%s3131_s26 + $0x308] ss:$16 sps:$4 sm:$0xff]  }
  0x8d   : > { %1313 = vmatprep.mubr.bf16.mxu0 %v2624_v5  ;;  %1602 = vmatprep.mubr.bf16.mxu1 %v2626_v6  ;;  %v2720_v5 = vld [vmem:[%s3131_s26 + $0x324] ss:$16 sps:$4 sm:$0xff]   ;;  %v3298_v6 = vld [vmem:[%s3471_s2] ss:$0 sm:$0xff] }
  0x94   : > { %1314 = vmatmul.mubr.bf16.gmra.mxu0 %v2628_v7  ;;  %1603 = vmatmul.mubr.bf16.gmra.mxu1 %v2629_v8  ;;  %v2722_v7 = vld [vmem:[%s3131_s26 + $0x32c] ss:$16 sps:$4 sm:$0xff]  }
  0x95   : > { %1321 = vmatprep.mubr.bf16.mxu0 %v2630_v9  ;;  %1610 = vmatprep.mubr.bf16.mxu1 %v2632_v10 }
  0x9c   : > { %1322 = vmatmul.mubr.bf16.gmra.mxu0 %v2634_v11  ;;  %1611 = vmatmul.mubr.bf16.gmra.mxu1 %v2635_v12 }
  0x9d   : > { %1329 = vmatprep.mubr.bf16.mxu0 %v2636_v13  ;;  %1618 = vmatprep.mubr.bf16.mxu1 %v2638_v14 }
  0xa4   : > { %1330 = vmatmul.mubr.bf16.gmra.mxu0 %v2640_v15  ;;  %1619 = vmatmul.mubr.bf16.gmra.mxu1 %v2641_v16  ;;  %v2724_v15 = vld [vmem:[%s3131_s26 + $0x320] ss:$16 sps:$4 sm:$0xff]  }
  0xa5   : > { %1337 = vmatprep.mubr.bf16.mxu0 %v2642_v17  ;;  %1626 = vmatprep.mubr.bf16.mxu1 %v2644_v18 }
  0xac   : > { %1338 = vmatmul.mubr.bf16.gmra.mxu0 %v2646_v19  ;;  %1627 = vmatmul.mubr.bf16.gmra.mxu1 %v2647_v20  ;;  %v2725_v19 = vld [vmem:[%s3131_s26 + $0x328] ss:$16 sps:$4 sm:$0xff]   ;;  %v2726_v20 = vld [vmem:[%s3131_s26 + $0x344] ss:$16 sps:$4 sm:$0xff]  }
  0xad   : > { %1345 = vmatprep.mubr.bf16.mxu0 %v2648_v21  ;;  %1634 = vmatprep.mubr.bf16.mxu1 %v2650_v22  ;;  %v2728_v22 = vld [vmem:[%s3131_s26 + $0x34c] ss:$16 sps:$4 sm:$0xff]  }
  0xb4   : > { %1346 = vmatmul.mubr.bf16.gmra.mxu0 %v2652_v23  ;;  %1635 = vmatmul.mubr.bf16.gmra.mxu1 %v2653_v24 }
  0xb5   : > { %1353 = vmatprep.mubr.bf16.mxu0 %v2654_v25  ;;  %1642 = vmatprep.mubr.bf16.mxu1 %v2656_v26 }
  0xbc   : > { %1354 = vmatmul.mubr.bf16.gmra.mxu0 %v2658_v27  ;;  %1643 = vmatmul.mubr.bf16.gmra.mxu1 %v2659_v28 }
  0xbd   : > { %1361 = vmatprep.mubr.bf16.mxu0 %v2660_v29  ;;  %1650 = vmatprep.mubr.bf16.mxu1 %v2662_v30 }
  0xc4   : > { %1362 = vmatmul.mubr.bf16.gmra.mxu0 %v2664_v31  ;;  %1651 = vmatmul.mubr.bf16.gmra.mxu1 %v2665_v32 }
  0xc5   : > { %1369 = vmatprep.mubr.bf16.mxu0 %v2666_v33  ;;  %1658 = vmatprep.mubr.bf16.mxu1 %v2668_v34  ;;  %v2730_v33 = vld [vmem:[%s3131_s26 + $0x340] ss:$16 sps:$4 sm:$0xff]  }
  0xcc   : > { %1370 = vmatmul.mubr.bf16.gmra.mxu0 %v2670_v35  ;;  %1659 = vmatmul.mubr.bf16.gmra.mxu1 %v2671_v36 }
  0xcd   : > { %1377 = vmatprep.mubr.bf16.mxu0 %v2672_v37  ;;  %1666 = vmatprep.mubr.bf16.mxu1 %v2674_v38  ;;  %v2731_v37 = vld [vmem:[%s3131_s26 + $0x348] ss:$16 sps:$4 sm:$0xff]   ;;  %v2732_v38 = vld [vmem:[%s3131_s26 + $0x364] ss:$16 sps:$4 sm:$0xff]  }
  0xd4   : > { %1378 = vmatmul.mubr.bf16.gmra.mxu0 %v2676_v39  ;;  %1667 = vmatmul.mubr.bf16.gmra.mxu1 %v2677_v40  ;;  %v2734_v40 = vld [vmem:[%s3131_s26 + $0x36c] ss:$16 sps:$4 sm:$0xff]  }
  0xd5   : > { %1385 = vmatprep.mubr.bf16.mxu0 %v2678_v41  ;;  %1674 = vmatprep.mubr.bf16.mxu1 %v2680_v42 }
  0xdc   : > { %1386 = vmatmul.mubr.bf16.gmra.mxu0 %v2682_v43  ;;  %1675 = vmatmul.mubr.bf16.gmra.mxu1 %v2683_v44 }
  0xdd   : > { %1393 = vmatprep.mubr.bf16.mxu0 %v2684_v45  ;;  %1682 = vmatprep.mubr.bf16.mxu1 %v2686_v46 }
  0xe4   : > { %1394 = vmatmul.mubr.bf16.gmra.mxu0 %v2688_v47  ;;  %1683 = vmatmul.mubr.bf16.gmra.mxu1 %v2689_v48 }
  0xe5   : > { %1401 = vmatprep.mubr.bf16.mxu0 %v2690_v49  ;;  %1690 = vmatprep.mubr.bf16.mxu1 %v2692_v50 }
  0xec   : > { %1402 = vmatmul.mubr.bf16.gmra.mxu0 %v2694_v51  ;;  %1691 = vmatmul.mubr.bf16.gmra.mxu1 %v2695_v52  ;;  %v2736_v52 = vld [vmem:[%s3131_s26 + $0x360] ss:$16 sps:$4 sm:$0xff]  }
  0xed   : > { %1409 = vmatprep.mubr.bf16.mxu0 %v2696_v53  ;;  %1698 = vmatprep.mubr.bf16.mxu1 %v2698_v54  ;;  %v2737_v53 = vld [vmem:[%s3131_s26 + $0x368] ss:$16 sps:$4 sm:$0xff]  }
  0xf4   : > { %1410 = vmatmul.mubr.bf16.gmra.mxu0 %v2700_v55  ;;  %1699 = vmatmul.mubr.bf16.gmra.mxu1 %v2701_v56 }
  0xf5   : > { %1417 = vmatprep.mubr.bf16.mxu0 %v2702_v57  ;;  %1706 = vmatprep.mubr.bf16.mxu1 %v2704_v58  ;;  %v2740_v58 = vld [vmem:[%s3131_s26 + $0x384] ss:$16 sps:$4 sm:$0xff]  }
  0xfc   : > { %1418 = vmatmul.mubr.bf16.gmra.mxu0 %v2706_v59  ;;  %1707 = vmatmul.mubr.bf16.gmra.mxu1 %v2707_v60  ;;  %v2743_v60 = vld [vmem:[%s3131_s26 + $0x38c] ss:$16 sps:$4 sm:$0xff]  }
  0xfd   : > { %1425 = vmatprep.mubr.bf16.mxu0 %v2708_v61  ;;  %1714 = vmatprep.mubr.bf16.mxu1 %v2710_v62 }
 0x104   : > { %1426 = vmatmul.mubr.bf16.gmra.mxu0 %v2712_v63  ;;  %1715 = vmatmul.mubr.bf16.gmra.mxu1 %v2713_v0 }
 0x105   : > { %1433 = vmatprep.mubr.bf16.mxu0 %v2714_v1  ;;  %1722 = vmatprep.mubr.bf16.mxu1 %v2716_v2 }
 0x10c   : > { %v1243_v8 = vpop.f32.mrf.mxu0  ;;  %1434 = vmatmul.mubr.bf16.gmra.mxu0 %v2718_v3  ;;  %v1532_v10 = vpop.f32.mrf.mxu1  ;;  %1723 = vmatmul.mubr.bf16.gmra.mxu1 %v2719_v4 }
 0x10d   : > { %v1244_v9 = vadd.f32 %v3298_v6, %v1243_v8  ;;  %1441 = vmatprep.mubr.bf16.mxu0 %v2720_v5  ;;  %1730 = vmatprep.mubr.bf16.mxu1 %v2722_v7 }
 0x10e   : > { %v1245_v11 = vpop.f32.mrf.mxu0  ;;  %v1534_v13 = vpop.f32.mrf.mxu1 }
 0x10f   : > { %v1533_v12 = vadd.f32 %v1532_v10, %v1244_v9  ;;  %v2738_v11 = vld [vmem:[%s3131_s26 + $0x380] ss:$16 sps:$4 sm:$0xff]  }
 0x110   : > { %v1246_v14 = vpop.f32.mrf.mxu0  ;;  %v1535_v18 = vpop.f32.mrf.mxu1 }
 0x111   : > { %v2462_v16 = vmul.f32 -1.442695, %v1533_v12  ;;  %v1247_v17 = vadd.f32 %v3298_v6, %v1246_v14  ;;  %v2741_v12 = vld [vmem:[%s3131_s26 + $0x388] ss:$16 sps:$4 sm:$0xff]  }
 0x112   : > { %v1248_v21 = vpop.f32.mrf.mxu0  ;;  %v1537_v24 = vpop.f32.mrf.mxu1 }
 0x113   : > { %2762 = vpow2.f32 %v2462_v16  ;;  %v1536_v23 = vadd.f32 %v1535_v18, %v1247_v17  ;;  %v2746_v17 = vld [vmem:[%s3131_s26 + $0x3a4] ss:$16 sps:$4 sm:$0xff]  }
 0x114   : > { %v1251_v25 = vpop.f32.mrf.mxu0  ;;  %1442 = vmatmul.mubr.bf16.gmra.mxu0 %v2724_v15  ;;  %v1540_v28 = vpop.f32.mrf.mxu1  ;;  %1731 = vmatmul.mubr.bf16.gmra.mxu1 %v2725_v19  ;;  %v2749_v19 = vld [vmem:[%s3131_s26 + $0x3ac] ss:$16 sps:$4 sm:$0xff]  }
 0x115   : > { %v2463_v26 = vmul.f32 -1.442695, %v1536_v23  ;;  %v1252_v27 = vadd.f32 %v3298_v6, %v1251_v25  ;;  %1449 = vmatprep.mubr.bf16.mxu0 %v2726_v20  ;;  %1738 = vmatprep.mubr.bf16.mxu1 %v2728_v22 }
 0x116   : > { %v1253_v29 = vpop.f32.mrf.mxu0  ;;  %v1542_v31 = vpop.f32.mrf.mxu1 }
 0x117   : > { %2764 = vpow2.f32 %v2463_v26  ;;  %v1541_v30 = vadd.f32 %v1540_v28, %v1252_v27 }
 0x118   : > { %v1254_v32 = vpop.f32.mrf.mxu0  ;;  %v1543_v36 = vpop.f32.mrf.mxu1 }
 0x119   : > { %v2464_v34 = vmul.f32 -1.442695, %v1541_v30  ;;  %v1255_v35 = vadd.f32 %v3298_v6, %v1254_v32 }
 0x11a   : > { %v1256_v39 = vpop.f32.mrf.mxu0  ;;  %v1545_v42 = vpop.f32.mrf.mxu1 }
 0x11b   : > { %2766 = vpow2.f32 %v2464_v34  ;;  %v1544_v41 = vadd.f32 %v1543_v36, %v1255_v35  ;;  %v2752_v39 = vld [vmem:[%s3131_s26 + $0x3c4] ss:$16 sps:$4 sm:$0xff]   ;;  %v2755_v42 = vld [vmem:[%s3131_s26 + $0x3cc] ss:$16 sps:$4 sm:$0xff]  }
 0x11c   : > { %v1259_v43 = vpop.f32.mrf.mxu0  ;;  %1450 = vmatmul.mubr.bf16.gmra.mxu0 %v2730_v33  ;;  %v1548_v46 = vpop.f32.mrf.mxu1  ;;  %1739 = vmatmul.mubr.bf16.gmra.mxu1 %v2731_v37  ;;  %v2744_v33 = vld [vmem:[%s3131_s26 + $0x3a0] ss:$16 sps:$4 sm:$0xff]  }
 0x11d   : > { %v2465_v44 = vmul.f32 -1.442695, %v1544_v41  ;;  %v1260_v45 = vadd.f32 %v3298_v6, %v1259_v43  ;;  %1457 = vmatprep.mubr.bf16.mxu0 %v2732_v38  ;;  %1746 = vmatprep.mubr.bf16.mxu1 %v2734_v40  ;;  %v2747_v38 = vld [vmem:[%s3131_s26 + $0x3a8] ss:$16 sps:$4 sm:$0xff]  }
 0x11e   : > { %v1261_v47 = vpop.f32.mrf.mxu0  ;;  %v1550_v49 = vpop.f32.mrf.mxu1 }
 0x11f   : > { %2768 = vpow2.f32 %v2465_v44  ;;  %v1549_v48 = vadd.f32 %v1548_v46, %v1260_v45 }
 0x120   : > { %v2763_v50 = vpop.eup %2762  ;;  %v1262_v51 = vpop.f32.mrf.mxu0 }
 0x121   : > { %v1979_v54 = vadd.f32 1.0, %v2763_v50  ;;  %v2466_v55 = vmul.f32 -1.442695, %v1549_v48  ;;  %v1263_v56 = vadd.f32 %v3298_v6, %v1262_v51  ;;  %v1551_v57 = vpop.f32.mrf.mxu1 }
 0x122   : > { %v1264_v59 = vpop.f32.mrf.mxu0 }
 0x123   : > { %2770 = vrcp.f32 %v1979_v54  ;;  %v1552_v61 = vadd.f32 %v1551_v57, %v1263_v56  ;;  %v1553_v62 = vpop.f32.mrf.mxu1  ;;  %v2750_v57 = vld [vmem:[%s3131_s26 + $0x3c0] ss:$16 sps:$4 sm:$0xff]  }
 0x124   : > { %v2765_v63 = vpop.eup %2764  ;;  %2772 = vpow2.f32 %v2466_v55  ;;  %v1267_v0 = vpop.f32.mrf.mxu0  ;;  %1458 = vmatmul.mubr.bf16.gmra.mxu0 %v2736_v52  ;;  %1747 = vmatmul.mubr.bf16.gmra.mxu1 %v2737_v53  ;;  %v2753_v62 = vld [vmem:[%s3131_s26 + $0x3c8] ss:$16 sps:$4 sm:$0xff]  }
 0x125   : > { %v1980_v1 = vadd.f32 1.0, %v2765_v63  ;;  %v2467_v2 = vmul.f32 -1.442695, %v1552_v61  ;;  %v1268_v3 = vadd.f32 %v3298_v6, %v1267_v0  ;;  %v1556_v4 = vpop.f32.mrf.mxu1  ;;  %1465 = vmatprep.mubr.bf16.mxu0 %v2740_v58  ;;  %1754 = vmatprep.mubr.bf16.mxu1 %v2743_v60  ;;  %v2758_v63 = vld [vmem:[%s3131_s26 + $0x3e4] ss:$16 sps:$4 sm:$0xff]  }
 0x126   : > { %v1269_v5 = vpop.f32.mrf.mxu0 }
 0x127   : > { %2774 = vrcp.f32 %v1980_v1  ;;  %v1557_v7 = vadd.f32 %v1556_v4, %v1268_v3  ;;  %v1558_v8 = vpop.f32.mrf.mxu1 }
 0x128   : > { %v2767_v9 = vpop.eup %2766  ;;  %2776 = vpow2.f32 %v2467_v2  ;;  %v1270_v10 = vpop.f32.mrf.mxu0  ;;  %v2761_v2 = vld [vmem:[%s3131_s26 + $0x3ec] ss:$16 sps:$4 sm:$0xff]  }
 0x129   : > { %v1981_v13 = vadd.f32 1.0, %v2767_v9  ;;  %v2468_v14 = vmul.f32 -1.442695, %v1557_v7  ;;  %v1271_v15 = vadd.f32 %v3298_v6, %v1270_v10  ;;  %v1559_v16 = vpop.f32.mrf.mxu1 }
 0x12a   : > { %v1272_v18 = vpop.f32.mrf.mxu0 }
 0x12b   : > { %2778 = vrcp.f32 %v1981_v13  ;;  %v1560_v20 = vadd.f32 %v1559_v16, %v1271_v15  ;;  %v1561_v21 = vpop.f32.mrf.mxu1  ;;  %v2756_v18 = vld [vmem:[%s3131_s26 + $0x3e0] ss:$16 sps:$4 sm:$0xff]  }
 0x12c   : > { %v2769_v22 = vpop.eup %2768  ;;  %2780 = vpow2.f32 %v2468_v14  ;;  %v1275_v23 = vpop.f32.mrf.mxu0  ;;  %1466 = vmatmul.mubr.bf16.gmra.mxu0 %v2738_v11  ;;  %1755 = vmatmul.mubr.bf16.gmra.mxu1 %v2741_v12 }
 0x12d   : > { %v1982_v24 = vadd.f32 1.0, %v2769_v22  ;;  %v2469_v25 = vmul.f32 -1.442695, %v1560_v20  ;;  %v1276_v26 = vadd.f32 %v3298_v6, %v1275_v23  ;;  %v1564_v27 = vpop.f32.mrf.mxu1  ;;  %1473 = vmatprep.mubr.bf16.mxu0 %v2746_v17  ;;  %1762 = vmatprep.mubr.bf16.mxu1 %v2749_v19 }
 0x12e   : > { %v1277_v28 = vpop.f32.mrf.mxu0 }
 0x12f   : > { %2782 = vrcp.f32 %v1982_v24  ;;  %v1565_v29 = vadd.f32 %v1564_v27, %v1276_v26  ;;  %v1566_v30 = vpop.f32.mrf.mxu1  ;;  %v2759_v24 = vld [vmem:[%s3131_s26 + $0x3e8] ss:$16 sps:$4 sm:$0xff]  }
 0x130   : > { %v2771_v31 = vpop.eup %2770  ;;  %2784 = vpow2.f32 %v2469_v25  ;;  %v1278_v32 = vpop.f32.mrf.mxu0 }
 0x131   : > { %v2773_v34 = vpop.eup %2772  ;;  %2171 = vst [vmem:[%s3330_s7] sm:$0xff] %v2771_v31  ;;  %v2470_v35 = vmul.f32 -1.442695, %v1565_v29  ;;  %v1279_v36 = vadd.f32 %v3298_v6, %v1278_v32  ;;  %v1567_v37 = vpop.f32.mrf.mxu1 }
 0x132   : > { %v1983_v40 = vadd.f32 1.0, %v2773_v34  ;;  %v1280_v41 = vpop.f32.mrf.mxu0 }
 0x133   : > { %2786 = vpow2.f32 %v2470_v35  ;;  %v1568_v43 = vadd.f32 %v1567_v37, %v1279_v36  ;;  %v1569_v44 = vpop.f32.mrf.mxu1 }
 0x134   : > { %v2775_v45 = vpop.eup %2774  ;;  %2788 = vrcp.f32 %v1983_v40  ;;  %v1283_v46 = vpop.f32.mrf.mxu0  ;;  %1474 = vmatmul.mubr.bf16.gmra.mxu0 %v2744_v33  ;;  %1763 = vmatmul.mubr.bf16.gmra.mxu1 %v2747_v38 }
 0x135   : > { %v2777_v47 = vpop.eup %2776  ;;  %2172 = vst [vmem:[%s3330_s7 + $0x8] sm:$0xff] %v2775_v45  ;;  %v2471_v48 = vmul.f32 -1.442695, %v1568_v43  ;;  %v1284_v49 = vadd.f32 %v3298_v6, %v1283_v46  ;;  %v1572_v50 = vpop.f32.mrf.mxu1  ;;  %1481 = vmatprep.mubr.bf16.mxu0 %v2752_v39  ;;  %1770 = vmatprep.mubr.bf16.mxu1 %v2755_v42 }
 0x136   : > { %v1984_v51 = vadd.f32 1.0, %v2777_v47  ;;  %v1285_v52 = vpop.f32.mrf.mxu0 }
 0x137   : > { %2790 = vpow2.f32 %v2471_v48  ;;  %v1573_v53 = vadd.f32 %v1572_v50, %v1284_v49  ;;  %v1574_v54 = vpop.f32.mrf.mxu1 }
 0x138   : > { %v2779_v55 = vpop.eup %2778  ;;  %2792 = vrcp.f32 %v1984_v51  ;;  %v1286_v56 = vpop.f32.mrf.mxu0 }
 0x139   : > { %v2781_v58 = vpop.eup %2780  ;;  %2173 = vst [vmem:[%s3330_s7 + $0x10] sm:$0xff] %v2779_v55  ;;  %v2472_v59 = vmul.f32 -1.442695, %v1573_v53  ;;  %v1287_v60 = vadd.f32 %v3298_v6, %v1286_v56  ;;  %v1575_v61 = vpop.f32.mrf.mxu1 }
 0x13a   : > { %v1985_v0 = vadd.f32 1.0, %v2781_v58  ;;  %v1288_v1 = vpop.f32.mrf.mxu0 }
 0x13b   : > { %2794 = vpow2.f32 %v2472_v59  ;;  %v1576_v3 = vadd.f32 %v1575_v61, %v1287_v60  ;;  %v1577_v4 = vpop.f32.mrf.mxu1 }
 0x13c   : > { %v2783_v5 = vpop.eup %2782  ;;  %2796 = vrcp.f32 %v1985_v0  ;;  %v1291_v7 = vpop.f32.mrf.mxu0  ;;  %1482 = vmatmul.mubr.bf16.gmra.mxu0 %v2750_v57  ;;  %1771 = vmatmul.mubr.bf16.gmra.mxu1 %v2753_v62 }
 0x13d   : > { %v2785_v8 = vpop.eup %2784  ;;  %2174 = vst [vmem:[%s3330_s7 + $0x18] sm:$0xff] %v2783_v5  ;;  %v2473_v9 = vmul.f32 -1.442695, %v1576_v3  ;;  %v1292_v10 = vadd.f32 %v3298_v6, %v1291_v7  ;;  %v1580_v11 = vpop.f32.mrf.mxu1  ;;  %1489 = vmatprep.mubr.bf16.mxu0 %v2758_v63  ;;  %1778 = vmatprep.mubr.bf16.mxu1 %v2761_v2 }
 0x13e   : > { %v1986_v12 = vadd.f32 1.0, %v2785_v8  ;;  %v1293_v13 = vpop.f32.mrf.mxu0 }
 0x13f   : > { %2798 = vpow2.f32 %v2473_v9  ;;  %v1581_v14 = vadd.f32 %v1580_v11, %v1292_v10  ;;  %v1582_v15 = vpop.f32.mrf.mxu1 }
 0x140   : > { %v2787_v16 = vpop.eup %2786  ;;  %2800 = vrcp.f32 %v1986_v12  ;;  %v1294_v17 = vpop.f32.mrf.mxu0 }
 0x141   : > { %v2789_v19 = vpop.eup %2788  ;;  %v1987_v20 = vadd.f32 1.0, %v2787_v16  ;;  %v2474_v21 = vmul.f32 -1.442695, %v1581_v14  ;;  %v1295_v22 = vadd.f32 %v3298_v6, %v1294_v17  ;;  %v1583_v23 = vpop.f32.mrf.mxu1 }
 0x142   : > { %2175 = vst [vmem:[%s3330_s7 + $0x20] sm:$0xff] %v2789_v19  ;;  %v1296_v25 = vpop.f32.mrf.mxu0 }
 0x143   : > { %2802 = vrcp.f32 %v1987_v20  ;;  %v1584_v26 = vadd.f32 %v1583_v23, %v1295_v22  ;;  %v1585_v27 = vpop.f32.mrf.mxu1 }
 0x144   : > { %v2791_v28 = vpop.eup %2790  ;;  %2804 = vpow2.f32 %v2474_v21  ;;  %v1299_v29 = vpop.f32.mrf.mxu0  ;;  %1490 = vmatmul.mubr.bf16.gmra.mxu0 %v2756_v18  ;;  %1779 = vmatmul.mubr.bf16.gmra.mxu1 %v2759_v24 }
 0x145   : > { %v2793_v30 = vpop.eup %2792  ;;  %v1988_v31 = vadd.f32 1.0, %v2791_v28  ;;  %v2475_v32 = vmul.f32 -1.442695, %v1584_v26  ;;  %v1300_v33 = vadd.f32 %v3298_v6, %v1299_v29  ;;  %v1588_v34 = vpop.f32.mrf.mxu1 }
 0x146   : > { %2176 = vst [vmem:[%s3330_s7 + $0x28] sm:$0xff] %v2793_v30  ;;  %v1301_v35 = vpop.f32.mrf.mxu0 }
 0x147   : > { %2806 = vrcp.f32 %v1988_v31  ;;  %v1589_v36 = vadd.f32 %v1588_v34, %v1300_v33  ;;  %v1590_v37 = vpop.f32.mrf.mxu1 }
 0x148   : > { %v2795_v38 = vpop.eup %2794  ;;  %2808 = vpow2.f32 %v2475_v32  ;;  %v1302_v39 = vpop.f32.mrf.mxu0 }
 0x149   : > { %v2797_v40 = vpop.eup %2796  ;;  %v1989_v41 = vadd.f32 1.0, %v2795_v38  ;;  %v2476_v42 = vmul.f32 -1.442695, %v1589_v36  ;;  %v1303_v43 = vadd.f32 %v3298_v6, %v1302_v39  ;;  %v1591_v44 = vpop.f32.mrf.mxu1 }
 0x14a   : > { %2177 = vst [vmem:[%s3330_s7 + $0x30] sm:$0xff] %v2797_v40  ;;  %v1304_v45 = vpop.f32.mrf.mxu0 }
 0x14b   : > { %2810 = vrcp.f32 %v1989_v41  ;;  %v1592_v46 = vadd.f32 %v1591_v44, %v1303_v43  ;;  %v1593_v47 = vpop.f32.mrf.mxu1 }
 0x14c   : > { %v2799_v48 = vpop.eup %2798  ;;  %2812 = vpow2.f32 %v2476_v42  ;;  %v1307_v49 = vpop.f32.mrf.mxu0 }
 0x14d   : > { %v2801_v50 = vpop.eup %2800  ;;  %v1990_v51 = vadd.f32 1.0, %v2799_v48  ;;  %v2477_v52 = vmul.f32 -1.442695, %v1592_v46  ;;  %v1308_v53 = vadd.f32 %v3298_v6, %v1307_v49  ;;  %v1596_v54 = vpop.f32.mrf.mxu1 }
 0x14e   : > { %2178 = vst [vmem:[%s3330_s7 + $0x38] sm:$0xff] %v2801_v50  ;;  %v1309_v55 = vpop.f32.mrf.mxu0 }
 0x14f   : > { %2814 = vrcp.f32 %v1990_v51  ;;  %v1597_v56 = vadd.f32 %v1596_v54, %v1308_v53  ;;  %v1598_v57 = vpop.f32.mrf.mxu1 }
 0x150   : > { %v2803_v58 = vpop.eup %2802  ;;  %2816 = vpow2.f32 %v2477_v52  ;;  %v1310_v59 = vpop.f32.mrf.mxu0 }
 0x151   : > { %v2805_v60 = vpop.eup %2804  ;;  %2179 = vst [vmem:[%s3330_s7 + $0x40] sm:$0xff] %v2803_v58  ;;  %v2478_v61 = vmul.f32 -1.442695, %v1597_v56  ;;  %v1311_v62 = vadd.f32 %v3298_v6, %v1310_v59  ;;  %v1599_v63 = vpop.f32.mrf.mxu1 }
 0x152   : > { %v1991_v0 = vadd.f32 1.0, %v2805_v60  ;;  %v1312_v1 = vpop.f32.mrf.mxu0 }
 0x153   : > { %2818 = vpow2.f32 %v2478_v61  ;;  %v1600_v2 = vadd.f32 %v1599_v63, %v1311_v62  ;;  %v1601_v3 = vpop.f32.mrf.mxu1 }
 0x154   : > { %v2807_v4 = vpop.eup %2806  ;;  %2820 = vrcp.f32 %v1991_v0  ;;  %v1315_v5 = vpop.f32.mrf.mxu0 }
 0x155   : > { %v2809_v7 = vpop.eup %2808  ;;  %2180 = vst [vmem:[%s3330_s7 + $0x48] sm:$0xff] %v2807_v4  ;;  %v2479_v8 = vmul.f32 -1.442695, %v1600_v2  ;;  %v1316_v9 = vadd.f32 %v3298_v6, %v1315_v5  ;;  %v1604_v10 = vpop.f32.mrf.mxu1 }
 0x156   : > { %v1992_v11 = vadd.f32 1.0, %v2809_v7  ;;  %v1317_v12 = vpop.f32.mrf.mxu0 }
 0x157   : > { %2822 = vpow2.f32 %v2479_v8  ;;  %v1605_v13 = vadd.f32 %v1604_v10, %v1316_v9  ;;  %v1606_v14 = vpop.f32.mrf.mxu1 }
 0x158   : > { %v2811_v15 = vpop.eup %2810  ;;  %2824 = vrcp.f32 %v1992_v11  ;;  %v1318_v16 = vpop.f32.mrf.mxu0 }
 0x159   : > { %v2813_v17 = vpop.eup %2812  ;;  %2181 = vst [vmem:[%s3330_s7 + $0x50] sm:$0xff] %v2811_v15  ;;  %v2480_v18 = vmul.f32 -1.442695, %v1605_v13  ;;  %v1319_v19 = vadd.f32 %v3298_v6, %v1318_v16  ;;  %v1607_v20 = vpop.f32.mrf.mxu1 }
 0x15a   : > { %v1993_v21 = vadd.f32 1.0, %v2813_v17  ;;  %v1320_v22 = vpop.f32.mrf.mxu0 }
 0x15b   : > { %2826 = vpow2.f32 %v2480_v18  ;;  %v1608_v23 = vadd.f32 %v1607_v20, %v1319_v19  ;;  %v1609_v24 = vpop.f32.mrf.mxu1 }
 0x15c   : > { %v2815_v25 = vpop.eup %2814  ;;  %2828 = vrcp.f32 %v1993_v21  ;;  %v1323_v26 = vpop.f32.mrf.mxu0 }
 0x15d   : > { %v2817_v27 = vpop.eup %2816  ;;  %2182 = vst [vmem:[%s3330_s7 + $0x58] sm:$0xff] %v2815_v25  ;;  %v2481_v28 = vmul.f32 -1.442695, %v1608_v23  ;;  %v1324_v29 = vadd.f32 %v3298_v6, %v1323_v26  ;;  %v1612_v30 = vpop.f32.mrf.mxu1 }
 0x15e   : > { %v1994_v31 = vadd.f32 1.0, %v2817_v27  ;;  %v1325_v32 = vpop.f32.mrf.mxu0 }
 0x15f   : > { %2830 = vpow2.f32 %v2481_v28  ;;  %v1613_v33 = vadd.f32 %v1612_v30, %v1324_v29  ;;  %v1614_v34 = vpop.f32.mrf.mxu1 }
 0x160   : > { %v2819_v35 = vpop.eup %2818  ;;  %2832 = vrcp.f32 %v1994_v31  ;;  %v1326_v36 = vpop.f32.mrf.mxu0 }
 0x161   : > { %v2821_v37 = vpop.eup %2820  ;;  %v1995_v38 = vadd.f32 1.0, %v2819_v35  ;;  %v2482_v39 = vmul.f32 -1.442695, %v1613_v33  ;;  %v1327_v40 = vadd.f32 %v3298_v6, %v1326_v36  ;;  %v1615_v41 = vpop.f32.mrf.mxu1 }
 0x162   : > { %2183 = vst [vmem:[%s3330_s7 + $0x60] sm:$0xff] %v2821_v37  ;;  %v1328_v42 = vpop.f32.mrf.mxu0 }
 0x163   : > { %2834 = vrcp.f32 %v1995_v38  ;;  %v1616_v43 = vadd.f32 %v1615_v41, %v1327_v40  ;;  %v1617_v44 = vpop.f32.mrf.mxu1 }
 0x164   : > { %v2823_v45 = vpop.eup %2822  ;;  %2836 = vpow2.f32 %v2482_v39  ;;  %v1331_v46 = vpop.f32.mrf.mxu0 }
 0x165   : > { %v2825_v47 = vpop.eup %2824  ;;  %v1996_v48 = vadd.f32 1.0, %v2823_v45  ;;  %v2483_v49 = vmul.f32 -1.442695, %v1616_v43  ;;  %v1332_v50 = vadd.f32 %v3298_v6, %v1331_v46  ;;  %v1620_v51 = vpop.f32.mrf.mxu1 }
 0x166   : > { %2184 = vst [vmem:[%s3330_s7 + $0x68] sm:$0xff] %v2825_v47  ;;  %v1333_v52 = vpop.f32.mrf.mxu0 }
 0x167   : > { %2838 = vrcp.f32 %v1996_v48  ;;  %v1621_v53 = vadd.f32 %v1620_v51, %v1332_v50  ;;  %v1622_v54 = vpop.f32.mrf.mxu1 }
 0x168   : > { %v2827_v55 = vpop.eup %2826  ;;  %2840 = vpow2.f32 %v2483_v49  ;;  %v1334_v56 = vpop.f32.mrf.mxu0 }
 0x169   : > { %v2829_v57 = vpop.eup %2828  ;;  %v1997_v58 = vadd.f32 1.0, %v2827_v55  ;;  %v2484_v59 = vmul.f32 -1.442695, %v1621_v53  ;;  %v1335_v60 = vadd.f32 %v3298_v6, %v1334_v56  ;;  %v1623_v61 = vpop.f32.mrf.mxu1 }
 0x16a   : > { %2185 = vst [vmem:[%s3330_s7 + $0x70] sm:$0xff] %v2829_v57  ;;  %v1336_v62 = vpop.f32.mrf.mxu0 }
 0x16b   : > { %2842 = vrcp.f32 %v1997_v58  ;;  %v1624_v63 = vadd.f32 %v1623_v61, %v1335_v60  ;;  %v1625_v0 = vpop.f32.mrf.mxu1 }
 0x16c   : > { %v2831_v1 = vpop.eup %2830  ;;  %2844 = vpow2.f32 %v2484_v59  ;;  %v1339_v2 = vpop.f32.mrf.mxu0 }
 0x16d   : > { %v2833_v3 = vpop.eup %2832  ;;  %v1998_v4 = vadd.f32 1.0, %v2831_v1  ;;  %v2485_v5 = vmul.f32 -1.442695, %v1624_v63  ;;  %v1340_v7 = vadd.f32 %v3298_v6, %v1339_v2  ;;  %v1628_v8 = vpop.f32.mrf.mxu1 }
 0x16e   : > { %2186 = vst [vmem:[%s3330_s7 + $0x78] sm:$0xff] %v2833_v3  ;;  %v1341_v9 = vpop.f32.mrf.mxu0 }
 0x16f   : > { %2846 = vrcp.f32 %v1998_v4  ;;  %v1629_v10 = vadd.f32 %v1628_v8, %v1340_v7  ;;  %v1630_v11 = vpop.f32.mrf.mxu1 }
 0x170   : > { %v2835_v12 = vpop.eup %2834  ;;  %2848 = vpow2.f32 %v2485_v5  ;;  %v1342_v13 = vpop.f32.mrf.mxu0 }
 0x171   : > { %v2837_v14 = vpop.eup %2836  ;;  %2187 = vst [vmem:[%s3330_s7 + $0x80] sm:$0xff] %v2835_v12  ;;  %v2486_v15 = vmul.f32 -1.442695, %v1629_v10  ;;  %v1343_v16 = vadd.f32 %v3298_v6, %v1342_v13  ;;  %v1631_v17 = vpop.f32.mrf.mxu1 }
 0x172   : > { %v1999_v18 = vadd.f32 1.0, %v2837_v14  ;;  %v1344_v19 = vpop.f32.mrf.mxu0 }
 0x173   : > { %2850 = vpow2.f32 %v2486_v15  ;;  %v1632_v20 = vadd.f32 %v1631_v17, %v1343_v16  ;;  %v1633_v21 = vpop.f32.mrf.mxu1 }
 0x174   : > { %v2839_v22 = vpop.eup %2838  ;;  %2852 = vrcp.f32 %v1999_v18  ;;  %v1347_v23 = vpop.f32.mrf.mxu0 }
 0x175   : > { %v2841_v24 = vpop.eup %2840  ;;  %2188 = vst [vmem:[%s3330_s7 + $0x88] sm:$0xff] %v2839_v22  ;;  %v2487_v25 = vmul.f32 -1.442695, %v1632_v20  ;;  %v1348_v26 = vadd.f32 %v3298_v6, %v1347_v23  ;;  %v1636_v27 = vpop.f32.mrf.mxu1 }
 0x176   : > { %v2000_v28 = vadd.f32 1.0, %v2841_v24  ;;  %v1349_v29 = vpop.f32.mrf.mxu0 }
 0x177   : > { %2854 = vpow2.f32 %v2487_v25  ;;  %v1637_v30 = vadd.f32 %v1636_v27, %v1348_v26  ;;  %v1638_v31 = vpop.f32.mrf.mxu1 }
 0x178   : > { %v2843_v32 = vpop.eup %2842  ;;  %2856 = vrcp.f32 %v2000_v28  ;;  %v1350_v33 = vpop.f32.mrf.mxu0 }
 0x179   : > { %v2845_v34 = vpop.eup %2844  ;;  %2189 = vst [vmem:[%s3330_s7 + $0x90] sm:$0xff] %v2843_v32  ;;  %v2488_v35 = vmul.f32 -1.442695, %v1637_v30  ;;  %v1351_v36 = vadd.f32 %v3298_v6, %v1350_v33  ;;  %v1639_v37 = vpop.f32.mrf.mxu1 }
 0x17a   : > { %v2001_v38 = vadd.f32 1.0, %v2845_v34  ;;  %v1352_v39 = vpop.f32.mrf.mxu0 }
 0x17b   : > { %2858 = vpow2.f32 %v2488_v35  ;;  %v1640_v40 = vadd.f32 %v1639_v37, %v1351_v36  ;;  %v1641_v41 = vpop.f32.mrf.mxu1 }
 0x17c   : > { %v2847_v42 = vpop.eup %2846  ;;  %2860 = vrcp.f32 %v2001_v38  ;;  %v1355_v43 = vpop.f32.mrf.mxu0 }
 0x17d   : > { %v2849_v44 = vpop.eup %2848  ;;  %2190 = vst [vmem:[%s3330_s7 + $0x98] sm:$0xff] %v2847_v42  ;;  %v2489_v45 = vmul.f32 -1.442695, %v1640_v40  ;;  %v1356_v46 = vadd.f32 %v3298_v6, %v1355_v43  ;;  %v1644_v47 = vpop.f32.mrf.mxu1 }
 0x17e   : > { %v2002_v48 = vadd.f32 1.0, %v2849_v44  ;;  %v1357_v49 = vpop.f32.mrf.mxu0 }
 0x17f   : > { %2862 = vpow2.f32 %v2489_v45  ;;  %v1645_v50 = vadd.f32 %v1644_v47, %v1356_v46  ;;  %v1646_v51 = vpop.f32.mrf.mxu1 }
 0x180   : > { %v2851_v52 = vpop.eup %2850  ;;  %2864 = vrcp.f32 %v2002_v48  ;;  %v1358_v53 = vpop.f32.mrf.mxu0 }
 0x181   : > { %v2853_v54 = vpop.eup %2852  ;;  %v2003_v55 = vadd.f32 1.0, %v2851_v52  ;;  %v2490_v56 = vmul.f32 -1.442695, %v1645_v50  ;;  %v1359_v57 = vadd.f32 %v3298_v6, %v1358_v53  ;;  %v1647_v58 = vpop.f32.mrf.mxu1 }
 0x182   : > { %2191 = vst [vmem:[%s3330_s7 + $0xa0] sm:$0xff] %v2853_v54  ;;  %v1360_v59 = vpop.f32.mrf.mxu0 }
 0x183   : > { %2866 = vrcp.f32 %v2003_v55  ;;  %v1648_v60 = vadd.f32 %v1647_v58, %v1359_v57  ;;  %v1649_v61 = vpop.f32.mrf.mxu1 }
 0x184   : > { %v2855_v62 = vpop.eup %2854  ;;  %2868 = vpow2.f32 %v2490_v56  ;;  %v1363_v63 = vpop.f32.mrf.mxu0 }
 0x185   : > { %v2857_v0 = vpop.eup %2856  ;;  %v2004_v1 = vadd.f32 1.0, %v2855_v62  ;;  %v2491_v2 = vmul.f32 -1.442695, %v1648_v60  ;;  %v1364_v3 = vadd.f32 %v3298_v6, %v1363_v63  ;;  %v1652_v4 = vpop.f32.mrf.mxu1 }
 0x186   : > { %2192 = vst [vmem:[%s3330_s7 + $0xa8] sm:$0xff] %v2857_v0  ;;  %v1365_v5 = vpop.f32.mrf.mxu0 }
 0x187   : > { %2870 = vrcp.f32 %v2004_v1  ;;  %v1653_v7 = vadd.f32 %v1652_v4, %v1364_v3  ;;  %v1654_v8 = vpop.f32.mrf.mxu1 }
 0x188   : > { %v2859_v9 = vpop.eup %2858  ;;  %2872 = vpow2.f32 %v2491_v2  ;;  %v1366_v10 = vpop.f32.mrf.mxu0 }
 0x189   : > { %v2861_v11 = vpop.eup %2860  ;;  %v2005_v12 = vadd.f32 1.0, %v2859_v9  ;;  %v2492_v13 = vmul.f32 -1.442695, %v1653_v7  ;;  %v1367_v14 = vadd.f32 %v3298_v6, %v1366_v10  ;;  %v1655_v15 = vpop.f32.mrf.mxu1 }
 0x18a   : > { %2193 = vst [vmem:[%s3330_s7 + $0xb0] sm:$0xff] %v2861_v11  ;;  %v1368_v16 = vpop.f32.mrf.mxu0 }
 0x18b   : > { %2874 = vrcp.f32 %v2005_v12  ;;  %v1656_v17 = vadd.f32 %v1655_v15, %v1367_v14  ;;  %v1657_v18 = vpop.f32.mrf.mxu1 }
 0x18c   : > { %v2863_v19 = vpop.eup %2862  ;;  %2876 = vpow2.f32 %v2492_v13  ;;  %v1371_v20 = vpop.f32.mrf.mxu0 }
 0x18d   : > { %v2865_v21 = vpop.eup %2864  ;;  %v2006_v22 = vadd.f32 1.0, %v2863_v19  ;;  %v2493_v23 = vmul.f32 -1.442695, %v1656_v17  ;;  %v1372_v24 = vadd.f32 %v3298_v6, %v1371_v20  ;;  %v1660_v25 = vpop.f32.mrf.mxu1 }
 0x18e   : > { %2194 = vst [vmem:[%s3330_s7 + $0xb8] sm:$0xff] %v2865_v21  ;;  %v1373_v26 = vpop.f32.mrf.mxu0  ;;  %v3403_v21 = vld [vmem:[%s3471_s2] ss:$0 sm:$0xff] }
 0x18f   : > { %2878 = vrcp.f32 %v2006_v22  ;;  %v1661_v27 = vadd.f32 %v1660_v25, %v1372_v24  ;;  %v1662_v28 = vpop.f32.mrf.mxu1 }
 0x190   : > { %v2867_v29 = vpop.eup %2866  ;;  %2880 = vpow2.f32 %v2493_v23  ;;  %v1374_v30 = vpop.f32.mrf.mxu0 }
 0x191   : > { %v2869_v31 = vpop.eup %2868  ;;  %2195 = vst [vmem:[%s3330_s7 + $0xc0] sm:$0xff] %v2867_v29  ;;  %v2494_v32 = vmul.f32 -1.442695, %v1661_v27  ;;  %v1375_v33 = vadd.f32 %v3298_v6, %v1374_v30  ;;  %v1663_v34 = vpop.f32.mrf.mxu1 }
 0x192   : > { %v2007_v35 = vadd.f32 1.0, %v2869_v31  ;;  %v1376_v36 = vpop.f32.mrf.mxu0 }
 0x193   : > { %2882 = vpow2.f32 %v2494_v32  ;;  %v1664_v37 = vadd.f32 %v1663_v34, %v1375_v33  ;;  %v1665_v38 = vpop.f32.mrf.mxu1 }
 0x194   : > { %v2871_v39 = vpop.eup %2870  ;;  %2884 = vrcp.f32 %v2007_v35  ;;  %v1379_v40 = vpop.f32.mrf.mxu0 }
 0x195   : > { %v2873_v41 = vpop.eup %2872  ;;  %2196 = vst [vmem:[%s3330_s7 + $0xc8] sm:$0xff] %v2871_v39  ;;  %v2495_v42 = vmul.f32 -1.442695, %v1664_v37  ;;  %v1380_v43 = vadd.f32 %v3298_v6, %v1379_v40  ;;  %v1668_v44 = vpop.f32.mrf.mxu1 }
 0x196   : > { %v2008_v45 = vadd.f32 1.0, %v2873_v41  ;;  %v1381_v46 = vpop.f32.mrf.mxu0 }
 0x197   : > { %2886 = vpow2.f32 %v2495_v42  ;;  %v1669_v47 = vadd.f32 %v1668_v44, %v1380_v43  ;;  %v1670_v48 = vpop.f32.mrf.mxu1 }
 0x198   : > { %v2875_v49 = vpop.eup %2874  ;;  %2888 = vrcp.f32 %v2008_v45  ;;  %v1382_v50 = vpop.f32.mrf.mxu0 }
 0x199   : > { %v2877_v51 = vpop.eup %2876  ;;  %2197 = vst [vmem:[%s3330_s7 + $0xd0] sm:$0xff] %v2875_v49  ;;  %v2496_v52 = vmul.f32 -1.442695, %v1669_v47  ;;  %v1383_v53 = vadd.f32 %v3298_v6, %v1382_v50  ;;  %v1671_v54 = vpop.f32.mrf.mxu1 }
 0x19a   : > { %v2009_v55 = vadd.f32 1.0, %v2877_v51  ;;  %v1384_v56 = vpop.f32.mrf.mxu0 }
 0x19b   : > { %2890 = vpow2.f32 %v2496_v52  ;;  %v1672_v57 = vadd.f32 %v1671_v54, %v1383_v53  ;;  %v1673_v58 = vpop.f32.mrf.mxu1 }
 0x19c   : > { %v2879_v59 = vpop.eup %2878  ;;  %2892 = vrcp.f32 %v2009_v55  ;;  %v1387_v60 = vpop.f32.mrf.mxu0 }
 0x19d   : > { %v2881_v61 = vpop.eup %2880  ;;  %2198 = vst [vmem:[%s3330_s7 + $0xd8] sm:$0xff] %v2879_v59  ;;  %v2497_v62 = vmul.f32 -1.442695, %v1672_v57  ;;  %v1388_v63 = vadd.f32 %v3298_v6, %v1387_v60  ;;  %v1676_v0 = vpop.f32.mrf.mxu1 }
 0x19e   : > { %v2010_v1 = vadd.f32 1.0, %v2881_v61  ;;  %v1389_v2 = vpop.f32.mrf.mxu0 }
 0x19f   : > { %2894 = vpow2.f32 %v2497_v62  ;;  %v1677_v3 = vadd.f32 %v1676_v0, %v1388_v63  ;;  %v1678_v4 = vpop.f32.mrf.mxu1 }
 0x1a0   : > { %v2883_v5 = vpop.eup %2882  ;;  %2896 = vrcp.f32 %v2010_v1  ;;  %v1390_v7 = vpop.f32.mrf.mxu0 }
 0x1a1   : > { %v2885_v8 = vpop.eup %2884  ;;  %v2011_v9 = vadd.f32 1.0, %v2883_v5  ;;  %v2498_v10 = vmul.f32 -1.442695, %v1677_v3  ;;  %v1391_v11 = vadd.f32 %v3298_v6, %v1390_v7  ;;  %v1679_v12 = vpop.f32.mrf.mxu1 }
 0x1a2   : > { %2199 = vst [vmem:[%s3330_s7 + $0xe0] sm:$0xff] %v2885_v8  ;;  %v1392_v13 = vpop.f32.mrf.mxu0 }
 0x1a3   : > { %2898 = vrcp.f32 %v2011_v9  ;;  %v1680_v14 = vadd.f32 %v1679_v12, %v1391_v11  ;;  %v1681_v15 = vpop.f32.mrf.mxu1 }
 0x1a4   : > { %v2887_v16 = vpop.eup %2886  ;;  %2900 = vpow2.f32 %v2498_v10  ;;  %v1395_v17 = vpop.f32.mrf.mxu0 }
 0x1a5   : > { %v2889_v18 = vpop.eup %2888  ;;  %v2012_v19 = vadd.f32 1.0, %v2887_v16  ;;  %v2499_v20 = vmul.f32 -1.442695, %v1680_v14  ;;  %v1396_v6 = vadd.f32 %v3403_v21, %v1395_v17  ;;  %v1684_v22 = vpop.f32.mrf.mxu1 }
 0x1a6   : > { %2200 = vst [vmem:[%s3330_s7 + $0xe8] sm:$0xff] %v2889_v18  ;;  %v1397_v23 = vpop.f32.mrf.mxu0 }
 0x1a7   : > { %2902 = vrcp.f32 %v2012_v19  ;;  %v1685_v24 = vadd.f32 %v1684_v22, %v1396_v6  ;;  %v1686_v25 = vpop.f32.mrf.mxu1 }
 0x1a8   : > { %v2891_v26 = vpop.eup %2890  ;;  %2904 = vpow2.f32 %v2499_v20  ;;  %v1398_v27 = vpop.f32.mrf.mxu0 }
 0x1a9   : > { %v2893_v28 = vpop.eup %2892  ;;  %v2013_v29 = vadd.f32 1.0, %v2891_v26  ;;  %v2500_v30 = vmul.f32 -1.442695, %v1685_v24  ;;  %v1399_v31 = vadd.f32 %v3403_v21, %v1398_v27  ;;  %v1687_v32 = vpop.f32.mrf.mxu1 }
 0x1aa   : > { %2201 = vst [vmem:[%s3330_s7 + $0xf0] sm:$0xff] %v2893_v28  ;;  %v1400_v33 = vpop.f32.mrf.mxu0 }
 0x1ab   : > { %2906 = vrcp.f32 %v2013_v29  ;;  %v1688_v34 = vadd.f32 %v1687_v32, %v1399_v31  ;;  %v1689_v35 = vpop.f32.mrf.mxu1 }
 0x1ac   : > { %v2895_v36 = vpop.eup %2894  ;;  %2908 = vpow2.f32 %v2500_v30  ;;  %v1403_v37 = vpop.f32.mrf.mxu0 }
 0x1ad   : > { %v2897_v38 = vpop.eup %2896  ;;  %v2014_v39 = vadd.f32 1.0, %v2895_v36  ;;  %v2501_v40 = vmul.f32 -1.442695, %v1688_v34  ;;  %v1404_v41 = vadd.f32 %v3403_v21, %v1403_v37  ;;  %v1692_v42 = vpop.f32.mrf.mxu1 }
 0x1ae   : > { %2202 = vst [vmem:[%s3330_s7 + $0xf8] sm:$0xff] %v2897_v38  ;;  %v1405_v43 = vpop.f32.mrf.mxu0 }
 0x1af   : > { %2910 = vrcp.f32 %v2014_v39  ;;  %v1693_v44 = vadd.f32 %v1692_v42, %v1404_v41  ;;  %v1694_v45 = vpop.f32.mrf.mxu1 }
 0x1b0   : > { %v2899_v46 = vpop.eup %2898  ;;  %2912 = vpow2.f32 %v2501_v40  ;;  %v1406_v47 = vpop.f32.mrf.mxu0 }
 0x1b1   : > { %v2901_v48 = vpop.eup %2900  ;;  %2203 = vst [vmem:[%s3330_s7 + $0x100] sm:$0xff] %v2899_v46  ;;  %v2502_v49 = vmul.f32 -1.442695, %v1693_v44  ;;  %v1407_v50 = vadd.f32 %v3403_v21, %v1406_v47  ;;  %v1695_v51 = vpop.f32.mrf.mxu1 }
 0x1b2   : > { %v2015_v52 = vadd.f32 1.0, %v2901_v48  ;;  %v1408_v53 = vpop.f32.mrf.mxu0 }
 0x1b3   : > { %2914 = vpow2.f32 %v2502_v49  ;;  %v1696_v54 = vadd.f32 %v1695_v51, %v1407_v50  ;;  %v1697_v55 = vpop.f32.mrf.mxu1 }
 0x1b4   : > { %v2903_v56 = vpop.eup %2902  ;;  %2916 = vrcp.f32 %v2015_v52  ;;  %v1411_v57 = vpop.f32.mrf.mxu0 }
 0x1b5   : > { %v2905_v58 = vpop.eup %2904  ;;  %2204 = vst [vmem:[%s3330_s7 + $0x108] sm:$0xff] %v2903_v56  ;;  %v2503_v59 = vmul.f32 -1.442695, %v1696_v54  ;;  %v1412_v60 = vadd.f32 %v3403_v21, %v1411_v57  ;;  %v1700_v61 = vpop.f32.mrf.mxu1 }
 0x1b6   : > { %v2016_v62 = vadd.f32 1.0, %v2905_v58  ;;  %v1413_v63 = vpop.f32.mrf.mxu0 }
 0x1b7   : > { %2918 = vpow2.f32 %v2503_v59  ;;  %v1701_v0 = vadd.f32 %v1700_v61, %v1412_v60  ;;  %v1702_v1 = vpop.f32.mrf.mxu1 }
 0x1b8   : > { %v2907_v2 = vpop.eup %2906  ;;  %2920 = vrcp.f32 %v2016_v62  ;;  %v1414_v3 = vpop.f32.mrf.mxu0 }
 0x1b9   : > { %v2909_v4 = vpop.eup %2908  ;;  %2205 = vst [vmem:[%s3330_s7 + $0x110] sm:$0xff] %v2907_v2  ;;  %v2504_v5 = vmul.f32 -1.442695, %v1701_v0  ;;  %v1415_v7 = vadd.f32 %v3403_v21, %v1414_v3  ;;  %v1703_v8 = vpop.f32.mrf.mxu1 }
 0x1ba   : > { %v2017_v9 = vadd.f32 1.0, %v2909_v4  ;;  %v1416_v10 = vpop.f32.mrf.mxu0 }
 0x1bb   : > { %2922 = vpow2.f32 %v2504_v5  ;;  %v1704_v11 = vadd.f32 %v1703_v8, %v1415_v7  ;;  %v1705_v12 = vpop.f32.mrf.mxu1 }
 0x1bc   : > { %v2911_v13 = vpop.eup %2910  ;;  %2924 = vrcp.f32 %v2017_v9  ;;  %v1419_v14 = vpop.f32.mrf.mxu0 }
 0x1bd   : > { %v2913_v15 = vpop.eup %2912  ;;  %2206 = vst [vmem:[%s3330_s7 + $0x118] sm:$0xff] %v2911_v13  ;;  %v2505_v16 = vmul.f32 -1.442695, %v1704_v11  ;;  %v1420_v17 = vadd.f32 %v3403_v21, %v1419_v14  ;;  %v1708_v18 = vpop.f32.mrf.mxu1 }
 0x1be   : > { %v2018_v19 = vadd.f32 1.0, %v2913_v15  ;;  %v1421_v20 = vpop.f32.mrf.mxu0 }
 0x1bf   : > { %2926 = vpow2.f32 %v2505_v16  ;;  %v1709_v6 = vadd.f32 %v1708_v18, %v1420_v17  ;;  %v1710_v22 = vpop.f32.mrf.mxu1 }
 0x1c0   : > { %v2915_v23 = vpop.eup %2914  ;;  %2928 = vrcp.f32 %v2018_v19  ;;  %v1422_v24 = vpop.f32.mrf.mxu0 }
 0x1c1   : > { %v2917_v25 = vpop.eup %2916  ;;  %v2019_v26 = vadd.f32 1.0, %v2915_v23  ;;  %v2506_v27 = vmul.f32 -1.442695, %v1709_v6  ;;  %v1423_v28 = vadd.f32 %v3403_v21, %v1422_v24  ;;  %v1711_v29 = vpop.f32.mrf.mxu1 }
 0x1c2   : > { %2207 = vst [vmem:[%s3330_s7 + $0x120] sm:$0xff] %v2917_v25  ;;  %v1424_v30 = vpop.f32.mrf.mxu0 }
 0x1c3   : > { %2930 = vrcp.f32 %v2019_v26  ;;  %v1712_v31 = vadd.f32 %v1711_v29, %v1423_v28  ;;  %v1713_v32 = vpop.f32.mrf.mxu1 }
 0x1c4   : > { %v2919_v33 = vpop.eup %2918  ;;  %2932 = vpow2.f32 %v2506_v27  ;;  %v1427_v34 = vpop.f32.mrf.mxu0 }
 0x1c5   : > { %v2921_v35 = vpop.eup %2920  ;;  %v2020_v36 = vadd.f32 1.0, %v2919_v33  ;;  %v2507_v37 = vmul.f32 -1.442695, %v1712_v31  ;;  %v1428_v38 = vadd.f32 %v3403_v21, %v1427_v34  ;;  %v1716_v39 = vpop.f32.mrf.mxu1 }
 0x1c6   : > { %2208 = vst [vmem:[%s3330_s7 + $0x128] sm:$0xff] %v2921_v35  ;;  %v1429_v40 = vpop.f32.mrf.mxu0 }
 0x1c7   : > { %2934 = vrcp.f32 %v2020_v36  ;;  %v1717_v41 = vadd.f32 %v1716_v39, %v1428_v38  ;;  %v1718_v42 = vpop.f32.mrf.mxu1 }
 0x1c8   : > { %v2923_v43 = vpop.eup %2922  ;;  %2936 = vpow2.f32 %v2507_v37  ;;  %v1430_v44 = vpop.f32.mrf.mxu0 }
 0x1c9   : > { %v2925_v45 = vpop.eup %2924  ;;  %v2021_v46 = vadd.f32 1.0, %v2923_v43  ;;  %v2508_v47 = vmul.f32 -1.442695, %v1717_v41  ;;  %v1431_v48 = vadd.f32 %v3403_v21, %v1430_v44  ;;  %v1719_v49 = vpop.f32.mrf.mxu1 }
 0x1ca   : > { %2209 = vst [vmem:[%s3330_s7 + $0x130] sm:$0xff] %v2925_v45  ;;  %v1432_v50 = vpop.f32.mrf.mxu0 }
 0x1cb   : > { %2938 = vrcp.f32 %v2021_v46  ;;  %v1720_v51 = vadd.f32 %v1719_v49, %v1431_v48  ;;  %v1721_v52 = vpop.f32.mrf.mxu1 }
 0x1cc   : > { %v2927_v53 = vpop.eup %2926  ;;  %2940 = vpow2.f32 %v2508_v47  ;;  %v1435_v54 = vpop.f32.mrf.mxu0 }
 0x1cd   : > { %v2929_v55 = vpop.eup %2928  ;;  %v2022_v56 = vadd.f32 1.0, %v2927_v53  ;;  %v2509_v57 = vmul.f32 -1.442695, %v1720_v51  ;;  %v1436_v58 = vadd.f32 %v3403_v21, %v1435_v54  ;;  %v1724_v59 = vpop.f32.mrf.mxu1 }
 0x1ce   : > { %2210 = vst [vmem:[%s3330_s7 + $0x138] sm:$0xff] %v2929_v55  ;;  %v1437_v60 = vpop.f32.mrf.mxu0 }
 0x1cf   : > { %2942 = vrcp.f32 %v2022_v56  ;;  %v1725_v61 = vadd.f32 %v1724_v59, %v1436_v58  ;;  %v1726_v62 = vpop.f32.mrf.mxu1 }
 0x1d0   : > { %v2931_v63 = vpop.eup %2930  ;;  %2944 = vpow2.f32 %v2509_v57  ;;  %v1438_v0 = vpop.f32.mrf.mxu0 }
 0x1d1   : > { %v2933_v1 = vpop.eup %2932  ;;  %2211 = vst [vmem:[%s3330_s7 + $0x140] sm:$0xff] %v2931_v63  ;;  %v2510_v2 = vmul.f32 -1.442695, %v1725_v61  ;;  %v1439_v3 = vadd.f32 %v3403_v21, %v1438_v0  ;;  %v1727_v4 = vpop.f32.mrf.mxu1 }
 0x1d2   : > { %v2023_v5 = vadd.f32 1.0, %v2933_v1  ;;  %v1440_v7 = vpop.f32.mrf.mxu0 }
 0x1d3   : > { %2946 = vpow2.f32 %v2510_v2  ;;  %v1728_v8 = vadd.f32 %v1727_v4, %v1439_v3  ;;  %v1729_v9 = vpop.f32.mrf.mxu1 }
 0x1d4   : > { %v2935_v10 = vpop.eup %2934  ;;  %2948 = vrcp.f32 %v2023_v5  ;;  %v1443_v11 = vpop.f32.mrf.mxu0 }
 0x1d5   : > { %v2937_v12 = vpop.eup %2936  ;;  %2212 = vst [vmem:[%s3330_s7 + $0x148] sm:$0xff] %v2935_v10  ;;  %v2511_v13 = vmul.f32 -1.442695, %v1728_v8  ;;  %v1444_v14 = vadd.f32 %v3403_v21, %v1443_v11  ;;  %v1732_v15 = vpop.f32.mrf.mxu1 }
 0x1d6   : > { %v2024_v16 = vadd.f32 1.0, %v2937_v12  ;;  %v1445_v17 = vpop.f32.mrf.mxu0 }
 0x1d7   : > { %2950 = vpow2.f32 %v2511_v13  ;;  %v1733_v18 = vadd.f32 %v1732_v15, %v1444_v14  ;;  %v1734_v19 = vpop.f32.mrf.mxu1 }
 0x1d8   : > { %v2939_v20 = vpop.eup %2938  ;;  %2952 = vrcp.f32 %v2024_v16  ;;  %v1446_v6 = vpop.f32.mrf.mxu0 }
 0x1d9   : > { %v2941_v22 = vpop.eup %2940  ;;  %2213 = vst [vmem:[%s3330_s7 + $0x150] sm:$0xff] %v2939_v20  ;;  %v2512_v23 = vmul.f32 -1.442695, %v1733_v18  ;;  %v1447_v24 = vadd.f32 %v3403_v21, %v1446_v6  ;;  %v1735_v25 = vpop.f32.mrf.mxu1 }
 0x1da   : > { %v2025_v26 = vadd.f32 1.0, %v2941_v22  ;;  %v1448_v27 = vpop.f32.mrf.mxu0 }
 0x1db   : > { %2954 = vpow2.f32 %v2512_v23  ;;  %v1736_v28 = vadd.f32 %v1735_v25, %v1447_v24  ;;  %v1737_v29 = vpop.f32.mrf.mxu1 }
 0x1dc   : > { %v2943_v30 = vpop.eup %2942  ;;  %2956 = vrcp.f32 %v2025_v26  ;;  %v1451_v31 = vpop.f32.mrf.mxu0 }
 0x1dd   : > { %v2945_v32 = vpop.eup %2944  ;;  %2214 = vst [vmem:[%s3330_s7 + $0x158] sm:$0xff] %v2943_v30  ;;  %v2513_v33 = vmul.f32 -1.442695, %v1736_v28  ;;  %v1452_v34 = vadd.f32 %v3403_v21, %v1451_v31  ;;  %v1740_v35 = vpop.f32.mrf.mxu1 }
 0x1de   : > { %v2026_v36 = vadd.f32 1.0, %v2945_v32  ;;  %v1453_v37 = vpop.f32.mrf.mxu0 }
 0x1df   : > { %2958 = vpow2.f32 %v2513_v33  ;;  %v1741_v38 = vadd.f32 %v1740_v35, %v1452_v34  ;;  %v1742_v39 = vpop.f32.mrf.mxu1 }
 0x1e0   : > { %v2947_v40 = vpop.eup %2946  ;;  %2960 = vrcp.f32 %v2026_v36  ;;  %v1454_v41 = vpop.f32.mrf.mxu0 }
 0x1e1   : > { %v2949_v42 = vpop.eup %2948  ;;  %v2027_v43 = vadd.f32 1.0, %v2947_v40  ;;  %v2514_v44 = vmul.f32 -1.442695, %v1741_v38  ;;  %v1455_v45 = vadd.f32 %v3403_v21, %v1454_v41  ;;  %v1743_v46 = vpop.f32.mrf.mxu1 }
 0x1e2   : > { %2215 = vst [vmem:[%s3330_s7 + $0x160] sm:$0xff] %v2949_v42  ;;  %v1456_v47 = vpop.f32.mrf.mxu0 }
 0x1e3   : > { %2962 = vrcp.f32 %v2027_v43  ;;  %v1744_v48 = vadd.f32 %v1743_v46, %v1455_v45  ;;  %v1745_v49 = vpop.f32.mrf.mxu1 }
 0x1e4   : > { %v2951_v50 = vpop.eup %2950  ;;  %2964 = vpow2.f32 %v2514_v44  ;;  %v1459_v51 = vpop.f32.mrf.mxu0 }
 0x1e5   : > { %v2953_v52 = vpop.eup %2952  ;;  %v2028_v53 = vadd.f32 1.0, %v2951_v50  ;;  %v2515_v54 = vmul.f32 -1.442695, %v1744_v48  ;;  %v1460_v55 = vadd.f32 %v3403_v21, %v1459_v51  ;;  %v1748_v56 = vpop.f32.mrf.mxu1 }
 0x1e6   : > { %2216 = vst [vmem:[%s3330_s7 + $0x168] sm:$0xff] %v2953_v52  ;;  %v1461_v57 = vpop.f32.mrf.mxu0 }
 0x1e7   : > { %2966 = vrcp.f32 %v2028_v53  ;;  %v1749_v58 = vadd.f32 %v1748_v56, %v1460_v55  ;;  %v1750_v59 = vpop.f32.mrf.mxu1 }
 0x1e8   : > { %v2955_v60 = vpop.eup %2954  ;;  %2968 = vpow2.f32 %v2515_v54  ;;  %v1462_v61 = vpop.f32.mrf.mxu0 }
 0x1e9   : > { %v2957_v62 = vpop.eup %2956  ;;  %v2029_v63 = vadd.f32 1.0, %v2955_v60  ;;  %v2516_v0 = vmul.f32 -1.442695, %v1749_v58  ;;  %v1463_v1 = vadd.f32 %v3403_v21, %v1462_v61  ;;  %v1751_v2 = vpop.f32.mrf.mxu1 }
 0x1ea   : > { %2217 = vst [vmem:[%s3330_s7 + $0x170] sm:$0xff] %v2957_v62  ;;  %v1464_v3 = vpop.f32.mrf.mxu0 }
 0x1eb   : > { %2970 = vrcp.f32 %v2029_v63  ;;  %v1752_v4 = vadd.f32 %v1751_v2, %v1463_v1  ;;  %v1753_v5 = vpop.f32.mrf.mxu1 }
 0x1ec   : > { %v2959_v7 = vpop.eup %2958  ;;  %2972 = vpow2.f32 %v2516_v0  ;;  %v1467_v8 = vpop.f32.mrf.mxu0 }
 0x1ed   : > { %v2961_v9 = vpop.eup %2960  ;;  %v2030_v10 = vadd.f32 1.0, %v2959_v7  ;;  %v2517_v11 = vmul.f32 -1.442695, %v1752_v4  ;;  %v1468_v12 = vadd.f32 %v3403_v21, %v1467_v8  ;;  %v1756_v13 = vpop.f32.mrf.mxu1 }
 0x1ee   : > { %2218 = vst [vmem:[%s3330_s7 + $0x178] sm:$0xff] %v2961_v9  ;;  %v1469_v14 = vpop.f32.mrf.mxu0 }
 0x1ef   : > { %2974 = vrcp.f32 %v2030_v10  ;;  %v1757_v15 = vadd.f32 %v1756_v13, %v1468_v12  ;;  %v1758_v16 = vpop.f32.mrf.mxu1 }
 0x1f0   : > { %v2963_v17 = vpop.eup %2962  ;;  %2976 = vpow2.f32 %v2517_v11  ;;  %v1470_v18 = vpop.f32.mrf.mxu0 }
 0x1f1   : > { %v2965_v19 = vpop.eup %2964  ;;  %2219 = vst [vmem:[%s3330_s7 + $0x180] sm:$0xff] %v2963_v17  ;;  %v2518_v20 = vmul.f32 -1.442695, %v1757_v15  ;;  %v1471_v6 = vadd.f32 %v3403_v21, %v1470_v18  ;;  %v1759_v22 = vpop.f32.mrf.mxu1 }
 0x1f2   : > { %v2031_v23 = vadd.f32 1.0, %v2965_v19  ;;  %v1472_v24 = vpop.f32.mrf.mxu0 }
 0x1f3   : > { %2978 = vpow2.f32 %v2518_v20  ;;  %v1760_v25 = vadd.f32 %v1759_v22, %v1471_v6  ;;  %v1761_v26 = vpop.f32.mrf.mxu1 }
 0x1f4   : > { %v2967_v27 = vpop.eup %2966  ;;  %2980 = vrcp.f32 %v2031_v23  ;;  %v1475_v28 = vpop.f32.mrf.mxu0 }
 0x1f5   : > { %v2969_v29 = vpop.eup %2968  ;;  %2220 = vst [vmem:[%s3330_s7 + $0x188] sm:$0xff] %v2967_v27  ;;  %v2519_v30 = vmul.f32 -1.442695, %v1760_v25  ;;  %v1476_v31 = vadd.f32 %v3403_v21, %v1475_v28  ;;  %v1764_v32 = vpop.f32.mrf.mxu1 }
 0x1f6   : > { %v2032_v33 = vadd.f32 1.0, %v2969_v29  ;;  %v1477_v34 = vpop.f32.mrf.mxu0 }
 0x1f7   : > { %2982 = vpow2.f32 %v2519_v30  ;;  %v1765_v35 = vadd.f32 %v1764_v32, %v1476_v31  ;;  %v1766_v36 = vpop.f32.mrf.mxu1 }
 0x1f8   : > { %v2971_v37 = vpop.eup %2970  ;;  %2984 = vrcp.f32 %v2032_v33  ;;  %v1478_v38 = vpop.f32.mrf.mxu0 }
 0x1f9   : > { %v2973_v39 = vpop.eup %2972  ;;  %2221 = vst [vmem:[%s3330_s7 + $0x190] sm:$0xff] %v2971_v37  ;;  %v2520_v40 = vmul.f32 -1.442695, %v1765_v35  ;;  %v1479_v41 = vadd.f32 %v3403_v21, %v1478_v38  ;;  %v1767_v42 = vpop.f32.mrf.mxu1 }
 0x1fa   : > { %v2033_v43 = vadd.f32 1.0, %v2973_v39  ;;  %v1480_v44 = vpop.f32.mrf.mxu0 }
 0x1fb   : > { %2986 = vpow2.f32 %v2520_v40  ;;  %v1768_v45 = vadd.f32 %v1767_v42, %v1479_v41  ;;  %v1769_v46 = vpop.f32.mrf.mxu1 }
 0x1fc   : > { %v2975_v47 = vpop.eup %2974  ;;  %2988 = vrcp.f32 %v2033_v43  ;;  %v1483_v48 = vpop.f32.mrf.mxu0 }
 0x1fd   : > { %v2977_v49 = vpop.eup %2976  ;;  %2222 = vst [vmem:[%s3330_s7 + $0x198] sm:$0xff] %v2975_v47  ;;  %v2521_v50 = vmul.f32 -1.442695, %v1768_v45  ;;  %v1484_v51 = vadd.f32 %v3403_v21, %v1483_v48  ;;  %v1772_v52 = vpop.f32.mrf.mxu1 }
 0x1fe   : > { %v2034_v53 = vadd.f32 1.0, %v2977_v49  ;;  %v1485_v54 = vpop.f32.mrf.mxu0 }
 0x1ff   : > { %2990 = vpow2.f32 %v2521_v50  ;;  %v1773_v55 = vadd.f32 %v1772_v52, %v1484_v51  ;;  %v1774_v56 = vpop.f32.mrf.mxu1 }
 0x200   : > { %v2979_v57 = vpop.eup %2978  ;;  %2992 = vrcp.f32 %v2034_v53  ;;  %v1486_v58 = vpop.f32.mrf.mxu0 }
 0x201   : > { %v2981_v59 = vpop.eup %2980  ;;  %v2035_v60 = vadd.f32 1.0, %v2979_v57  ;;  %v2522_v61 = vmul.f32 -1.442695, %v1773_v55  ;;  %v1487_v62 = vadd.f32 %v3403_v21, %v1486_v58  ;;  %v1775_v63 = vpop.f32.mrf.mxu1 }
 0x202   : > { %2223 = vst [vmem:[%s3330_s7 + $0x1a0] sm:$0xff] %v2981_v59  ;;  %v1488_v0 = vpop.f32.mrf.mxu0 }
 0x203   : > { %2994 = vrcp.f32 %v2035_v60  ;;  %v1776_v1 = vadd.f32 %v1775_v63, %v1487_v62  ;;  %v1777_v2 = vpop.f32.mrf.mxu1 }
 0x204   : > { %v2983_v3 = vpop.eup %2982  ;;  %2996 = vpow2.f32 %v2522_v61  ;;  %v1491_v4 = vpop.f32.mrf.mxu0 }
 0x205   : > { %v2985_v5 = vpop.eup %2984  ;;  %v2036_v7 = vadd.f32 1.0, %v2983_v3  ;;  %v2523_v8 = vmul.f32 -1.442695, %v1776_v1  ;;  %v1492_v9 = vadd.f32 %v3403_v21, %v1491_v4  ;;  %v1780_v10 = vpop.f32.mrf.mxu1 }
 0x206   : > { %2224 = vst [vmem:[%s3330_s7 + $0x1a8] sm:$0xff] %v2985_v5  ;;  %v1493_v11 = vpop.f32.mrf.mxu0 }
 0x207   : > { %2998 = vrcp.f32 %v2036_v7  ;;  %v1781_v12 = vadd.f32 %v1780_v10, %v1492_v9  ;;  %v1782_v13 = vpop.f32.mrf.mxu1 }
 0x208   : > { %v2987_v14 = vpop.eup %2986  ;;  %3000 = vpow2.f32 %v2523_v8  ;;  %v1494_v15 = vpop.f32.mrf.mxu0 }
 0x209   : > { %v2989_v16 = vpop.eup %2988  ;;  %v2037_v17 = vadd.f32 1.0, %v2987_v14  ;;  %v2524_v18 = vmul.f32 -1.442695, %v1781_v12  ;;  %v1495_v19 = vadd.f32 %v3403_v21, %v1494_v15  ;;  %v1783_v20 = vpop.f32.mrf.mxu1 }
 0x20a   : > { %2225 = vst [vmem:[%s3330_s7 + $0x1b0] sm:$0xff] %v2989_v16  ;;  %v1496_v6 = vpop.f32.mrf.mxu0 }
 0x20b   : > { %3002 = vrcp.f32 %v2037_v17  ;;  %v1784_v22 = vadd.f32 %v1783_v20, %v1495_v19  ;;  %v1785_v23 = vpop.f32.mrf.mxu1 }
 0x20c   : > { %v2991_v24 = vpop.eup %2990  ;;  %3004 = vpow2.f32 %v2524_v18 }
 0x20d   : > { %v2993_v25 = vpop.eup %2992  ;;  %v2038_v26 = vadd.f32 1.0, %v2991_v24  ;;  %v2525_v27 = vmul.f32 -1.442695, %v1784_v22 }
 0x20e   : > { %2226 = vst [vmem:[%s3330_s7 + $0x1b8] sm:$0xff] %v2993_v25 }
 0x20f   : > { %3006 = vrcp.f32 %v2038_v26 }
 0x210   : > { %v2995_v28 = vpop.eup %2994  ;;  %3008 = vpow2.f32 %v2525_v27 }
 0x211   : > { %v2997_v29 = vpop.eup %2996  ;;  %2227 = vst [vmem:[%s3330_s7 + $0x1c0] sm:$0xff] %v2995_v28 }
 0x212   : > { %v2039_v21 = vadd.f32 1.0, %v2997_v29 }
 0x214   : > { %v2999_v30 = vpop.eup %2998  ;;  %3010 = vrcp.f32 %v2039_v21 }
 0x215   : > { %v3001_v31 = vpop.eup %3000  ;;  %2228 = vst [vmem:[%s3330_s7 + $0x1c8] sm:$0xff] %v2999_v30 }
 0x216   : > { %v2040_v32 = vadd.f32 1.0, %v3001_v31 }
 0x218   : > { %v3003_v33 = vpop.eup %3002  ;;  %3012 = vrcp.f32 %v2040_v32 }
 0x219   : > { %v3005_v34 = vpop.eup %3004  ;;  %2229 = vst [vmem:[%s3330_s7 + $0x1d0] sm:$0xff] %v3003_v33 }
 0x21a   : > { %v2041_v35 = vadd.f32 1.0, %v3005_v34 }
 0x21c   : > { %v3007_v36 = vpop.eup %3006  ;;  %3014 = vrcp.f32 %v2041_v35 }
 0x21d   : > { %v3009_v37 = vpop.eup %3008  ;;  %2230 = vst [vmem:[%s3330_s7 + $0x1d8] sm:$0xff] %v3007_v36 }
 0x21e   : > { %v2042_v38 = vadd.f32 1.0, %v3009_v37 }
 0x220   : > { %3016 = vrcp.f32 %v2042_v38 }
 0x221   : > { %v3011_v39 = vpop.eup %3010 }
 0x222   : > { %2231 = vst [vmem:[%s3330_s7 + $0x1e0] sm:$0xff] %v3011_v39 }
 0x225   : > { %v3013_v40 = vpop.eup %3012 }
 0x226   : > { %2232 = vst [vmem:[%s3330_s7 + $0x1e8] sm:$0xff] %v3013_v40 }
 0x229   : > { %v3015_v41 = vpop.eup %3014 }
 0x22a   : > { %2233 = vst [vmem:[%s3330_s7 + $0x1f0] sm:$0xff] %v3015_v41 }
 0x22d   : > { %v3017_v42 = vpop.eup %3016 }
 0x22e   : > { %2234 = vst [vmem:[%s3330_s7 + $0x1f8] sm:$0xff] %v3017_v42 }
 0x22f PF: > { %s13_s12 = sadd.s32 1, %s3025_s12  }
 0x230   : > { %p10_p4 = scmp.ge.s32.totalorder %s13_s12, 4  }
 0x232   :  { %12 = sbr.rel (!%p10_p4) target bundleno = 1 (0x1), region = 62 }

</bundles_post_ra>
